<compile_context>
chip_gen: v5e
topology: v5e:2x2
jax: 0.10.0
libtpu: 0.0.40
codegen_flags: <defaults>
</compile_context>

<pallas_src>
import jax
import jax.numpy as jnp
from jax.experimental import pallas as pl
from jax.experimental.pallas import tpu as pltpu

LANE = 128          # vreg lane width
TILE_ROWS = 4096    # (4096, 128) f32 = 2 MiB block; 2 arrays x 2 buffers = 8 MiB VMEM


def _linreg_kernel(w_ref, b_ref, x_ref, o_ref):
    # w_ref, b_ref: (1,) scalars in SMEM.  x_ref/o_ref: (TILE_ROWS, 128) VMEM
    # tiles (final block is ragged and masked by Pallas on store).
    o_ref[...] = x_ref[...] * w_ref[0] + b_ref[0]


def linear_regression_forward(x, weight, bias):
    """x: (N, 1) f32, weight: (1, 1) f32, bias: (1,) f32 -> (N, 1) f32."""
    n, f = x.shape
    assert f == 1 and weight.shape == (1, 1) and bias.shape == (1,)
    dtype = x.dtype
    # TODO(synk): for bf16 inputs an f32-accumulating reference would differ;
    # inputs here are f32 so compute stays in the input dtype.
    w_s = weight.reshape(1).astype(dtype)   # (1,)
    b_s = bias.reshape(1).astype(dtype)     # (1,)

    m = -(-n // LANE)                        # ceil(N / 128) rows in the (M, 128) view

    # Fast path: fewer than 2 grid steps.  Kernel launch + wrapper reshapes
    # dominate there, and a single-step grid can't be split across v7x's TCs.
    if m <= TILE_ROWS:
        return x * w_s[0] + b_s[0]

    # ---- Lane-dense view: (N, 1) -> (m, 128).  Pad at most 127 elements.
    n_pad = m * LANE
    padded = n_pad != n
    x_flat = x.reshape(n)
    if padded:
        x_flat = jnp.pad(x_flat, (0, n_pad - n))
    x2d = x_flat.reshape(m, LANE)

    grid = (pl.cdiv(m, TILE_ROWS),)          # ragged final block is boundary-masked

    out2d = pl.pallas_call(
        _linreg_kernel,
        out_shape=jax.ShapeDtypeStruct((m, LANE), dtype),
        grid=grid,
        in_specs=[
            pl.BlockSpec(memory_space=pltpu.SMEM),               # weight scalar
            pl.BlockSpec(memory_space=pltpu.SMEM),               # bias scalar
            pl.BlockSpec((TILE_ROWS, LANE), lambda i: (i, 0)),   # x row-tile
        ],
        out_specs=pl.BlockSpec((TILE_ROWS, LANE), lambda i: (i, 0)),
        compiler_params=pltpu.CompilerParams(
            dimension_semantics=("parallel",)),                  # megacore on v7x
        # Only donate when we just materialized a fresh padded buffer; aliasing
        # a plain view of the caller's input would force XLA to add a copy.
        input_output_aliases={2: 0} if padded else {},
    )(w_s, b_s, x2d)

    if padded:
        return out2d.reshape(n_pad)[:n].reshape(n, 1)
    return out2d.reshape(n, 1)


if __name__ == "__main__":
    key = jax.random.PRNGKey(0)
    kx1, kx2, kw, kb = jax.random.split(key, 4)

    # Deterministic parameters matching nn.Linear(1, 1) shapes.
    weight = jax.random.uniform(kw, (1, 1), jnp.float32, minval=-1.0, maxval=1.0)
    bias = jax.random.uniform(kb, (1,), jnp.float32, minval=-1.0, maxval=1.0)

    fwd = jax.jit(linear_regression_forward)

    # Case 1: kernel path.  N chosen so N % 128 != 0 (exercises the <=127-elem
    # lane pad + donated buffer) and grid = 4 pipelined / megacore-shardable steps.
    n_big = 2_000_003
    x_big = jax.random.normal(kx1, (n_big, 1), jnp.float32)
    out_big = jax.block_until_ready(fwd(x_big, weight, bias))
    ref_big = x_big @ weight.T + bias
    assert out_big.shape == (n_big, 1)
    assert jnp.allclose(out_big, ref_big, atol=1e-6), "mismatch vs reference (kernel path)"

    # Case 2: small-batch fast path (fused XLA, no kernel launch).
    x_small = jax.random.normal(kx2, (1000, 1), jnp.float32)
    out_small = jax.block_until_ready(fwd(x_small, weight, bias))
    ref_small = x_small @ weight.T + bias
    assert out_small.shape == (1000, 1)
    assert jnp.allclose(out_small, ref_small, atol=1e-6), "mismatch vs reference (fast path)"

    print("KERNEL_OK")
</pallas_src>

<mosaic_0001>
module attributes {stable_mosaic.version = 11 : i64} {
  func.func @_linreg_kernel(%arg0: i32, %arg1: memref<1xf32, #tpu.memory_space<smem>>, %arg2: memref<1xf32, #tpu.memory_space<smem>>, %arg3: memref<4096x128xf32, #tpu.memory_space<vmem>>, %arg4: memref<4096x128xf32, #tpu.memory_space<vmem>>) attributes {dimension_semantics = [#tpu.dimension_semantics<parallel>], iteration_bounds = array<i64: 4>, scalar_prefetch = 0 : i64, scratch_operands = 0 : i64, tpu.core_type = #tpu.core_type<tc>, window_params = [{transform_indices = @transform_0, window_bounds = array<i64: 1>}, {transform_indices = @transform_1, window_bounds = array<i64: 1>}, {transform_indices = @transform_2, window_bounds = array<i64: 4096, 128>}, {transform_indices = @transform_3, window_bounds = array<i64: 4096, 128>}]} {
    %c0 = arith.constant 0 : index
    %c0_0 = arith.constant 0 : index
    %0 = vector.load %arg3[%c0, %c0_0] : memref<4096x128xf32, #tpu.memory_space<vmem>>, vector<4096x128xf32>
    %c0_1 = arith.constant 0 : index
    %1 = memref.load %arg1[%c0_1] : memref<1xf32, #tpu.memory_space<smem>>
    %2 = vector.broadcast %1 : f32 to vector<4096x128xf32>
    %3 = arith.mulf %0, %2 : vector<4096x128xf32>
    %c0_2 = arith.constant 0 : index
    %4 = memref.load %arg2[%c0_2] : memref<1xf32, #tpu.memory_space<smem>>
    %5 = vector.broadcast %4 : f32 to vector<4096x128xf32>
    %6 = arith.addf %3, %5 : vector<4096x128xf32>
    %c0_3 = arith.constant 0 : index
    %c0_4 = arith.constant 0 : index
    %7 = vector.load %arg4[%c0_3, %c0_4] : memref<4096x128xf32, #tpu.memory_space<vmem>>, vector<4096x128xf32>
    tpu.vector_store %arg4[%c0_3, %c0_4], %6 {strides = array<i32>} : memref<4096x128xf32, #tpu.memory_space<vmem>>, vector<4096x128xf32>,
    return
  }
  func.func @transform_0(%arg0: i32) -> i32 {
    %c0_i32 = arith.constant 0 : i32
    %c0_i32_0 = arith.constant 0 : i32
    return %c0_i32 : i32
  }
  func.func @transform_1(%arg0: i32) -> i32 {
    %c0_i32 = arith.constant 0 : i32
    %c0_i32_0 = arith.constant 0 : i32
    return %c0_i32 : i32
  }
  func.func @transform_2(%arg0: i32) -> (i32, i32) {
    %c0_i32 = arith.constant 0 : i32
    %c0_i32_0 = arith.constant 0 : i32
    return %arg0, %c0_i32 : i32, i32
  }
  func.func @transform_3(%arg0: i32) -> (i32, i32) {
    %c0_i32 = arith.constant 0 : i32
    %c0_i32_0 = arith.constant 0 : i32
    return %arg0, %c0_i32 : i32, i32
  }
}

</mosaic_0001>

<bundles_post_ra>
// kernel: linear_regression_forward.1
= control target key start
LH: loop header
LB: loop body
LE: loop exit
PB: predicated region body
PF: predicated region fallthrough
CT: control target
= control target key end

     0   :  { %s5047_s0 = inlined_call_operand.<no memory space> [shape: f32[1], index: 0, kind: input, shape index: {}]   ;;  %s5048_s1 = inlined_call_operand.<no memory space> [shape: f32[1], index: 1, kind: input, shape index: {}]   ;;  %s5049_s2 = inlined_call_operand.vmem [shape: f32[15626,128], index: 2, kind: input, shape index: {}, may-alias: {2,3}]   ;;  %s5050_s3 = inlined_call_operand.vmem [shape: f32[15626,128], index: 3, kind: output, shape index: {}, may-alias: {2,3}]  }
   0x1   :  { %8 = sst [smem:[#allocation2]] %s5047_s0 }
   0x2   :  { %9 = sst [smem:[#allocation3]] %s5048_s1 }
   0x3   :  { %s2815_s16 = smov 0   ;;  %s2817_s17 = smov 0  }
   0x4   :  { %s2819_s18 = smov 0  }
   0x5 LB: > { %s2826_s0 = sadd.s32 4294967295, %s2755_s18   ;;  %s2828_s1 = sadd.s32 1, %s2755_s18   ;;  %s2755_s18 = sphi %s2819_s18, %s5059_s18   ;;  %s2751_s17 = sphi %s2817_s17, %s5058_s17   ;;  %s2747_s16 = sphi %s2815_s16, %s5057_s16  }
   0x6   : > { %s87_s19 = ssub.s32 %s2755_s18, %s2828_s1  ;;  %s90_s20 = sadd.s32 1, %s2751_s17 }
   0x7   : > { %p88_p0 = scmp.eq.s32.totalorder %s87_s19, 0  ;;  %p100_p1 = scmp.ne.s32.totalorder %s2751_s17, %s2747_s16 }
   0x8   : > { %p101_p2 = scmp.eq.s32.totalorder %s2826_s0, 3  ;;  %p2589_p3 = scmp.ge.s32.totalorder %s2755_s18, 1 }
   0x9   : > { %s2835_s21 = scalar_select %p88_p0, %s2751_s17, %s90_s20  }
   0xa   : > { %p2837_p4 = por %p101_p2, %p100_p1  ;;  %p148_p5 = scmp.lt.s32.totalorder %s2755_s18, 5 }
   0xc   : > { %p149_p6 = pnand %p2589_p3, %p148_p5 }
   0xd   : > { %s2842_s23 = sshll.u32 (!%p149_p6), %s2826_s0, 9  ;;  %s706_s24 = sld [smem:[#allocation2]] (!%p149_p6) }
   0xe   : > { %152 = sbr.rel (%p149_p6) target bundleno = 604 (0x25c), region = 32  ;;  %p180_p7 = scmp.lt.s32.totalorder (!%p149_p6), %s2842_s23, 1953 }
   0xf   : > { %s172_s26 = sand.u32 (!%p149_p6), 1, %s2747_s16   ;;  %s1220_s27 = sld [smem:[#allocation3]] (!%p149_p6) }
  0x10   : > { %s2590_s5 = sshll.u32 (!%p149_p6), %s172_s26, 12 }
  0x11   : > { %s2878_s6 = scalar_lea.vmem (!%p149_p6), [#allocation4], %s2590_s5  }
  0x13   : > { %s181_s25 = scalar_select %p180_p7, %s2842_s23, 1953  ;;  %v2854_v3 = vstv %s706_s24 }
  0x14   : > { %s2254_s7 = ssub.s32 (%p2837_p4), 1954, %s2842_s23  ;;  %s2610_s8 = sshll.u32 (%p2837_p4), %s2826_s0, 12 }
  0x15   : > { %s2592_s28 = sshll.u32 %s181_s25, 3  ;;  %v2865_v13 = vstv %s1220_s27  ;;  %p2255_p8 = scmp.lt.s32.totalorder (%p2837_p4), %s2254_s7, 512 }
  0x16   : > { %s2849_s4 = scalar_lea.vmem %s5049_s2, %s2592_s28  ;;  %s4912_s11 = scalar_lea.vmem (%p2837_p4), %s5050_s3, %s2610_s8  }
  0x17   : > { %v194_v0 = vld [vmem:[%s2849_s4] sm:$0xff]  ;;  %v195_v1 = vld [vmem:[%s2849_s4 + $0x8] sm:$0xff]  ;;  %v196_v2 = vld [vmem:[%s2849_s4 + $0x10] sm:$0xff] }
  0x18   : > { %v197_v4 = vld [vmem:[%s2849_s4 + $0x18] sm:$0xff]  ;;  %v198_v5 = vld [vmem:[%s2849_s4 + $0x20] sm:$0xff]  ;;  %v199_v6 = vld [vmem:[%s2849_s4 + $0x28] sm:$0xff]  ;;  %v708_v7 = vmul.f32 %v2854_v3, %v194_v0  ;;  %v709_v8 = vmul.f32 %v2854_v3, %v195_v1  ;;  %v710_v9 = vmul.f32 %v2854_v3, %v196_v2 }
  0x19   : > { %v711_v10 = vmul.f32 %v2854_v3, %v197_v4  ;;  %v200_v11 = vld [vmem:[%s2849_s4 + $0x30] sm:$0xff]  ;;  %v201_v12 = vld [vmem:[%s2849_s4 + $0x38] sm:$0xff]  ;;  %v712_v14 = vmul.f32 %v2854_v3, %v198_v5  ;;  %v713_v15 = vmul.f32 %v2854_v3, %v199_v6  ;;  %v202_v16 = vld [vmem:[%s2849_s4 + $0x40] sm:$0xff] }
  0x1a   : > { %v1222_v17 = vadd.f32 %v2865_v13, %v708_v7  ;;  %v1223_v18 = vadd.f32 %v2865_v13, %v709_v8  ;;  %v1224_v19 = vadd.f32 %v2865_v13, %v710_v9  ;;  %v714_v20 = vmul.f32 %v2854_v3, %v200_v11  ;;  %v203_v21 = vld [vmem:[%s2849_s4 + $0x48] sm:$0xff]  ;;  %v204_v24 = vld [vmem:[%s2849_s4 + $0x50] sm:$0xff]  ;;  %v205_v27 = vld [vmem:[%s2849_s4 + $0x58] sm:$0xff] }
  0x1b   : > { %v1225_v22 = vadd.f32 %v2865_v13, %v711_v10  ;;  %v715_v23 = vmul.f32 %v2854_v3, %v201_v12  ;;  %v1226_v25 = vadd.f32 %v2865_v13, %v712_v14  ;;  %v716_v26 = vmul.f32 %v2854_v3, %v202_v16  ;;  %v206_v30 = vld [vmem:[%s2849_s4 + $0x60] sm:$0xff]  ;;  %v207_v33 = vld [vmem:[%s2849_s4 + $0x68] sm:$0xff]  ;;  %v208_v36 = vld [vmem:[%s2849_s4 + $0x70] sm:$0xff] }
  0x1c   : > { %1734 = vst [vmem:[%s2878_s6] sm:$0xff] %v1222_v17  ;;  %v1227_v28 = vadd.f32 %v2865_v13, %v713_v15  ;;  %v717_v29 = vmul.f32 %v2854_v3, %v203_v21  ;;  %v1228_v31 = vadd.f32 %v2865_v13, %v714_v20  ;;  %v718_v32 = vmul.f32 %v2854_v3, %v204_v24  ;;  %v209_v39 = vld [vmem:[%s2849_s4 + $0x78] sm:$0xff]  ;;  %v210_v42 = vld [vmem:[%s2849_s4 + $0x80] sm:$0xff]  ;;  %v211_v45 = vld [vmem:[%s2849_s4 + $0x88] sm:$0xff] }
  0x1d   : > { %1735 = vst [vmem:[%s2878_s6 + $0x8] sm:$0xff] %v1223_v18  ;;  %v1229_v34 = vadd.f32 %v2865_v13, %v715_v23  ;;  %v719_v35 = vmul.f32 %v2854_v3, %v205_v27  ;;  %v1230_v37 = vadd.f32 %v2865_v13, %v716_v26  ;;  %v720_v38 = vmul.f32 %v2854_v3, %v206_v30  ;;  %v212_v48 = vld [vmem:[%s2849_s4 + $0x90] sm:$0xff]  ;;  %v213_v51 = vld [vmem:[%s2849_s4 + $0x98] sm:$0xff]  ;;  %v214_v54 = vld [vmem:[%s2849_s4 + $0xa0] sm:$0xff] }
  0x1e   : > { %1736 = vst [vmem:[%s2878_s6 + $0x10] sm:$0xff] %v1224_v19  ;;  %v1231_v40 = vadd.f32 %v2865_v13, %v717_v29  ;;  %v721_v41 = vmul.f32 %v2854_v3, %v207_v33  ;;  %v1232_v43 = vadd.f32 %v2865_v13, %v718_v32  ;;  %v722_v44 = vmul.f32 %v2854_v3, %v208_v36  ;;  %v215_v57 = vld [vmem:[%s2849_s4 + $0xa8] sm:$0xff]  ;;  %v216_v60 = vld [vmem:[%s2849_s4 + $0xb0] sm:$0xff]  ;;  %v217_v63 = vld [vmem:[%s2849_s4 + $0xb8] sm:$0xff] }
  0x1f   : > { %1737 = vst [vmem:[%s2878_s6 + $0x18] sm:$0xff] %v1225_v22  ;;  %v1233_v46 = vadd.f32 %v2865_v13, %v719_v35  ;;  %v723_v47 = vmul.f32 %v2854_v3, %v209_v39  ;;  %v1234_v49 = vadd.f32 %v2865_v13, %v720_v38  ;;  %v724_v50 = vmul.f32 %v2854_v3, %v210_v42  ;;  %v218_v2 = vld [vmem:[%s2849_s4 + $0xc0] sm:$0xff]  ;;  %v219_v6 = vld [vmem:[%s2849_s4 + $0xc8] sm:$0xff]  ;;  %v220_v9 = vld [vmem:[%s2849_s4 + $0xd0] sm:$0xff] }
  0x20   : > { %1738 = vst [vmem:[%s2878_s6 + $0x20] sm:$0xff] %v1226_v25  ;;  %v1235_v52 = vadd.f32 %v2865_v13, %v721_v41  ;;  %v725_v53 = vmul.f32 %v2854_v3, %v211_v45  ;;  %v1236_v55 = vadd.f32 %v2865_v13, %v722_v44  ;;  %v726_v56 = vmul.f32 %v2854_v3, %v212_v48  ;;  %v221_v12 = vld [vmem:[%s2849_s4 + $0xd8] sm:$0xff]  ;;  %v222_v16 = vld [vmem:[%s2849_s4 + $0xe0] sm:$0xff]  ;;  %v223_v19 = vld [vmem:[%s2849_s4 + $0xe8] sm:$0xff] }
  0x21   : > { %1739 = vst [vmem:[%s2878_s6 + $0x28] sm:$0xff] %v1227_v28  ;;  %v1237_v58 = vadd.f32 %v2865_v13, %v723_v47  ;;  %v727_v59 = vmul.f32 %v2854_v3, %v213_v51  ;;  %v1238_v61 = vadd.f32 %v2865_v13, %v724_v50  ;;  %v728_v62 = vmul.f32 %v2854_v3, %v214_v54  ;;  %v224_v22 = vld [vmem:[%s2849_s4 + $0xf0] sm:$0xff]  ;;  %v225_v25 = vld [vmem:[%s2849_s4 + $0xf8] sm:$0xff]  ;;  %v226_v28 = vld [vmem:[%s2849_s4 + $0x100] sm:$0xff] }
  0x22   : > { %1740 = vst [vmem:[%s2878_s6 + $0x30] sm:$0xff] %v1228_v31  ;;  %v1239_v0 = vadd.f32 %v2865_v13, %v725_v53  ;;  %v729_v1 = vmul.f32 %v2854_v3, %v215_v57  ;;  %v1240_v4 = vadd.f32 %v2865_v13, %v726_v56  ;;  %v730_v5 = vmul.f32 %v2854_v3, %v216_v60  ;;  %v227_v31 = vld [vmem:[%s2849_s4 + $0x108] sm:$0xff] }
  0x23   : > { %1741 = vst [vmem:[%s2878_s6 + $0x38] sm:$0xff] %v1229_v34  ;;  %v1241_v7 = vadd.f32 %v2865_v13, %v727_v59  ;;  %v731_v8 = vmul.f32 %v2854_v3, %v217_v63  ;;  %v1242_v10 = vadd.f32 %v2865_v13, %v728_v62  ;;  %v732_v11 = vmul.f32 %v2854_v3, %v218_v2  ;;  %v228_v34 = vld [vmem:[%s2849_s4 + $0x110] sm:$0xff] }
  0x24   : > { %1742 = vst [vmem:[%s2878_s6 + $0x40] sm:$0xff] %v1230_v37  ;;  %v1243_v14 = vadd.f32 %v2865_v13, %v729_v1  ;;  %v733_v15 = vmul.f32 %v2854_v3, %v219_v6  ;;  %v1244_v17 = vadd.f32 %v2865_v13, %v730_v5  ;;  %v734_v18 = vmul.f32 %v2854_v3, %v220_v9  ;;  %v229_v37 = vld [vmem:[%s2849_s4 + $0x118] sm:$0xff] }
  0x25   : > { %1743 = vst [vmem:[%s2878_s6 + $0x48] sm:$0xff] %v1231_v40  ;;  %v1245_v20 = vadd.f32 %v2865_v13, %v731_v8  ;;  %v735_v21 = vmul.f32 %v2854_v3, %v221_v12  ;;  %v1246_v23 = vadd.f32 %v2865_v13, %v732_v11  ;;  %v736_v24 = vmul.f32 %v2854_v3, %v222_v16  ;;  %v230_v40 = vld [vmem:[%s2849_s4 + $0x120] sm:$0xff] }
  0x26   : > { %1744 = vst [vmem:[%s2878_s6 + $0x50] sm:$0xff] %v1232_v43  ;;  %v1247_v26 = vadd.f32 %v2865_v13, %v733_v15  ;;  %v737_v27 = vmul.f32 %v2854_v3, %v223_v19  ;;  %v1248_v29 = vadd.f32 %v2865_v13, %v734_v18  ;;  %v738_v30 = vmul.f32 %v2854_v3, %v224_v22  ;;  %v231_v43 = vld [vmem:[%s2849_s4 + $0x128] sm:$0xff] }
  0x27   : > { %1745 = vst [vmem:[%s2878_s6 + $0x58] sm:$0xff] %v1233_v46  ;;  %v1249_v32 = vadd.f32 %v2865_v13, %v735_v21  ;;  %v739_v33 = vmul.f32 %v2854_v3, %v225_v25  ;;  %v1250_v35 = vadd.f32 %v2865_v13, %v736_v24  ;;  %v740_v36 = vmul.f32 %v2854_v3, %v226_v28  ;;  %v232_v46 = vld [vmem:[%s2849_s4 + $0x130] sm:$0xff] }
  0x28   : > { %1746 = vst [vmem:[%s2878_s6 + $0x60] sm:$0xff] %v1234_v49  ;;  %v1251_v38 = vadd.f32 %v2865_v13, %v737_v27  ;;  %v741_v39 = vmul.f32 %v2854_v3, %v227_v31  ;;  %v1252_v41 = vadd.f32 %v2865_v13, %v738_v30  ;;  %v742_v42 = vmul.f32 %v2854_v3, %v228_v34  ;;  %v233_v49 = vld [vmem:[%s2849_s4 + $0x138] sm:$0xff] }
  0x29   : > { %1747 = vst [vmem:[%s2878_s6 + $0x68] sm:$0xff] %v1235_v52  ;;  %v1253_v44 = vadd.f32 %v2865_v13, %v739_v33  ;;  %v743_v45 = vmul.f32 %v2854_v3, %v229_v37  ;;  %v1254_v47 = vadd.f32 %v2865_v13, %v740_v36  ;;  %v744_v48 = vmul.f32 %v2854_v3, %v230_v40  ;;  %v234_v52 = vld [vmem:[%s2849_s4 + $0x140] sm:$0xff] }
  0x2a   : > { %1748 = vst [vmem:[%s2878_s6 + $0x70] sm:$0xff] %v1236_v55  ;;  %v1255_v50 = vadd.f32 %v2865_v13, %v741_v39  ;;  %v745_v51 = vmul.f32 %v2854_v3, %v231_v43  ;;  %v1256_v53 = vadd.f32 %v2865_v13, %v742_v42  ;;  %v746_v54 = vmul.f32 %v2854_v3, %v232_v46  ;;  %v235_v55 = vld [vmem:[%s2849_s4 + $0x148] sm:$0xff] }
  0x2b   : > { %1749 = vst [vmem:[%s2878_s6 + $0x78] sm:$0xff] %v1237_v58  ;;  %v1257_v56 = vadd.f32 %v2865_v13, %v743_v45  ;;  %v747_v57 = vmul.f32 %v2854_v3, %v233_v49  ;;  %v236_v58 = vld [vmem:[%s2849_s4 + $0x150] sm:$0xff]  ;;  %v1258_v59 = vadd.f32 %v2865_v13, %v744_v48  ;;  %v748_v60 = vmul.f32 %v2854_v3, %v234_v52 }
  0x2c   : > { %1750 = vst [vmem:[%s2878_s6 + $0x80] sm:$0xff] %v1238_v61  ;;  %v237_v61 = vld [vmem:[%s2849_s4 + $0x158] sm:$0xff]  ;;  %v1259_v62 = vadd.f32 %v2865_v13, %v745_v51  ;;  %v749_v63 = vmul.f32 %v2854_v3, %v235_v55  ;;  %v1260_v1 = vadd.f32 %v2865_v13, %v746_v54  ;;  %v750_v2 = vmul.f32 %v2854_v3, %v236_v58 }
  0x2d   : > { %1751 = vst [vmem:[%s2878_s6 + $0x88] sm:$0xff] %v1239_v0  ;;  %v238_v0 = vld [vmem:[%s2849_s4 + $0x160] sm:$0xff]  ;;  %v1261_v5 = vadd.f32 %v2865_v13, %v747_v57  ;;  %v751_v6 = vmul.f32 %v2854_v3, %v237_v61  ;;  %v1262_v8 = vadd.f32 %v2865_v13, %v748_v60 }
  0x2e   : > { %1752 = vst [vmem:[%s2878_s6 + $0x90] sm:$0xff] %v1240_v4  ;;  %v239_v4 = vld [vmem:[%s2849_s4 + $0x168] sm:$0xff]  ;;  %v752_v9 = vmul.f32 %v2854_v3, %v238_v0  ;;  %v1263_v11 = vadd.f32 %v2865_v13, %v749_v63  ;;  %v1264_v15 = vadd.f32 %v2865_v13, %v750_v2 }
  0x2f   : > { %1753 = vst [vmem:[%s2878_s6 + $0x98] sm:$0xff] %v1241_v7  ;;  %v240_v7 = vld [vmem:[%s2849_s4 + $0x170] sm:$0xff]  ;;  %v753_v12 = vmul.f32 %v2854_v3, %v239_v4  ;;  %v1265_v18 = vadd.f32 %v2865_v13, %v751_v6 }
  0x30   : > { %1754 = vst [vmem:[%s2878_s6 + $0xa0] sm:$0xff] %v1242_v10  ;;  %v241_v10 = vld [vmem:[%s2849_s4 + $0x178] sm:$0xff]  ;;  %v754_v16 = vmul.f32 %v2854_v3, %v240_v7  ;;  %v1266_v21 = vadd.f32 %v2865_v13, %v752_v9 }
  0x31   : > { %1755 = vst [vmem:[%s2878_s6 + $0xa8] sm:$0xff] %v1243_v14  ;;  %v242_v14 = vld [vmem:[%s2849_s4 + $0x180] sm:$0xff]  ;;  %v755_v19 = vmul.f32 %v2854_v3, %v241_v10  ;;  %v1267_v24 = vadd.f32 %v2865_v13, %v753_v12 }
  0x32   : > { %1756 = vst [vmem:[%s2878_s6 + $0xb0] sm:$0xff] %v1244_v17  ;;  %v243_v17 = vld [vmem:[%s2849_s4 + $0x188] sm:$0xff]  ;;  %v756_v22 = vmul.f32 %v2854_v3, %v242_v14  ;;  %v1268_v27 = vadd.f32 %v2865_v13, %v754_v16 }
  0x33   : > { %1757 = vst [vmem:[%s2878_s6 + $0xb8] sm:$0xff] %v1245_v20  ;;  %v244_v20 = vld [vmem:[%s2849_s4 + $0x190] sm:$0xff]  ;;  %v757_v25 = vmul.f32 %v2854_v3, %v243_v17  ;;  %v1269_v30 = vadd.f32 %v2865_v13, %v755_v19 }
  0x34   : > { %1758 = vst [vmem:[%s2878_s6 + $0xc0] sm:$0xff] %v1246_v23  ;;  %v245_v23 = vld [vmem:[%s2849_s4 + $0x198] sm:$0xff]  ;;  %v758_v28 = vmul.f32 %v2854_v3, %v244_v20  ;;  %v1270_v33 = vadd.f32 %v2865_v13, %v756_v22 }
  0x35   : > { %1759 = vst [vmem:[%s2878_s6 + $0xc8] sm:$0xff] %v1247_v26  ;;  %v246_v26 = vld [vmem:[%s2849_s4 + $0x1a0] sm:$0xff]  ;;  %v759_v31 = vmul.f32 %v2854_v3, %v245_v23  ;;  %v1271_v36 = vadd.f32 %v2865_v13, %v757_v25 }
  0x36   : > { %1760 = vst [vmem:[%s2878_s6 + $0xd0] sm:$0xff] %v1248_v29  ;;  %v247_v29 = vld [vmem:[%s2849_s4 + $0x1a8] sm:$0xff]  ;;  %v760_v34 = vmul.f32 %v2854_v3, %v246_v26  ;;  %v1272_v39 = vadd.f32 %v2865_v13, %v758_v28 }
  0x37   : > { %1761 = vst [vmem:[%s2878_s6 + $0xd8] sm:$0xff] %v1249_v32  ;;  %v248_v32 = vld [vmem:[%s2849_s4 + $0x1b0] sm:$0xff]  ;;  %v761_v37 = vmul.f32 %v2854_v3, %v247_v29  ;;  %v1273_v42 = vadd.f32 %v2865_v13, %v759_v31 }
  0x38   : > { %1762 = vst [vmem:[%s2878_s6 + $0xe0] sm:$0xff] %v1250_v35  ;;  %v249_v35 = vld [vmem:[%s2849_s4 + $0x1b8] sm:$0xff]  ;;  %v762_v40 = vmul.f32 %v2854_v3, %v248_v32  ;;  %v1274_v45 = vadd.f32 %v2865_v13, %v760_v34 }
  0x39   : > { %1763 = vst [vmem:[%s2878_s6 + $0xe8] sm:$0xff] %v1251_v38  ;;  %v250_v38 = vld [vmem:[%s2849_s4 + $0x1c0] sm:$0xff]  ;;  %v763_v43 = vmul.f32 %v2854_v3, %v249_v35  ;;  %v1275_v48 = vadd.f32 %v2865_v13, %v761_v37 }
  0x3a   : > { %1764 = vst [vmem:[%s2878_s6 + $0xf0] sm:$0xff] %v1252_v41  ;;  %v251_v41 = vld [vmem:[%s2849_s4 + $0x1c8] sm:$0xff]  ;;  %v764_v46 = vmul.f32 %v2854_v3, %v250_v38  ;;  %v1276_v51 = vadd.f32 %v2865_v13, %v762_v40 }
  0x3b   : > { %1765 = vst [vmem:[%s2878_s6 + $0xf8] sm:$0xff] %v1253_v44  ;;  %v252_v44 = vld [vmem:[%s2849_s4 + $0x1d0] sm:$0xff]  ;;  %v765_v49 = vmul.f32 %v2854_v3, %v251_v41  ;;  %v1277_v54 = vadd.f32 %v2865_v13, %v763_v43 }
  0x3c   : > { %1766 = vst [vmem:[%s2878_s6 + $0x100] sm:$0xff] %v1254_v47  ;;  %v253_v47 = vld [vmem:[%s2849_s4 + $0x1d8] sm:$0xff]  ;;  %v766_v52 = vmul.f32 %v2854_v3, %v252_v44  ;;  %v1278_v57 = vadd.f32 %v2865_v13, %v764_v46 }
  0x3d   : > { %1767 = vst [vmem:[%s2878_s6 + $0x108] sm:$0xff] %v1255_v50  ;;  %v254_v50 = vld [vmem:[%s2849_s4 + $0x1e0] sm:$0xff]  ;;  %v767_v55 = vmul.f32 %v2854_v3, %v253_v47  ;;  %v1279_v60 = vadd.f32 %v2865_v13, %v765_v49 }
  0x3e   : > { %1768 = vst [vmem:[%s2878_s6 + $0x110] sm:$0xff] %v1256_v53  ;;  %v255_v53 = vld [vmem:[%s2849_s4 + $0x1e8] sm:$0xff]  ;;  %v768_v58 = vmul.f32 %v2854_v3, %v254_v50  ;;  %v1280_v63 = vadd.f32 %v2865_v13, %v766_v52 }
  0x3f   : > { %1769 = vst [vmem:[%s2878_s6 + $0x118] sm:$0xff] %v1257_v56  ;;  %v256_v56 = vld [vmem:[%s2849_s4 + $0x1f0] sm:$0xff]  ;;  %v769_v61 = vmul.f32 %v2854_v3, %v255_v53  ;;  %v1281_v2 = vadd.f32 %v2865_v13, %v767_v55 }
  0x40   : > { %1770 = vst [vmem:[%s2878_s6 + $0x120] sm:$0xff] %v1258_v59  ;;  %v257_v59 = vld [vmem:[%s2849_s4 + $0x1f8] sm:$0xff]  ;;  %v770_v0 = vmul.f32 %v2854_v3, %v256_v56  ;;  %v1282_v6 = vadd.f32 %v2865_v13, %v768_v58 }
  0x41   : > { %1771 = vst [vmem:[%s2878_s6 + $0x128] sm:$0xff] %v1259_v62  ;;  %v258_v62 = vld [vmem:[%s2849_s4 + $0x200] sm:$0xff]  ;;  %v771_v4 = vmul.f32 %v2854_v3, %v257_v59  ;;  %v1283_v9 = vadd.f32 %v2865_v13, %v769_v61 }
  0x42   : > { %1772 = vst [vmem:[%s2878_s6 + $0x130] sm:$0xff] %v1260_v1  ;;  %v259_v1 = vld [vmem:[%s2849_s4 + $0x208] sm:$0xff]  ;;  %v772_v7 = vmul.f32 %v2854_v3, %v258_v62  ;;  %v1284_v12 = vadd.f32 %v2865_v13, %v770_v0 }
  0x43   : > { %1773 = vst [vmem:[%s2878_s6 + $0x138] sm:$0xff] %v1261_v5  ;;  %v260_v5 = vld [vmem:[%s2849_s4 + $0x210] sm:$0xff]  ;;  %v773_v10 = vmul.f32 %v2854_v3, %v259_v1  ;;  %v1285_v16 = vadd.f32 %v2865_v13, %v771_v4 }
  0x44   : > { %1774 = vst [vmem:[%s2878_s6 + $0x140] sm:$0xff] %v1262_v8  ;;  %v261_v8 = vld [vmem:[%s2849_s4 + $0x218] sm:$0xff]  ;;  %v774_v14 = vmul.f32 %v2854_v3, %v260_v5  ;;  %v1286_v19 = vadd.f32 %v2865_v13, %v772_v7 }
  0x45   : > { %1775 = vst [vmem:[%s2878_s6 + $0x148] sm:$0xff] %v1263_v11  ;;  %v262_v11 = vld [vmem:[%s2849_s4 + $0x220] sm:$0xff]  ;;  %v775_v17 = vmul.f32 %v2854_v3, %v261_v8  ;;  %v1287_v22 = vadd.f32 %v2865_v13, %v773_v10 }
  0x46   : > { %1776 = vst [vmem:[%s2878_s6 + $0x150] sm:$0xff] %v1264_v15  ;;  %v263_v15 = vld [vmem:[%s2849_s4 + $0x228] sm:$0xff]  ;;  %v776_v20 = vmul.f32 %v2854_v3, %v262_v11  ;;  %v1288_v25 = vadd.f32 %v2865_v13, %v774_v14 }
  0x47   : > { %1777 = vst [vmem:[%s2878_s6 + $0x158] sm:$0xff] %v1265_v18  ;;  %v264_v18 = vld [vmem:[%s2849_s4 + $0x230] sm:$0xff]  ;;  %v777_v23 = vmul.f32 %v2854_v3, %v263_v15  ;;  %v1289_v28 = vadd.f32 %v2865_v13, %v775_v17 }
  0x48   : > { %1778 = vst [vmem:[%s2878_s6 + $0x160] sm:$0xff] %v1266_v21  ;;  %v265_v21 = vld [vmem:[%s2849_s4 + $0x238] sm:$0xff]  ;;  %v778_v26 = vmul.f32 %v2854_v3, %v264_v18  ;;  %v1290_v31 = vadd.f32 %v2865_v13, %v776_v20 }
  0x49   : > { %1779 = vst [vmem:[%s2878_s6 + $0x168] sm:$0xff] %v1267_v24  ;;  %v266_v24 = vld [vmem:[%s2849_s4 + $0x240] sm:$0xff]  ;;  %v779_v29 = vmul.f32 %v2854_v3, %v265_v21  ;;  %v1291_v34 = vadd.f32 %v2865_v13, %v777_v23 }
  0x4a   : > { %1780 = vst [vmem:[%s2878_s6 + $0x170] sm:$0xff] %v1268_v27  ;;  %v267_v27 = vld [vmem:[%s2849_s4 + $0x248] sm:$0xff]  ;;  %v780_v32 = vmul.f32 %v2854_v3, %v266_v24  ;;  %v1292_v37 = vadd.f32 %v2865_v13, %v778_v26 }
  0x4b   : > { %1781 = vst [vmem:[%s2878_s6 + $0x178] sm:$0xff] %v1269_v30  ;;  %v268_v30 = vld [vmem:[%s2849_s4 + $0x250] sm:$0xff]  ;;  %v781_v35 = vmul.f32 %v2854_v3, %v267_v27  ;;  %v1293_v40 = vadd.f32 %v2865_v13, %v779_v29 }
  0x4c   : > { %1782 = vst [vmem:[%s2878_s6 + $0x180] sm:$0xff] %v1270_v33  ;;  %v269_v33 = vld [vmem:[%s2849_s4 + $0x258] sm:$0xff]  ;;  %v782_v38 = vmul.f32 %v2854_v3, %v268_v30  ;;  %v1294_v43 = vadd.f32 %v2865_v13, %v780_v32 }
  0x4d   : > { %1783 = vst [vmem:[%s2878_s6 + $0x188] sm:$0xff] %v1271_v36  ;;  %v270_v36 = vld [vmem:[%s2849_s4 + $0x260] sm:$0xff]  ;;  %v783_v41 = vmul.f32 %v2854_v3, %v269_v33  ;;  %v1295_v46 = vadd.f32 %v2865_v13, %v781_v35 }
  0x4e   : > { %1784 = vst [vmem:[%s2878_s6 + $0x190] sm:$0xff] %v1272_v39  ;;  %v271_v39 = vld [vmem:[%s2849_s4 + $0x268] sm:$0xff]  ;;  %v784_v44 = vmul.f32 %v2854_v3, %v270_v36  ;;  %v1296_v49 = vadd.f32 %v2865_v13, %v782_v38 }
  0x4f   : > { %1785 = vst [vmem:[%s2878_s6 + $0x198] sm:$0xff] %v1273_v42  ;;  %v272_v42 = vld [vmem:[%s2849_s4 + $0x270] sm:$0xff]  ;;  %v785_v47 = vmul.f32 %v2854_v3, %v271_v39  ;;  %v1297_v52 = vadd.f32 %v2865_v13, %v783_v41 }
  0x50   : > { %1786 = vst [vmem:[%s2878_s6 + $0x1a0] sm:$0xff] %v1274_v45  ;;  %v273_v45 = vld [vmem:[%s2849_s4 + $0x278] sm:$0xff]  ;;  %v786_v50 = vmul.f32 %v2854_v3, %v272_v42  ;;  %v1298_v55 = vadd.f32 %v2865_v13, %v784_v44 }
  0x51   : > { %1787 = vst [vmem:[%s2878_s6 + $0x1a8] sm:$0xff] %v1275_v48  ;;  %v274_v48 = vld [vmem:[%s2849_s4 + $0x280] sm:$0xff]  ;;  %v787_v53 = vmul.f32 %v2854_v3, %v273_v45  ;;  %v1299_v58 = vadd.f32 %v2865_v13, %v785_v47 }
  0x52   : > { %1788 = vst [vmem:[%s2878_s6 + $0x1b0] sm:$0xff] %v1276_v51  ;;  %v275_v51 = vld [vmem:[%s2849_s4 + $0x288] sm:$0xff]  ;;  %v788_v56 = vmul.f32 %v2854_v3, %v274_v48  ;;  %v1300_v61 = vadd.f32 %v2865_v13, %v786_v50 }
  0x53   : > { %1789 = vst [vmem:[%s2878_s6 + $0x1b8] sm:$0xff] %v1277_v54  ;;  %v276_v54 = vld [vmem:[%s2849_s4 + $0x290] sm:$0xff]  ;;  %v789_v59 = vmul.f32 %v2854_v3, %v275_v51  ;;  %v1301_v0 = vadd.f32 %v2865_v13, %v787_v53 }
  0x54   : > { %1790 = vst [vmem:[%s2878_s6 + $0x1c0] sm:$0xff] %v1278_v57  ;;  %v277_v57 = vld [vmem:[%s2849_s4 + $0x298] sm:$0xff]  ;;  %v790_v62 = vmul.f32 %v2854_v3, %v276_v54  ;;  %v1302_v4 = vadd.f32 %v2865_v13, %v788_v56 }
  0x55   : > { %1791 = vst [vmem:[%s2878_s6 + $0x1c8] sm:$0xff] %v1279_v60  ;;  %v278_v60 = vld [vmem:[%s2849_s4 + $0x2a0] sm:$0xff]  ;;  %v791_v1 = vmul.f32 %v2854_v3, %v277_v57  ;;  %v1303_v7 = vadd.f32 %v2865_v13, %v789_v59 }
  0x56   : > { %1792 = vst [vmem:[%s2878_s6 + $0x1d0] sm:$0xff] %v1280_v63  ;;  %v279_v63 = vld [vmem:[%s2849_s4 + $0x2a8] sm:$0xff]  ;;  %v792_v5 = vmul.f32 %v2854_v3, %v278_v60  ;;  %v1304_v10 = vadd.f32 %v2865_v13, %v790_v62 }
  0x57   : > { %1793 = vst [vmem:[%s2878_s6 + $0x1d8] sm:$0xff] %v1281_v2  ;;  %v280_v2 = vld [vmem:[%s2849_s4 + $0x2b0] sm:$0xff]  ;;  %v793_v8 = vmul.f32 %v2854_v3, %v279_v63  ;;  %v1305_v14 = vadd.f32 %v2865_v13, %v791_v1 }
  0x58   : > { %1794 = vst [vmem:[%s2878_s6 + $0x1e0] sm:$0xff] %v1282_v6  ;;  %v281_v6 = vld [vmem:[%s2849_s4 + $0x2b8] sm:$0xff]  ;;  %v794_v11 = vmul.f32 %v2854_v3, %v280_v2  ;;  %v1306_v17 = vadd.f32 %v2865_v13, %v792_v5 }
  0x59   : > { %1795 = vst [vmem:[%s2878_s6 + $0x1e8] sm:$0xff] %v1283_v9  ;;  %v282_v9 = vld [vmem:[%s2849_s4 + $0x2c0] sm:$0xff]  ;;  %v795_v15 = vmul.f32 %v2854_v3, %v281_v6  ;;  %v1307_v20 = vadd.f32 %v2865_v13, %v793_v8 }
  0x5a   : > { %1796 = vst [vmem:[%s2878_s6 + $0x1f0] sm:$0xff] %v1284_v12  ;;  %v283_v12 = vld [vmem:[%s2849_s4 + $0x2c8] sm:$0xff]  ;;  %v796_v18 = vmul.f32 %v2854_v3, %v282_v9  ;;  %v1308_v23 = vadd.f32 %v2865_v13, %v794_v11 }
  0x5b   : > { %1797 = vst [vmem:[%s2878_s6 + $0x1f8] sm:$0xff] %v1285_v16  ;;  %v284_v16 = vld [vmem:[%s2849_s4 + $0x2d0] sm:$0xff]  ;;  %v797_v21 = vmul.f32 %v2854_v3, %v283_v12  ;;  %v1309_v26 = vadd.f32 %v2865_v13, %v795_v15 }
  0x5c   : > { %1798 = vst [vmem:[%s2878_s6 + $0x200] sm:$0xff] %v1286_v19  ;;  %v285_v19 = vld [vmem:[%s2849_s4 + $0x2d8] sm:$0xff]  ;;  %v798_v24 = vmul.f32 %v2854_v3, %v284_v16  ;;  %v1310_v29 = vadd.f32 %v2865_v13, %v796_v18 }
  0x5d   : > { %1799 = vst [vmem:[%s2878_s6 + $0x208] sm:$0xff] %v1287_v22  ;;  %v286_v22 = vld [vmem:[%s2849_s4 + $0x2e0] sm:$0xff]  ;;  %v799_v27 = vmul.f32 %v2854_v3, %v285_v19  ;;  %v1311_v32 = vadd.f32 %v2865_v13, %v797_v21 }
  0x5e   : > { %1800 = vst [vmem:[%s2878_s6 + $0x210] sm:$0xff] %v1288_v25  ;;  %v287_v25 = vld [vmem:[%s2849_s4 + $0x2e8] sm:$0xff]  ;;  %v800_v30 = vmul.f32 %v2854_v3, %v286_v22  ;;  %v1312_v35 = vadd.f32 %v2865_v13, %v798_v24 }
  0x5f   : > { %1801 = vst [vmem:[%s2878_s6 + $0x218] sm:$0xff] %v1289_v28  ;;  %v288_v28 = vld [vmem:[%s2849_s4 + $0x2f0] sm:$0xff]  ;;  %v801_v33 = vmul.f32 %v2854_v3, %v287_v25  ;;  %v1313_v38 = vadd.f32 %v2865_v13, %v799_v27 }
  0x60   : > { %1802 = vst [vmem:[%s2878_s6 + $0x220] sm:$0xff] %v1290_v31  ;;  %v289_v31 = vld [vmem:[%s2849_s4 + $0x2f8] sm:$0xff]  ;;  %v802_v36 = vmul.f32 %v2854_v3, %v288_v28  ;;  %v1314_v41 = vadd.f32 %v2865_v13, %v800_v30 }
  0x61   : > { %1803 = vst [vmem:[%s2878_s6 + $0x228] sm:$0xff] %v1291_v34  ;;  %v290_v34 = vld [vmem:[%s2849_s4 + $0x300] sm:$0xff]  ;;  %v803_v39 = vmul.f32 %v2854_v3, %v289_v31  ;;  %v1315_v44 = vadd.f32 %v2865_v13, %v801_v33 }
  0x62   : > { %1804 = vst [vmem:[%s2878_s6 + $0x230] sm:$0xff] %v1292_v37  ;;  %v291_v37 = vld [vmem:[%s2849_s4 + $0x308] sm:$0xff]  ;;  %v804_v42 = vmul.f32 %v2854_v3, %v290_v34  ;;  %v1316_v47 = vadd.f32 %v2865_v13, %v802_v36 }
  0x63   : > { %1805 = vst [vmem:[%s2878_s6 + $0x238] sm:$0xff] %v1293_v40  ;;  %v292_v40 = vld [vmem:[%s2849_s4 + $0x310] sm:$0xff]  ;;  %v805_v45 = vmul.f32 %v2854_v3, %v291_v37  ;;  %v1317_v50 = vadd.f32 %v2865_v13, %v803_v39 }
  0x64   : > { %1806 = vst [vmem:[%s2878_s6 + $0x240] sm:$0xff] %v1294_v43  ;;  %v293_v43 = vld [vmem:[%s2849_s4 + $0x318] sm:$0xff]  ;;  %v806_v48 = vmul.f32 %v2854_v3, %v292_v40  ;;  %v1318_v53 = vadd.f32 %v2865_v13, %v804_v42 }
  0x65   : > { %1807 = vst [vmem:[%s2878_s6 + $0x248] sm:$0xff] %v1295_v46  ;;  %v294_v46 = vld [vmem:[%s2849_s4 + $0x320] sm:$0xff]  ;;  %v807_v51 = vmul.f32 %v2854_v3, %v293_v43  ;;  %v1319_v56 = vadd.f32 %v2865_v13, %v805_v45 }
  0x66   : > { %1808 = vst [vmem:[%s2878_s6 + $0x250] sm:$0xff] %v1296_v49  ;;  %v295_v49 = vld [vmem:[%s2849_s4 + $0x328] sm:$0xff]  ;;  %v808_v54 = vmul.f32 %v2854_v3, %v294_v46  ;;  %v1320_v59 = vadd.f32 %v2865_v13, %v806_v48 }
  0x67   : > { %1809 = vst [vmem:[%s2878_s6 + $0x258] sm:$0xff] %v1297_v52  ;;  %v296_v52 = vld [vmem:[%s2849_s4 + $0x330] sm:$0xff]  ;;  %v809_v57 = vmul.f32 %v2854_v3, %v295_v49  ;;  %v1321_v62 = vadd.f32 %v2865_v13, %v807_v51 }
  0x68   : > { %1810 = vst [vmem:[%s2878_s6 + $0x260] sm:$0xff] %v1298_v55  ;;  %v297_v55 = vld [vmem:[%s2849_s4 + $0x338] sm:$0xff]  ;;  %v810_v60 = vmul.f32 %v2854_v3, %v296_v52  ;;  %v1322_v1 = vadd.f32 %v2865_v13, %v808_v54 }
  0x69   : > { %1811 = vst [vmem:[%s2878_s6 + $0x268] sm:$0xff] %v1299_v58  ;;  %v298_v58 = vld [vmem:[%s2849_s4 + $0x340] sm:$0xff]  ;;  %v811_v63 = vmul.f32 %v2854_v3, %v297_v55  ;;  %v1323_v5 = vadd.f32 %v2865_v13, %v809_v57 }
  0x6a   : > { %1812 = vst [vmem:[%s2878_s6 + $0x270] sm:$0xff] %v1300_v61  ;;  %v299_v61 = vld [vmem:[%s2849_s4 + $0x348] sm:$0xff]  ;;  %v812_v2 = vmul.f32 %v2854_v3, %v298_v58  ;;  %v1324_v8 = vadd.f32 %v2865_v13, %v810_v60 }
  0x6b   : > { %1813 = vst [vmem:[%s2878_s6 + $0x278] sm:$0xff] %v1301_v0  ;;  %v300_v0 = vld [vmem:[%s2849_s4 + $0x350] sm:$0xff]  ;;  %v813_v6 = vmul.f32 %v2854_v3, %v299_v61  ;;  %v1325_v11 = vadd.f32 %v2865_v13, %v811_v63 }
  0x6c   : > { %1814 = vst [vmem:[%s2878_s6 + $0x280] sm:$0xff] %v1302_v4  ;;  %v301_v4 = vld [vmem:[%s2849_s4 + $0x358] sm:$0xff]  ;;  %v814_v9 = vmul.f32 %v2854_v3, %v300_v0  ;;  %v1326_v15 = vadd.f32 %v2865_v13, %v812_v2 }
  0x6d   : > { %1815 = vst [vmem:[%s2878_s6 + $0x288] sm:$0xff] %v1303_v7  ;;  %v302_v7 = vld [vmem:[%s2849_s4 + $0x360] sm:$0xff]  ;;  %v815_v12 = vmul.f32 %v2854_v3, %v301_v4  ;;  %v1327_v18 = vadd.f32 %v2865_v13, %v813_v6 }
  0x6e   : > { %1816 = vst [vmem:[%s2878_s6 + $0x290] sm:$0xff] %v1304_v10  ;;  %v303_v10 = vld [vmem:[%s2849_s4 + $0x368] sm:$0xff]  ;;  %v816_v16 = vmul.f32 %v2854_v3, %v302_v7  ;;  %v1328_v21 = vadd.f32 %v2865_v13, %v814_v9 }
  0x6f   : > { %1817 = vst [vmem:[%s2878_s6 + $0x298] sm:$0xff] %v1305_v14  ;;  %v304_v14 = vld [vmem:[%s2849_s4 + $0x370] sm:$0xff]  ;;  %v817_v19 = vmul.f32 %v2854_v3, %v303_v10  ;;  %v1329_v24 = vadd.f32 %v2865_v13, %v815_v12 }
  0x70   : > { %1818 = vst [vmem:[%s2878_s6 + $0x2a0] sm:$0xff] %v1306_v17  ;;  %v305_v17 = vld [vmem:[%s2849_s4 + $0x378] sm:$0xff]  ;;  %v818_v22 = vmul.f32 %v2854_v3, %v304_v14  ;;  %v1330_v27 = vadd.f32 %v2865_v13, %v816_v16 }
  0x71   : > { %1819 = vst [vmem:[%s2878_s6 + $0x2a8] sm:$0xff] %v1307_v20  ;;  %v306_v20 = vld [vmem:[%s2849_s4 + $0x380] sm:$0xff]  ;;  %v819_v25 = vmul.f32 %v2854_v3, %v305_v17  ;;  %v1331_v30 = vadd.f32 %v2865_v13, %v817_v19 }
  0x72   : > { %1820 = vst [vmem:[%s2878_s6 + $0x2b0] sm:$0xff] %v1308_v23  ;;  %v307_v23 = vld [vmem:[%s2849_s4 + $0x388] sm:$0xff]  ;;  %v820_v28 = vmul.f32 %v2854_v3, %v306_v20  ;;  %v1332_v33 = vadd.f32 %v2865_v13, %v818_v22 }
  0x73   : > { %1821 = vst [vmem:[%s2878_s6 + $0x2b8] sm:$0xff] %v1309_v26  ;;  %v308_v26 = vld [vmem:[%s2849_s4 + $0x390] sm:$0xff]  ;;  %v821_v31 = vmul.f32 %v2854_v3, %v307_v23  ;;  %v1333_v36 = vadd.f32 %v2865_v13, %v819_v25 }
  0x74   : > { %1822 = vst [vmem:[%s2878_s6 + $0x2c0] sm:$0xff] %v1310_v29  ;;  %v309_v29 = vld [vmem:[%s2849_s4 + $0x398] sm:$0xff]  ;;  %v822_v34 = vmul.f32 %v2854_v3, %v308_v26  ;;  %v1334_v39 = vadd.f32 %v2865_v13, %v820_v28 }
  0x75   : > { %1823 = vst [vmem:[%s2878_s6 + $0x2c8] sm:$0xff] %v1311_v32  ;;  %v310_v32 = vld [vmem:[%s2849_s4 + $0x3a0] sm:$0xff]  ;;  %v823_v37 = vmul.f32 %v2854_v3, %v309_v29  ;;  %v1335_v42 = vadd.f32 %v2865_v13, %v821_v31 }
  0x76   : > { %1824 = vst [vmem:[%s2878_s6 + $0x2d0] sm:$0xff] %v1312_v35  ;;  %v311_v35 = vld [vmem:[%s2849_s4 + $0x3a8] sm:$0xff]  ;;  %v824_v40 = vmul.f32 %v2854_v3, %v310_v32  ;;  %v1336_v45 = vadd.f32 %v2865_v13, %v822_v34 }
  0x77   : > { %1825 = vst [vmem:[%s2878_s6 + $0x2d8] sm:$0xff] %v1313_v38  ;;  %v312_v38 = vld [vmem:[%s2849_s4 + $0x3b0] sm:$0xff]  ;;  %v825_v43 = vmul.f32 %v2854_v3, %v311_v35  ;;  %v1337_v48 = vadd.f32 %v2865_v13, %v823_v37 }
  0x78   : > { %1826 = vst [vmem:[%s2878_s6 + $0x2e0] sm:$0xff] %v1314_v41  ;;  %v313_v41 = vld [vmem:[%s2849_s4 + $0x3b8] sm:$0xff]  ;;  %v826_v46 = vmul.f32 %v2854_v3, %v312_v38  ;;  %v1338_v51 = vadd.f32 %v2865_v13, %v824_v40 }
  0x79   : > { %1827 = vst [vmem:[%s2878_s6 + $0x2e8] sm:$0xff] %v1315_v44  ;;  %v314_v44 = vld [vmem:[%s2849_s4 + $0x3c0] sm:$0xff]  ;;  %v827_v49 = vmul.f32 %v2854_v3, %v313_v41  ;;  %v1339_v54 = vadd.f32 %v2865_v13, %v825_v43 }
  0x7a   : > { %1828 = vst [vmem:[%s2878_s6 + $0x2f0] sm:$0xff] %v1316_v47  ;;  %v315_v47 = vld [vmem:[%s2849_s4 + $0x3c8] sm:$0xff]  ;;  %v828_v52 = vmul.f32 %v2854_v3, %v314_v44  ;;  %v1340_v57 = vadd.f32 %v2865_v13, %v826_v46 }
  0x7b   : > { %1829 = vst [vmem:[%s2878_s6 + $0x2f8] sm:$0xff] %v1317_v50  ;;  %v316_v50 = vld [vmem:[%s2849_s4 + $0x3d0] sm:$0xff]  ;;  %v829_v55 = vmul.f32 %v2854_v3, %v315_v47  ;;  %v1341_v60 = vadd.f32 %v2865_v13, %v827_v49 }
  0x7c   : > { %1830 = vst [vmem:[%s2878_s6 + $0x300] sm:$0xff] %v1318_v53  ;;  %v317_v53 = vld [vmem:[%s2849_s4 + $0x3d8] sm:$0xff]  ;;  %v830_v58 = vmul.f32 %v2854_v3, %v316_v50  ;;  %v1342_v63 = vadd.f32 %v2865_v13, %v828_v52 }
  0x7d   : > { %1831 = vst [vmem:[%s2878_s6 + $0x308] sm:$0xff] %v1319_v56  ;;  %v318_v56 = vld [vmem:[%s2849_s4 + $0x3e0] sm:$0xff]  ;;  %v831_v61 = vmul.f32 %v2854_v3, %v317_v53  ;;  %v1343_v2 = vadd.f32 %v2865_v13, %v829_v55 }
  0x7e   : > { %1832 = vst [vmem:[%s2878_s6 + $0x310] sm:$0xff] %v1320_v59  ;;  %v319_v59 = vld [vmem:[%s2849_s4 + $0x3e8] sm:$0xff]  ;;  %v832_v0 = vmul.f32 %v2854_v3, %v318_v56  ;;  %v1344_v6 = vadd.f32 %v2865_v13, %v830_v58 }
  0x7f   : > { %1833 = vst [vmem:[%s2878_s6 + $0x318] sm:$0xff] %v1321_v62  ;;  %v320_v62 = vld [vmem:[%s2849_s4 + $0x3f0] sm:$0xff]  ;;  %v833_v4 = vmul.f32 %v2854_v3, %v319_v59  ;;  %v1345_v9 = vadd.f32 %v2865_v13, %v831_v61 }
  0x80   : > { %1834 = vst [vmem:[%s2878_s6 + $0x320] sm:$0xff] %v1322_v1  ;;  %v321_v1 = vld [vmem:[%s2849_s4 + $0x3f8] sm:$0xff]  ;;  %v834_v7 = vmul.f32 %v2854_v3, %v320_v62  ;;  %v1346_v12 = vadd.f32 %v2865_v13, %v832_v0 }
  0x81   : > { %1835 = vst [vmem:[%s2878_s6 + $0x328] sm:$0xff] %v1323_v5  ;;  %v322_v5 = vld [vmem:[%s2849_s4 + $0x400] sm:$0xff]  ;;  %v835_v10 = vmul.f32 %v2854_v3, %v321_v1  ;;  %v1347_v16 = vadd.f32 %v2865_v13, %v833_v4 }
  0x82   : > { %1836 = vst [vmem:[%s2878_s6 + $0x330] sm:$0xff] %v1324_v8  ;;  %v323_v8 = vld [vmem:[%s2849_s4 + $0x408] sm:$0xff]  ;;  %v836_v14 = vmul.f32 %v2854_v3, %v322_v5  ;;  %v1348_v19 = vadd.f32 %v2865_v13, %v834_v7 }
  0x83   : > { %1837 = vst [vmem:[%s2878_s6 + $0x338] sm:$0xff] %v1325_v11  ;;  %v324_v11 = vld [vmem:[%s2849_s4 + $0x410] sm:$0xff]  ;;  %v837_v17 = vmul.f32 %v2854_v3, %v323_v8  ;;  %v1349_v22 = vadd.f32 %v2865_v13, %v835_v10 }
  0x84   : > { %1838 = vst [vmem:[%s2878_s6 + $0x340] sm:$0xff] %v1326_v15  ;;  %v325_v15 = vld [vmem:[%s2849_s4 + $0x418] sm:$0xff]  ;;  %v838_v20 = vmul.f32 %v2854_v3, %v324_v11  ;;  %v1350_v25 = vadd.f32 %v2865_v13, %v836_v14 }
  0x85   : > { %1839 = vst [vmem:[%s2878_s6 + $0x348] sm:$0xff] %v1327_v18  ;;  %v326_v18 = vld [vmem:[%s2849_s4 + $0x420] sm:$0xff]  ;;  %v839_v23 = vmul.f32 %v2854_v3, %v325_v15  ;;  %v1351_v28 = vadd.f32 %v2865_v13, %v837_v17 }
  0x86   : > { %1840 = vst [vmem:[%s2878_s6 + $0x350] sm:$0xff] %v1328_v21  ;;  %v327_v21 = vld [vmem:[%s2849_s4 + $0x428] sm:$0xff]  ;;  %v840_v26 = vmul.f32 %v2854_v3, %v326_v18  ;;  %v1352_v31 = vadd.f32 %v2865_v13, %v838_v20 }
  0x87   : > { %1841 = vst [vmem:[%s2878_s6 + $0x358] sm:$0xff] %v1329_v24  ;;  %v328_v24 = vld [vmem:[%s2849_s4 + $0x430] sm:$0xff]  ;;  %v841_v29 = vmul.f32 %v2854_v3, %v327_v21  ;;  %v1353_v34 = vadd.f32 %v2865_v13, %v839_v23 }
  0x88   : > { %1842 = vst [vmem:[%s2878_s6 + $0x360] sm:$0xff] %v1330_v27  ;;  %v329_v27 = vld [vmem:[%s2849_s4 + $0x438] sm:$0xff]  ;;  %v842_v32 = vmul.f32 %v2854_v3, %v328_v24  ;;  %v1354_v37 = vadd.f32 %v2865_v13, %v840_v26 }
  0x89   : > { %1843 = vst [vmem:[%s2878_s6 + $0x368] sm:$0xff] %v1331_v30  ;;  %v330_v30 = vld [vmem:[%s2849_s4 + $0x440] sm:$0xff]  ;;  %v843_v35 = vmul.f32 %v2854_v3, %v329_v27  ;;  %v1355_v40 = vadd.f32 %v2865_v13, %v841_v29 }
  0x8a   : > { %1844 = vst [vmem:[%s2878_s6 + $0x370] sm:$0xff] %v1332_v33  ;;  %v331_v33 = vld [vmem:[%s2849_s4 + $0x448] sm:$0xff]  ;;  %v844_v38 = vmul.f32 %v2854_v3, %v330_v30  ;;  %v1356_v43 = vadd.f32 %v2865_v13, %v842_v32 }
  0x8b   : > { %1845 = vst [vmem:[%s2878_s6 + $0x378] sm:$0xff] %v1333_v36  ;;  %v332_v36 = vld [vmem:[%s2849_s4 + $0x450] sm:$0xff]  ;;  %v845_v41 = vmul.f32 %v2854_v3, %v331_v33  ;;  %v1357_v46 = vadd.f32 %v2865_v13, %v843_v35 }
  0x8c   : > { %1846 = vst [vmem:[%s2878_s6 + $0x380] sm:$0xff] %v1334_v39  ;;  %v333_v39 = vld [vmem:[%s2849_s4 + $0x458] sm:$0xff]  ;;  %v846_v44 = vmul.f32 %v2854_v3, %v332_v36  ;;  %v1358_v49 = vadd.f32 %v2865_v13, %v844_v38 }
  0x8d   : > { %1847 = vst [vmem:[%s2878_s6 + $0x388] sm:$0xff] %v1335_v42  ;;  %v334_v42 = vld [vmem:[%s2849_s4 + $0x460] sm:$0xff]  ;;  %v847_v47 = vmul.f32 %v2854_v3, %v333_v39  ;;  %v1359_v52 = vadd.f32 %v2865_v13, %v845_v41 }
  0x8e   : > { %1848 = vst [vmem:[%s2878_s6 + $0x390] sm:$0xff] %v1336_v45  ;;  %v335_v45 = vld [vmem:[%s2849_s4 + $0x468] sm:$0xff]  ;;  %v848_v50 = vmul.f32 %v2854_v3, %v334_v42  ;;  %v1360_v55 = vadd.f32 %v2865_v13, %v846_v44 }
  0x8f   : > { %1849 = vst [vmem:[%s2878_s6 + $0x398] sm:$0xff] %v1337_v48  ;;  %v336_v48 = vld [vmem:[%s2849_s4 + $0x470] sm:$0xff]  ;;  %v849_v53 = vmul.f32 %v2854_v3, %v335_v45  ;;  %v1361_v58 = vadd.f32 %v2865_v13, %v847_v47 }
  0x90   : > { %1850 = vst [vmem:[%s2878_s6 + $0x3a0] sm:$0xff] %v1338_v51  ;;  %v337_v51 = vld [vmem:[%s2849_s4 + $0x478] sm:$0xff]  ;;  %v850_v56 = vmul.f32 %v2854_v3, %v336_v48  ;;  %v1362_v61 = vadd.f32 %v2865_v13, %v848_v50 }
  0x91   : > { %1851 = vst [vmem:[%s2878_s6 + $0x3a8] sm:$0xff] %v1339_v54  ;;  %v338_v54 = vld [vmem:[%s2849_s4 + $0x480] sm:$0xff]  ;;  %v851_v59 = vmul.f32 %v2854_v3, %v337_v51  ;;  %v1363_v0 = vadd.f32 %v2865_v13, %v849_v53 }
  0x92   : > { %1852 = vst [vmem:[%s2878_s6 + $0x3b0] sm:$0xff] %v1340_v57  ;;  %v339_v57 = vld [vmem:[%s2849_s4 + $0x488] sm:$0xff]  ;;  %v852_v62 = vmul.f32 %v2854_v3, %v338_v54  ;;  %v1364_v4 = vadd.f32 %v2865_v13, %v850_v56 }
  0x93   : > { %1853 = vst [vmem:[%s2878_s6 + $0x3b8] sm:$0xff] %v1341_v60  ;;  %v340_v60 = vld [vmem:[%s2849_s4 + $0x490] sm:$0xff]  ;;  %v853_v1 = vmul.f32 %v2854_v3, %v339_v57  ;;  %v1365_v7 = vadd.f32 %v2865_v13, %v851_v59 }
  0x94   : > { %1854 = vst [vmem:[%s2878_s6 + $0x3c0] sm:$0xff] %v1342_v63  ;;  %v341_v63 = vld [vmem:[%s2849_s4 + $0x498] sm:$0xff]  ;;  %v854_v5 = vmul.f32 %v2854_v3, %v340_v60  ;;  %v1366_v10 = vadd.f32 %v2865_v13, %v852_v62 }
  0x95   : > { %1855 = vst [vmem:[%s2878_s6 + $0x3c8] sm:$0xff] %v1343_v2  ;;  %v342_v2 = vld [vmem:[%s2849_s4 + $0x4a0] sm:$0xff]  ;;  %v855_v8 = vmul.f32 %v2854_v3, %v341_v63  ;;  %v1367_v14 = vadd.f32 %v2865_v13, %v853_v1 }
  0x96   : > { %1856 = vst [vmem:[%s2878_s6 + $0x3d0] sm:$0xff] %v1344_v6  ;;  %v343_v6 = vld [vmem:[%s2849_s4 + $0x4a8] sm:$0xff]  ;;  %v856_v11 = vmul.f32 %v2854_v3, %v342_v2  ;;  %v1368_v17 = vadd.f32 %v2865_v13, %v854_v5 }
  0x97   : > { %1857 = vst [vmem:[%s2878_s6 + $0x3d8] sm:$0xff] %v1345_v9  ;;  %v344_v9 = vld [vmem:[%s2849_s4 + $0x4b0] sm:$0xff]  ;;  %v857_v15 = vmul.f32 %v2854_v3, %v343_v6  ;;  %v1369_v20 = vadd.f32 %v2865_v13, %v855_v8 }
  0x98   : > { %1858 = vst [vmem:[%s2878_s6 + $0x3e0] sm:$0xff] %v1346_v12  ;;  %v345_v12 = vld [vmem:[%s2849_s4 + $0x4b8] sm:$0xff]  ;;  %v858_v18 = vmul.f32 %v2854_v3, %v344_v9  ;;  %v1370_v23 = vadd.f32 %v2865_v13, %v856_v11 }
  0x99   : > { %1859 = vst [vmem:[%s2878_s6 + $0x3e8] sm:$0xff] %v1347_v16  ;;  %v346_v16 = vld [vmem:[%s2849_s4 + $0x4c0] sm:$0xff]  ;;  %v859_v21 = vmul.f32 %v2854_v3, %v345_v12  ;;  %v1371_v26 = vadd.f32 %v2865_v13, %v857_v15 }
  0x9a   : > { %1860 = vst [vmem:[%s2878_s6 + $0x3f0] sm:$0xff] %v1348_v19  ;;  %v347_v19 = vld [vmem:[%s2849_s4 + $0x4c8] sm:$0xff]  ;;  %v860_v24 = vmul.f32 %v2854_v3, %v346_v16  ;;  %v1372_v29 = vadd.f32 %v2865_v13, %v858_v18 }
  0x9b   : > { %1861 = vst [vmem:[%s2878_s6 + $0x3f8] sm:$0xff] %v1349_v22  ;;  %v348_v22 = vld [vmem:[%s2849_s4 + $0x4d0] sm:$0xff]  ;;  %v861_v27 = vmul.f32 %v2854_v3, %v347_v19  ;;  %v1373_v32 = vadd.f32 %v2865_v13, %v859_v21 }
  0x9c   : > { %1862 = vst [vmem:[%s2878_s6 + $0x400] sm:$0xff] %v1350_v25  ;;  %v349_v25 = vld [vmem:[%s2849_s4 + $0x4d8] sm:$0xff]  ;;  %v862_v30 = vmul.f32 %v2854_v3, %v348_v22  ;;  %v1374_v35 = vadd.f32 %v2865_v13, %v860_v24 }
  0x9d   : > { %1863 = vst [vmem:[%s2878_s6 + $0x408] sm:$0xff] %v1351_v28  ;;  %v350_v28 = vld [vmem:[%s2849_s4 + $0x4e0] sm:$0xff]  ;;  %v863_v33 = vmul.f32 %v2854_v3, %v349_v25  ;;  %v1375_v38 = vadd.f32 %v2865_v13, %v861_v27 }
  0x9e   : > { %1864 = vst [vmem:[%s2878_s6 + $0x410] sm:$0xff] %v1352_v31  ;;  %v351_v31 = vld [vmem:[%s2849_s4 + $0x4e8] sm:$0xff]  ;;  %v864_v36 = vmul.f32 %v2854_v3, %v350_v28  ;;  %v1376_v41 = vadd.f32 %v2865_v13, %v862_v30 }
  0x9f   : > { %1865 = vst [vmem:[%s2878_s6 + $0x418] sm:$0xff] %v1353_v34  ;;  %v352_v34 = vld [vmem:[%s2849_s4 + $0x4f0] sm:$0xff]  ;;  %v865_v39 = vmul.f32 %v2854_v3, %v351_v31  ;;  %v1377_v44 = vadd.f32 %v2865_v13, %v863_v33 }
  0xa0   : > { %1866 = vst [vmem:[%s2878_s6 + $0x420] sm:$0xff] %v1354_v37  ;;  %v353_v37 = vld [vmem:[%s2849_s4 + $0x4f8] sm:$0xff]  ;;  %v866_v42 = vmul.f32 %v2854_v3, %v352_v34  ;;  %v1378_v47 = vadd.f32 %v2865_v13, %v864_v36 }
  0xa1   : > { %1867 = vst [vmem:[%s2878_s6 + $0x428] sm:$0xff] %v1355_v40  ;;  %v354_v40 = vld [vmem:[%s2849_s4 + $0x500] sm:$0xff]  ;;  %v867_v45 = vmul.f32 %v2854_v3, %v353_v37  ;;  %v1379_v50 = vadd.f32 %v2865_v13, %v865_v39 }
  0xa2   : > { %1868 = vst [vmem:[%s2878_s6 + $0x430] sm:$0xff] %v1356_v43  ;;  %v355_v43 = vld [vmem:[%s2849_s4 + $0x508] sm:$0xff]  ;;  %v868_v48 = vmul.f32 %v2854_v3, %v354_v40  ;;  %v1380_v53 = vadd.f32 %v2865_v13, %v866_v42 }
  0xa3   : > { %1869 = vst [vmem:[%s2878_s6 + $0x438] sm:$0xff] %v1357_v46  ;;  %v356_v46 = vld [vmem:[%s2849_s4 + $0x510] sm:$0xff]  ;;  %v869_v51 = vmul.f32 %v2854_v3, %v355_v43  ;;  %v1381_v56 = vadd.f32 %v2865_v13, %v867_v45 }
  0xa4   : > { %1870 = vst [vmem:[%s2878_s6 + $0x440] sm:$0xff] %v1358_v49  ;;  %v357_v49 = vld [vmem:[%s2849_s4 + $0x518] sm:$0xff]  ;;  %v870_v54 = vmul.f32 %v2854_v3, %v356_v46  ;;  %v1382_v59 = vadd.f32 %v2865_v13, %v868_v48 }
  0xa5   : > { %1871 = vst [vmem:[%s2878_s6 + $0x448] sm:$0xff] %v1359_v52  ;;  %v358_v52 = vld [vmem:[%s2849_s4 + $0x520] sm:$0xff]  ;;  %v871_v57 = vmul.f32 %v2854_v3, %v357_v49  ;;  %v1383_v62 = vadd.f32 %v2865_v13, %v869_v51 }
  0xa6   : > { %1872 = vst [vmem:[%s2878_s6 + $0x450] sm:$0xff] %v1360_v55  ;;  %v359_v55 = vld [vmem:[%s2849_s4 + $0x528] sm:$0xff]  ;;  %v872_v60 = vmul.f32 %v2854_v3, %v358_v52  ;;  %v1384_v1 = vadd.f32 %v2865_v13, %v870_v54 }
  0xa7   : > { %1873 = vst [vmem:[%s2878_s6 + $0x458] sm:$0xff] %v1361_v58  ;;  %v360_v58 = vld [vmem:[%s2849_s4 + $0x530] sm:$0xff]  ;;  %v873_v63 = vmul.f32 %v2854_v3, %v359_v55  ;;  %v1385_v5 = vadd.f32 %v2865_v13, %v871_v57 }
  0xa8   : > { %1874 = vst [vmem:[%s2878_s6 + $0x460] sm:$0xff] %v1362_v61  ;;  %v361_v61 = vld [vmem:[%s2849_s4 + $0x538] sm:$0xff]  ;;  %v874_v2 = vmul.f32 %v2854_v3, %v360_v58  ;;  %v1386_v8 = vadd.f32 %v2865_v13, %v872_v60 }
  0xa9   : > { %1875 = vst [vmem:[%s2878_s6 + $0x468] sm:$0xff] %v1363_v0  ;;  %v362_v0 = vld [vmem:[%s2849_s4 + $0x540] sm:$0xff]  ;;  %v875_v6 = vmul.f32 %v2854_v3, %v361_v61  ;;  %v1387_v11 = vadd.f32 %v2865_v13, %v873_v63 }
  0xaa   : > { %1876 = vst [vmem:[%s2878_s6 + $0x470] sm:$0xff] %v1364_v4  ;;  %v363_v4 = vld [vmem:[%s2849_s4 + $0x548] sm:$0xff]  ;;  %v876_v9 = vmul.f32 %v2854_v3, %v362_v0  ;;  %v1388_v15 = vadd.f32 %v2865_v13, %v874_v2 }
  0xab   : > { %1877 = vst [vmem:[%s2878_s6 + $0x478] sm:$0xff] %v1365_v7  ;;  %v364_v7 = vld [vmem:[%s2849_s4 + $0x550] sm:$0xff]  ;;  %v877_v12 = vmul.f32 %v2854_v3, %v363_v4  ;;  %v1389_v18 = vadd.f32 %v2865_v13, %v875_v6 }
  0xac   : > { %1878 = vst [vmem:[%s2878_s6 + $0x480] sm:$0xff] %v1366_v10  ;;  %v365_v10 = vld [vmem:[%s2849_s4 + $0x558] sm:$0xff]  ;;  %v878_v16 = vmul.f32 %v2854_v3, %v364_v7  ;;  %v1390_v21 = vadd.f32 %v2865_v13, %v876_v9 }
  0xad   : > { %1879 = vst [vmem:[%s2878_s6 + $0x488] sm:$0xff] %v1367_v14  ;;  %v366_v14 = vld [vmem:[%s2849_s4 + $0x560] sm:$0xff]  ;;  %v879_v19 = vmul.f32 %v2854_v3, %v365_v10  ;;  %v1391_v24 = vadd.f32 %v2865_v13, %v877_v12 }
  0xae   : > { %1880 = vst [vmem:[%s2878_s6 + $0x490] sm:$0xff] %v1368_v17  ;;  %v367_v17 = vld [vmem:[%s2849_s4 + $0x568] sm:$0xff]  ;;  %v880_v22 = vmul.f32 %v2854_v3, %v366_v14  ;;  %v1392_v27 = vadd.f32 %v2865_v13, %v878_v16 }
  0xaf   : > { %1881 = vst [vmem:[%s2878_s6 + $0x498] sm:$0xff] %v1369_v20  ;;  %v368_v20 = vld [vmem:[%s2849_s4 + $0x570] sm:$0xff]  ;;  %v881_v25 = vmul.f32 %v2854_v3, %v367_v17  ;;  %v1393_v30 = vadd.f32 %v2865_v13, %v879_v19 }
  0xb0   : > { %1882 = vst [vmem:[%s2878_s6 + $0x4a0] sm:$0xff] %v1370_v23  ;;  %v369_v23 = vld [vmem:[%s2849_s4 + $0x578] sm:$0xff]  ;;  %v882_v28 = vmul.f32 %v2854_v3, %v368_v20  ;;  %v1394_v33 = vadd.f32 %v2865_v13, %v880_v22 }
  0xb1   : > { %1883 = vst [vmem:[%s2878_s6 + $0x4a8] sm:$0xff] %v1371_v26  ;;  %v370_v26 = vld [vmem:[%s2849_s4 + $0x580] sm:$0xff]  ;;  %v883_v31 = vmul.f32 %v2854_v3, %v369_v23  ;;  %v1395_v36 = vadd.f32 %v2865_v13, %v881_v25 }
  0xb2   : > { %1884 = vst [vmem:[%s2878_s6 + $0x4b0] sm:$0xff] %v1372_v29  ;;  %v371_v29 = vld [vmem:[%s2849_s4 + $0x588] sm:$0xff]  ;;  %v884_v34 = vmul.f32 %v2854_v3, %v370_v26  ;;  %v1396_v39 = vadd.f32 %v2865_v13, %v882_v28 }
  0xb3   : > { %1885 = vst [vmem:[%s2878_s6 + $0x4b8] sm:$0xff] %v1373_v32  ;;  %v372_v32 = vld [vmem:[%s2849_s4 + $0x590] sm:$0xff]  ;;  %v885_v37 = vmul.f32 %v2854_v3, %v371_v29  ;;  %v1397_v42 = vadd.f32 %v2865_v13, %v883_v31 }
  0xb4   : > { %1886 = vst [vmem:[%s2878_s6 + $0x4c0] sm:$0xff] %v1374_v35  ;;  %v373_v35 = vld [vmem:[%s2849_s4 + $0x598] sm:$0xff]  ;;  %v886_v40 = vmul.f32 %v2854_v3, %v372_v32  ;;  %v1398_v45 = vadd.f32 %v2865_v13, %v884_v34 }
  0xb5   : > { %1887 = vst [vmem:[%s2878_s6 + $0x4c8] sm:$0xff] %v1375_v38  ;;  %v374_v38 = vld [vmem:[%s2849_s4 + $0x5a0] sm:$0xff]  ;;  %v887_v43 = vmul.f32 %v2854_v3, %v373_v35  ;;  %v1399_v48 = vadd.f32 %v2865_v13, %v885_v37 }
  0xb6   : > { %1888 = vst [vmem:[%s2878_s6 + $0x4d0] sm:$0xff] %v1376_v41  ;;  %v375_v41 = vld [vmem:[%s2849_s4 + $0x5a8] sm:$0xff]  ;;  %v888_v46 = vmul.f32 %v2854_v3, %v374_v38  ;;  %v1400_v51 = vadd.f32 %v2865_v13, %v886_v40 }
  0xb7   : > { %1889 = vst [vmem:[%s2878_s6 + $0x4d8] sm:$0xff] %v1377_v44  ;;  %v376_v44 = vld [vmem:[%s2849_s4 + $0x5b0] sm:$0xff]  ;;  %v889_v49 = vmul.f32 %v2854_v3, %v375_v41  ;;  %v1401_v54 = vadd.f32 %v2865_v13, %v887_v43 }
  0xb8   : > { %1890 = vst [vmem:[%s2878_s6 + $0x4e0] sm:$0xff] %v1378_v47  ;;  %v377_v47 = vld [vmem:[%s2849_s4 + $0x5b8] sm:$0xff]  ;;  %v890_v52 = vmul.f32 %v2854_v3, %v376_v44  ;;  %v1402_v57 = vadd.f32 %v2865_v13, %v888_v46 }
  0xb9   : > { %1891 = vst [vmem:[%s2878_s6 + $0x4e8] sm:$0xff] %v1379_v50  ;;  %v378_v50 = vld [vmem:[%s2849_s4 + $0x5c0] sm:$0xff]  ;;  %v891_v55 = vmul.f32 %v2854_v3, %v377_v47  ;;  %v1403_v60 = vadd.f32 %v2865_v13, %v889_v49 }
  0xba   : > { %1892 = vst [vmem:[%s2878_s6 + $0x4f0] sm:$0xff] %v1380_v53  ;;  %v379_v53 = vld [vmem:[%s2849_s4 + $0x5c8] sm:$0xff]  ;;  %v892_v58 = vmul.f32 %v2854_v3, %v378_v50  ;;  %v1404_v63 = vadd.f32 %v2865_v13, %v890_v52 }
  0xbb   : > { %1893 = vst [vmem:[%s2878_s6 + $0x4f8] sm:$0xff] %v1381_v56  ;;  %v380_v56 = vld [vmem:[%s2849_s4 + $0x5d0] sm:$0xff]  ;;  %v893_v61 = vmul.f32 %v2854_v3, %v379_v53  ;;  %v1405_v2 = vadd.f32 %v2865_v13, %v891_v55 }
  0xbc   : > { %1894 = vst [vmem:[%s2878_s6 + $0x500] sm:$0xff] %v1382_v59  ;;  %v381_v59 = vld [vmem:[%s2849_s4 + $0x5d8] sm:$0xff]  ;;  %v894_v0 = vmul.f32 %v2854_v3, %v380_v56  ;;  %v1406_v6 = vadd.f32 %v2865_v13, %v892_v58 }
  0xbd   : > { %1895 = vst [vmem:[%s2878_s6 + $0x508] sm:$0xff] %v1383_v62  ;;  %v382_v62 = vld [vmem:[%s2849_s4 + $0x5e0] sm:$0xff]  ;;  %v895_v4 = vmul.f32 %v2854_v3, %v381_v59  ;;  %v1407_v9 = vadd.f32 %v2865_v13, %v893_v61 }
  0xbe   : > { %1896 = vst [vmem:[%s2878_s6 + $0x510] sm:$0xff] %v1384_v1  ;;  %v383_v1 = vld [vmem:[%s2849_s4 + $0x5e8] sm:$0xff]  ;;  %v896_v7 = vmul.f32 %v2854_v3, %v382_v62  ;;  %v1408_v12 = vadd.f32 %v2865_v13, %v894_v0 }
  0xbf   : > { %1897 = vst [vmem:[%s2878_s6 + $0x518] sm:$0xff] %v1385_v5  ;;  %v384_v5 = vld [vmem:[%s2849_s4 + $0x5f0] sm:$0xff]  ;;  %v897_v10 = vmul.f32 %v2854_v3, %v383_v1  ;;  %v1409_v16 = vadd.f32 %v2865_v13, %v895_v4 }
  0xc0   : > { %1898 = vst [vmem:[%s2878_s6 + $0x520] sm:$0xff] %v1386_v8  ;;  %v385_v8 = vld [vmem:[%s2849_s4 + $0x5f8] sm:$0xff]  ;;  %v898_v14 = vmul.f32 %v2854_v3, %v384_v5  ;;  %v1410_v19 = vadd.f32 %v2865_v13, %v896_v7 }
  0xc1   : > { %1899 = vst [vmem:[%s2878_s6 + $0x528] sm:$0xff] %v1387_v11  ;;  %v386_v11 = vld [vmem:[%s2849_s4 + $0x600] sm:$0xff]  ;;  %v899_v17 = vmul.f32 %v2854_v3, %v385_v8  ;;  %v1411_v22 = vadd.f32 %v2865_v13, %v897_v10 }
  0xc2   : > { %1900 = vst [vmem:[%s2878_s6 + $0x530] sm:$0xff] %v1388_v15  ;;  %v387_v15 = vld [vmem:[%s2849_s4 + $0x608] sm:$0xff]  ;;  %v900_v20 = vmul.f32 %v2854_v3, %v386_v11  ;;  %v1412_v25 = vadd.f32 %v2865_v13, %v898_v14 }
  0xc3   : > { %1901 = vst [vmem:[%s2878_s6 + $0x538] sm:$0xff] %v1389_v18  ;;  %v388_v18 = vld [vmem:[%s2849_s4 + $0x610] sm:$0xff]  ;;  %v901_v23 = vmul.f32 %v2854_v3, %v387_v15  ;;  %v1413_v28 = vadd.f32 %v2865_v13, %v899_v17 }
  0xc4   : > { %1902 = vst [vmem:[%s2878_s6 + $0x540] sm:$0xff] %v1390_v21  ;;  %v389_v21 = vld [vmem:[%s2849_s4 + $0x618] sm:$0xff]  ;;  %v902_v26 = vmul.f32 %v2854_v3, %v388_v18  ;;  %v1414_v31 = vadd.f32 %v2865_v13, %v900_v20 }
  0xc5   : > { %1903 = vst [vmem:[%s2878_s6 + $0x548] sm:$0xff] %v1391_v24  ;;  %v390_v24 = vld [vmem:[%s2849_s4 + $0x620] sm:$0xff]  ;;  %v903_v29 = vmul.f32 %v2854_v3, %v389_v21  ;;  %v1415_v34 = vadd.f32 %v2865_v13, %v901_v23 }
  0xc6   : > { %1904 = vst [vmem:[%s2878_s6 + $0x550] sm:$0xff] %v1392_v27  ;;  %v391_v27 = vld [vmem:[%s2849_s4 + $0x628] sm:$0xff]  ;;  %v904_v32 = vmul.f32 %v2854_v3, %v390_v24  ;;  %v1416_v37 = vadd.f32 %v2865_v13, %v902_v26 }
  0xc7   : > { %1905 = vst [vmem:[%s2878_s6 + $0x558] sm:$0xff] %v1393_v30  ;;  %v392_v30 = vld [vmem:[%s2849_s4 + $0x630] sm:$0xff]  ;;  %v905_v35 = vmul.f32 %v2854_v3, %v391_v27  ;;  %v1417_v40 = vadd.f32 %v2865_v13, %v903_v29 }
  0xc8   : > { %1906 = vst [vmem:[%s2878_s6 + $0x560] sm:$0xff] %v1394_v33  ;;  %v393_v33 = vld [vmem:[%s2849_s4 + $0x638] sm:$0xff]  ;;  %v906_v38 = vmul.f32 %v2854_v3, %v392_v30  ;;  %v1418_v43 = vadd.f32 %v2865_v13, %v904_v32 }
  0xc9   : > { %1907 = vst [vmem:[%s2878_s6 + $0x568] sm:$0xff] %v1395_v36  ;;  %v394_v36 = vld [vmem:[%s2849_s4 + $0x640] sm:$0xff]  ;;  %v907_v41 = vmul.f32 %v2854_v3, %v393_v33  ;;  %v1419_v46 = vadd.f32 %v2865_v13, %v905_v35 }
  0xca   : > { %1908 = vst [vmem:[%s2878_s6 + $0x570] sm:$0xff] %v1396_v39  ;;  %v395_v39 = vld [vmem:[%s2849_s4 + $0x648] sm:$0xff]  ;;  %v908_v44 = vmul.f32 %v2854_v3, %v394_v36  ;;  %v1420_v49 = vadd.f32 %v2865_v13, %v906_v38 }
  0xcb   : > { %1909 = vst [vmem:[%s2878_s6 + $0x578] sm:$0xff] %v1397_v42  ;;  %v396_v42 = vld [vmem:[%s2849_s4 + $0x650] sm:$0xff]  ;;  %v909_v47 = vmul.f32 %v2854_v3, %v395_v39  ;;  %v1421_v52 = vadd.f32 %v2865_v13, %v907_v41 }
  0xcc   : > { %1910 = vst [vmem:[%s2878_s6 + $0x580] sm:$0xff] %v1398_v45  ;;  %v397_v45 = vld [vmem:[%s2849_s4 + $0x658] sm:$0xff]  ;;  %v910_v50 = vmul.f32 %v2854_v3, %v396_v42  ;;  %v1422_v55 = vadd.f32 %v2865_v13, %v908_v44 }
  0xcd   : > { %1911 = vst [vmem:[%s2878_s6 + $0x588] sm:$0xff] %v1399_v48  ;;  %v398_v48 = vld [vmem:[%s2849_s4 + $0x660] sm:$0xff]  ;;  %v911_v53 = vmul.f32 %v2854_v3, %v397_v45  ;;  %v1423_v58 = vadd.f32 %v2865_v13, %v909_v47 }
  0xce   : > { %1912 = vst [vmem:[%s2878_s6 + $0x590] sm:$0xff] %v1400_v51  ;;  %v399_v51 = vld [vmem:[%s2849_s4 + $0x668] sm:$0xff]  ;;  %v912_v56 = vmul.f32 %v2854_v3, %v398_v48  ;;  %v1424_v61 = vadd.f32 %v2865_v13, %v910_v50 }
  0xcf   : > { %1913 = vst [vmem:[%s2878_s6 + $0x598] sm:$0xff] %v1401_v54  ;;  %v400_v54 = vld [vmem:[%s2849_s4 + $0x670] sm:$0xff]  ;;  %v913_v59 = vmul.f32 %v2854_v3, %v399_v51  ;;  %v1425_v0 = vadd.f32 %v2865_v13, %v911_v53 }
  0xd0   : > { %1914 = vst [vmem:[%s2878_s6 + $0x5a0] sm:$0xff] %v1402_v57  ;;  %v401_v57 = vld [vmem:[%s2849_s4 + $0x678] sm:$0xff]  ;;  %v914_v62 = vmul.f32 %v2854_v3, %v400_v54  ;;  %v1426_v4 = vadd.f32 %v2865_v13, %v912_v56 }
  0xd1   : > { %1915 = vst [vmem:[%s2878_s6 + $0x5a8] sm:$0xff] %v1403_v60  ;;  %v402_v60 = vld [vmem:[%s2849_s4 + $0x680] sm:$0xff]  ;;  %v915_v1 = vmul.f32 %v2854_v3, %v401_v57  ;;  %v1427_v7 = vadd.f32 %v2865_v13, %v913_v59 }
  0xd2   : > { %1916 = vst [vmem:[%s2878_s6 + $0x5b0] sm:$0xff] %v1404_v63  ;;  %v403_v63 = vld [vmem:[%s2849_s4 + $0x688] sm:$0xff]  ;;  %v916_v5 = vmul.f32 %v2854_v3, %v402_v60  ;;  %v1428_v10 = vadd.f32 %v2865_v13, %v914_v62 }
  0xd3   : > { %1917 = vst [vmem:[%s2878_s6 + $0x5b8] sm:$0xff] %v1405_v2  ;;  %v404_v2 = vld [vmem:[%s2849_s4 + $0x690] sm:$0xff]  ;;  %v917_v8 = vmul.f32 %v2854_v3, %v403_v63  ;;  %v1429_v14 = vadd.f32 %v2865_v13, %v915_v1 }
  0xd4   : > { %1918 = vst [vmem:[%s2878_s6 + $0x5c0] sm:$0xff] %v1406_v6  ;;  %v405_v6 = vld [vmem:[%s2849_s4 + $0x698] sm:$0xff]  ;;  %v918_v11 = vmul.f32 %v2854_v3, %v404_v2  ;;  %v1430_v17 = vadd.f32 %v2865_v13, %v916_v5 }
  0xd5   : > { %1919 = vst [vmem:[%s2878_s6 + $0x5c8] sm:$0xff] %v1407_v9  ;;  %v406_v9 = vld [vmem:[%s2849_s4 + $0x6a0] sm:$0xff]  ;;  %v919_v15 = vmul.f32 %v2854_v3, %v405_v6  ;;  %v1431_v20 = vadd.f32 %v2865_v13, %v917_v8 }
  0xd6   : > { %1920 = vst [vmem:[%s2878_s6 + $0x5d0] sm:$0xff] %v1408_v12  ;;  %v407_v12 = vld [vmem:[%s2849_s4 + $0x6a8] sm:$0xff]  ;;  %v920_v18 = vmul.f32 %v2854_v3, %v406_v9  ;;  %v1432_v23 = vadd.f32 %v2865_v13, %v918_v11 }
  0xd7   : > { %1921 = vst [vmem:[%s2878_s6 + $0x5d8] sm:$0xff] %v1409_v16  ;;  %v408_v16 = vld [vmem:[%s2849_s4 + $0x6b0] sm:$0xff]  ;;  %v921_v21 = vmul.f32 %v2854_v3, %v407_v12  ;;  %v1433_v26 = vadd.f32 %v2865_v13, %v919_v15 }
  0xd8   : > { %1922 = vst [vmem:[%s2878_s6 + $0x5e0] sm:$0xff] %v1410_v19  ;;  %v409_v19 = vld [vmem:[%s2849_s4 + $0x6b8] sm:$0xff]  ;;  %v922_v24 = vmul.f32 %v2854_v3, %v408_v16  ;;  %v1434_v29 = vadd.f32 %v2865_v13, %v920_v18 }
  0xd9   : > { %1923 = vst [vmem:[%s2878_s6 + $0x5e8] sm:$0xff] %v1411_v22  ;;  %v410_v22 = vld [vmem:[%s2849_s4 + $0x6c0] sm:$0xff]  ;;  %v923_v27 = vmul.f32 %v2854_v3, %v409_v19  ;;  %v1435_v32 = vadd.f32 %v2865_v13, %v921_v21 }
  0xda   : > { %1924 = vst [vmem:[%s2878_s6 + $0x5f0] sm:$0xff] %v1412_v25  ;;  %v411_v25 = vld [vmem:[%s2849_s4 + $0x6c8] sm:$0xff]  ;;  %v924_v30 = vmul.f32 %v2854_v3, %v410_v22  ;;  %v1436_v35 = vadd.f32 %v2865_v13, %v922_v24 }
  0xdb   : > { %1925 = vst [vmem:[%s2878_s6 + $0x5f8] sm:$0xff] %v1413_v28  ;;  %v412_v28 = vld [vmem:[%s2849_s4 + $0x6d0] sm:$0xff]  ;;  %v925_v33 = vmul.f32 %v2854_v3, %v411_v25  ;;  %v1437_v38 = vadd.f32 %v2865_v13, %v923_v27 }
  0xdc   : > { %1926 = vst [vmem:[%s2878_s6 + $0x600] sm:$0xff] %v1414_v31  ;;  %v413_v31 = vld [vmem:[%s2849_s4 + $0x6d8] sm:$0xff]  ;;  %v926_v36 = vmul.f32 %v2854_v3, %v412_v28  ;;  %v1438_v41 = vadd.f32 %v2865_v13, %v924_v30 }
  0xdd   : > { %1927 = vst [vmem:[%s2878_s6 + $0x608] sm:$0xff] %v1415_v34  ;;  %v414_v34 = vld [vmem:[%s2849_s4 + $0x6e0] sm:$0xff]  ;;  %v927_v39 = vmul.f32 %v2854_v3, %v413_v31  ;;  %v1439_v44 = vadd.f32 %v2865_v13, %v925_v33 }
  0xde   : > { %1928 = vst [vmem:[%s2878_s6 + $0x610] sm:$0xff] %v1416_v37  ;;  %v415_v37 = vld [vmem:[%s2849_s4 + $0x6e8] sm:$0xff]  ;;  %v928_v42 = vmul.f32 %v2854_v3, %v414_v34  ;;  %v1440_v47 = vadd.f32 %v2865_v13, %v926_v36 }
  0xdf   : > { %1929 = vst [vmem:[%s2878_s6 + $0x618] sm:$0xff] %v1417_v40  ;;  %v416_v40 = vld [vmem:[%s2849_s4 + $0x6f0] sm:$0xff]  ;;  %v929_v45 = vmul.f32 %v2854_v3, %v415_v37  ;;  %v1441_v50 = vadd.f32 %v2865_v13, %v927_v39 }
  0xe0   : > { %1930 = vst [vmem:[%s2878_s6 + $0x620] sm:$0xff] %v1418_v43  ;;  %v417_v43 = vld [vmem:[%s2849_s4 + $0x6f8] sm:$0xff]  ;;  %v930_v48 = vmul.f32 %v2854_v3, %v416_v40  ;;  %v1442_v53 = vadd.f32 %v2865_v13, %v928_v42 }
  0xe1   : > { %1931 = vst [vmem:[%s2878_s6 + $0x628] sm:$0xff] %v1419_v46  ;;  %v418_v46 = vld [vmem:[%s2849_s4 + $0x700] sm:$0xff]  ;;  %v931_v51 = vmul.f32 %v2854_v3, %v417_v43  ;;  %v1443_v56 = vadd.f32 %v2865_v13, %v929_v45 }
  0xe2   : > { %1932 = vst [vmem:[%s2878_s6 + $0x630] sm:$0xff] %v1420_v49  ;;  %v419_v49 = vld [vmem:[%s2849_s4 + $0x708] sm:$0xff]  ;;  %v932_v54 = vmul.f32 %v2854_v3, %v418_v46  ;;  %v1444_v59 = vadd.f32 %v2865_v13, %v930_v48 }
  0xe3   : > { %1933 = vst [vmem:[%s2878_s6 + $0x638] sm:$0xff] %v1421_v52  ;;  %v420_v52 = vld [vmem:[%s2849_s4 + $0x710] sm:$0xff]  ;;  %v933_v57 = vmul.f32 %v2854_v3, %v419_v49  ;;  %v1445_v62 = vadd.f32 %v2865_v13, %v931_v51 }
  0xe4   : > { %1934 = vst [vmem:[%s2878_s6 + $0x640] sm:$0xff] %v1422_v55  ;;  %v421_v55 = vld [vmem:[%s2849_s4 + $0x718] sm:$0xff]  ;;  %v934_v60 = vmul.f32 %v2854_v3, %v420_v52  ;;  %v1446_v1 = vadd.f32 %v2865_v13, %v932_v54 }
  0xe5   : > { %1935 = vst [vmem:[%s2878_s6 + $0x648] sm:$0xff] %v1423_v58  ;;  %v422_v58 = vld [vmem:[%s2849_s4 + $0x720] sm:$0xff]  ;;  %v935_v63 = vmul.f32 %v2854_v3, %v421_v55  ;;  %v1447_v5 = vadd.f32 %v2865_v13, %v933_v57 }
  0xe6   : > { %1936 = vst [vmem:[%s2878_s6 + $0x650] sm:$0xff] %v1424_v61  ;;  %v423_v61 = vld [vmem:[%s2849_s4 + $0x728] sm:$0xff]  ;;  %v936_v2 = vmul.f32 %v2854_v3, %v422_v58  ;;  %v1448_v8 = vadd.f32 %v2865_v13, %v934_v60 }
  0xe7   : > { %1937 = vst [vmem:[%s2878_s6 + $0x658] sm:$0xff] %v1425_v0  ;;  %v424_v0 = vld [vmem:[%s2849_s4 + $0x730] sm:$0xff]  ;;  %v937_v6 = vmul.f32 %v2854_v3, %v423_v61  ;;  %v1449_v11 = vadd.f32 %v2865_v13, %v935_v63 }
  0xe8   : > { %1938 = vst [vmem:[%s2878_s6 + $0x660] sm:$0xff] %v1426_v4  ;;  %v425_v4 = vld [vmem:[%s2849_s4 + $0x738] sm:$0xff]  ;;  %v938_v9 = vmul.f32 %v2854_v3, %v424_v0  ;;  %v1450_v15 = vadd.f32 %v2865_v13, %v936_v2 }
  0xe9   : > { %1939 = vst [vmem:[%s2878_s6 + $0x668] sm:$0xff] %v1427_v7  ;;  %v426_v7 = vld [vmem:[%s2849_s4 + $0x740] sm:$0xff]  ;;  %v939_v12 = vmul.f32 %v2854_v3, %v425_v4  ;;  %v1451_v18 = vadd.f32 %v2865_v13, %v937_v6 }
  0xea   : > { %1940 = vst [vmem:[%s2878_s6 + $0x670] sm:$0xff] %v1428_v10  ;;  %v427_v10 = vld [vmem:[%s2849_s4 + $0x748] sm:$0xff]  ;;  %v940_v16 = vmul.f32 %v2854_v3, %v426_v7  ;;  %v1452_v21 = vadd.f32 %v2865_v13, %v938_v9 }
  0xeb   : > { %1941 = vst [vmem:[%s2878_s6 + $0x678] sm:$0xff] %v1429_v14  ;;  %v428_v14 = vld [vmem:[%s2849_s4 + $0x750] sm:$0xff]  ;;  %v941_v19 = vmul.f32 %v2854_v3, %v427_v10  ;;  %v1453_v24 = vadd.f32 %v2865_v13, %v939_v12 }
  0xec   : > { %1942 = vst [vmem:[%s2878_s6 + $0x680] sm:$0xff] %v1430_v17  ;;  %v429_v17 = vld [vmem:[%s2849_s4 + $0x758] sm:$0xff]  ;;  %v942_v22 = vmul.f32 %v2854_v3, %v428_v14  ;;  %v1454_v27 = vadd.f32 %v2865_v13, %v940_v16 }
  0xed   : > { %1943 = vst [vmem:[%s2878_s6 + $0x688] sm:$0xff] %v1431_v20  ;;  %v430_v20 = vld [vmem:[%s2849_s4 + $0x760] sm:$0xff]  ;;  %v943_v25 = vmul.f32 %v2854_v3, %v429_v17  ;;  %v1455_v30 = vadd.f32 %v2865_v13, %v941_v19 }
  0xee   : > { %1944 = vst [vmem:[%s2878_s6 + $0x690] sm:$0xff] %v1432_v23  ;;  %v431_v23 = vld [vmem:[%s2849_s4 + $0x768] sm:$0xff]  ;;  %v944_v28 = vmul.f32 %v2854_v3, %v430_v20  ;;  %v1456_v33 = vadd.f32 %v2865_v13, %v942_v22 }
  0xef   : > { %1945 = vst [vmem:[%s2878_s6 + $0x698] sm:$0xff] %v1433_v26  ;;  %v432_v26 = vld [vmem:[%s2849_s4 + $0x770] sm:$0xff]  ;;  %v945_v31 = vmul.f32 %v2854_v3, %v431_v23  ;;  %v1457_v36 = vadd.f32 %v2865_v13, %v943_v25 }
  0xf0   : > { %1946 = vst [vmem:[%s2878_s6 + $0x6a0] sm:$0xff] %v1434_v29  ;;  %v433_v29 = vld [vmem:[%s2849_s4 + $0x778] sm:$0xff]  ;;  %v946_v34 = vmul.f32 %v2854_v3, %v432_v26  ;;  %v1458_v39 = vadd.f32 %v2865_v13, %v944_v28 }
  0xf1   : > { %1947 = vst [vmem:[%s2878_s6 + $0x6a8] sm:$0xff] %v1435_v32  ;;  %v434_v32 = vld [vmem:[%s2849_s4 + $0x780] sm:$0xff]  ;;  %v947_v37 = vmul.f32 %v2854_v3, %v433_v29  ;;  %v1459_v42 = vadd.f32 %v2865_v13, %v945_v31 }
  0xf2   : > { %1948 = vst [vmem:[%s2878_s6 + $0x6b0] sm:$0xff] %v1436_v35  ;;  %v435_v35 = vld [vmem:[%s2849_s4 + $0x788] sm:$0xff]  ;;  %v948_v40 = vmul.f32 %v2854_v3, %v434_v32  ;;  %v1460_v45 = vadd.f32 %v2865_v13, %v946_v34 }
  0xf3   : > { %1949 = vst [vmem:[%s2878_s6 + $0x6b8] sm:$0xff] %v1437_v38  ;;  %v436_v38 = vld [vmem:[%s2849_s4 + $0x790] sm:$0xff]  ;;  %v949_v43 = vmul.f32 %v2854_v3, %v435_v35  ;;  %v1461_v48 = vadd.f32 %v2865_v13, %v947_v37 }
  0xf4   : > { %1950 = vst [vmem:[%s2878_s6 + $0x6c0] sm:$0xff] %v1438_v41  ;;  %v437_v41 = vld [vmem:[%s2849_s4 + $0x798] sm:$0xff]  ;;  %v950_v46 = vmul.f32 %v2854_v3, %v436_v38  ;;  %v1462_v51 = vadd.f32 %v2865_v13, %v948_v40 }
  0xf5   : > { %1951 = vst [vmem:[%s2878_s6 + $0x6c8] sm:$0xff] %v1439_v44  ;;  %v438_v44 = vld [vmem:[%s2849_s4 + $0x7a0] sm:$0xff]  ;;  %v951_v49 = vmul.f32 %v2854_v3, %v437_v41  ;;  %v1463_v54 = vadd.f32 %v2865_v13, %v949_v43 }
  0xf6   : > { %1952 = vst [vmem:[%s2878_s6 + $0x6d0] sm:$0xff] %v1440_v47  ;;  %v439_v47 = vld [vmem:[%s2849_s4 + $0x7a8] sm:$0xff]  ;;  %v952_v52 = vmul.f32 %v2854_v3, %v438_v44  ;;  %v1464_v57 = vadd.f32 %v2865_v13, %v950_v46 }
  0xf7   : > { %1953 = vst [vmem:[%s2878_s6 + $0x6d8] sm:$0xff] %v1441_v50  ;;  %v440_v50 = vld [vmem:[%s2849_s4 + $0x7b0] sm:$0xff]  ;;  %v953_v55 = vmul.f32 %v2854_v3, %v439_v47  ;;  %v1465_v60 = vadd.f32 %v2865_v13, %v951_v49 }
  0xf8   : > { %1954 = vst [vmem:[%s2878_s6 + $0x6e0] sm:$0xff] %v1442_v53  ;;  %v441_v53 = vld [vmem:[%s2849_s4 + $0x7b8] sm:$0xff]  ;;  %v954_v58 = vmul.f32 %v2854_v3, %v440_v50  ;;  %v1466_v63 = vadd.f32 %v2865_v13, %v952_v52 }
  0xf9   : > { %1955 = vst [vmem:[%s2878_s6 + $0x6e8] sm:$0xff] %v1443_v56  ;;  %v442_v56 = vld [vmem:[%s2849_s4 + $0x7c0] sm:$0xff]  ;;  %v955_v61 = vmul.f32 %v2854_v3, %v441_v53  ;;  %v1467_v2 = vadd.f32 %v2865_v13, %v953_v55 }
  0xfa   : > { %1956 = vst [vmem:[%s2878_s6 + $0x6f0] sm:$0xff] %v1444_v59  ;;  %v443_v59 = vld [vmem:[%s2849_s4 + $0x7c8] sm:$0xff]  ;;  %v956_v0 = vmul.f32 %v2854_v3, %v442_v56  ;;  %v1468_v6 = vadd.f32 %v2865_v13, %v954_v58 }
  0xfb   : > { %1957 = vst [vmem:[%s2878_s6 + $0x6f8] sm:$0xff] %v1445_v62  ;;  %v444_v62 = vld [vmem:[%s2849_s4 + $0x7d0] sm:$0xff]  ;;  %v957_v4 = vmul.f32 %v2854_v3, %v443_v59  ;;  %v1469_v9 = vadd.f32 %v2865_v13, %v955_v61 }
  0xfc   : > { %1958 = vst [vmem:[%s2878_s6 + $0x700] sm:$0xff] %v1446_v1  ;;  %v445_v1 = vld [vmem:[%s2849_s4 + $0x7d8] sm:$0xff]  ;;  %v958_v7 = vmul.f32 %v2854_v3, %v444_v62  ;;  %v1470_v12 = vadd.f32 %v2865_v13, %v956_v0 }
  0xfd   : > { %1959 = vst [vmem:[%s2878_s6 + $0x708] sm:$0xff] %v1447_v5  ;;  %v446_v5 = vld [vmem:[%s2849_s4 + $0x7e0] sm:$0xff]  ;;  %v959_v10 = vmul.f32 %v2854_v3, %v445_v1  ;;  %v1471_v16 = vadd.f32 %v2865_v13, %v957_v4 }
  0xfe   : > { %1960 = vst [vmem:[%s2878_s6 + $0x710] sm:$0xff] %v1448_v8  ;;  %v447_v8 = vld [vmem:[%s2849_s4 + $0x7e8] sm:$0xff]  ;;  %v960_v14 = vmul.f32 %v2854_v3, %v446_v5  ;;  %v1472_v19 = vadd.f32 %v2865_v13, %v958_v7 }
  0xff   : > { %1961 = vst [vmem:[%s2878_s6 + $0x718] sm:$0xff] %v1449_v11  ;;  %v448_v11 = vld [vmem:[%s2849_s4 + $0x7f0] sm:$0xff]  ;;  %v961_v17 = vmul.f32 %v2854_v3, %v447_v8  ;;  %v1473_v22 = vadd.f32 %v2865_v13, %v959_v10 }
 0x100   : > { %1962 = vst [vmem:[%s2878_s6 + $0x720] sm:$0xff] %v1450_v15  ;;  %v449_v15 = vld [vmem:[%s2849_s4 + $0x7f8] sm:$0xff]  ;;  %v962_v20 = vmul.f32 %v2854_v3, %v448_v11  ;;  %v1474_v25 = vadd.f32 %v2865_v13, %v960_v14 }
 0x101   : > { %1963 = vst [vmem:[%s2878_s6 + $0x728] sm:$0xff] %v1451_v18  ;;  %v450_v18 = vld [vmem:[%s2849_s4 + $0x800] sm:$0xff]  ;;  %v963_v23 = vmul.f32 %v2854_v3, %v449_v15  ;;  %v1475_v28 = vadd.f32 %v2865_v13, %v961_v17 }
 0x102   : > { %1964 = vst [vmem:[%s2878_s6 + $0x730] sm:$0xff] %v1452_v21  ;;  %v451_v21 = vld [vmem:[%s2849_s4 + $0x808] sm:$0xff]  ;;  %v964_v26 = vmul.f32 %v2854_v3, %v450_v18  ;;  %v1476_v31 = vadd.f32 %v2865_v13, %v962_v20 }
 0x103   : > { %1965 = vst [vmem:[%s2878_s6 + $0x738] sm:$0xff] %v1453_v24  ;;  %v452_v24 = vld [vmem:[%s2849_s4 + $0x810] sm:$0xff]  ;;  %v965_v29 = vmul.f32 %v2854_v3, %v451_v21  ;;  %v1477_v34 = vadd.f32 %v2865_v13, %v963_v23 }
 0x104   : > { %1966 = vst [vmem:[%s2878_s6 + $0x740] sm:$0xff] %v1454_v27  ;;  %v453_v27 = vld [vmem:[%s2849_s4 + $0x818] sm:$0xff]  ;;  %v966_v32 = vmul.f32 %v2854_v3, %v452_v24  ;;  %v1478_v37 = vadd.f32 %v2865_v13, %v964_v26 }
 0x105   : > { %1967 = vst [vmem:[%s2878_s6 + $0x748] sm:$0xff] %v1455_v30  ;;  %v454_v30 = vld [vmem:[%s2849_s4 + $0x820] sm:$0xff]  ;;  %v967_v35 = vmul.f32 %v2854_v3, %v453_v27  ;;  %v1479_v40 = vadd.f32 %v2865_v13, %v965_v29 }
 0x106   : > { %1968 = vst [vmem:[%s2878_s6 + $0x750] sm:$0xff] %v1456_v33  ;;  %v455_v33 = vld [vmem:[%s2849_s4 + $0x828] sm:$0xff]  ;;  %v968_v38 = vmul.f32 %v2854_v3, %v454_v30  ;;  %v1480_v43 = vadd.f32 %v2865_v13, %v966_v32 }
 0x107   : > { %1969 = vst [vmem:[%s2878_s6 + $0x758] sm:$0xff] %v1457_v36  ;;  %v456_v36 = vld [vmem:[%s2849_s4 + $0x830] sm:$0xff]  ;;  %v969_v41 = vmul.f32 %v2854_v3, %v455_v33  ;;  %v1481_v46 = vadd.f32 %v2865_v13, %v967_v35 }
 0x108   : > { %1970 = vst [vmem:[%s2878_s6 + $0x760] sm:$0xff] %v1458_v39  ;;  %v457_v39 = vld [vmem:[%s2849_s4 + $0x838] sm:$0xff]  ;;  %v970_v44 = vmul.f32 %v2854_v3, %v456_v36  ;;  %v1482_v49 = vadd.f32 %v2865_v13, %v968_v38 }
 0x109   : > { %1971 = vst [vmem:[%s2878_s6 + $0x768] sm:$0xff] %v1459_v42  ;;  %v458_v42 = vld [vmem:[%s2849_s4 + $0x840] sm:$0xff]  ;;  %v971_v47 = vmul.f32 %v2854_v3, %v457_v39  ;;  %v1483_v52 = vadd.f32 %v2865_v13, %v969_v41 }
 0x10a   : > { %1972 = vst [vmem:[%s2878_s6 + $0x770] sm:$0xff] %v1460_v45  ;;  %v459_v45 = vld [vmem:[%s2849_s4 + $0x848] sm:$0xff]  ;;  %v972_v50 = vmul.f32 %v2854_v3, %v458_v42  ;;  %v1484_v55 = vadd.f32 %v2865_v13, %v970_v44 }
 0x10b   : > { %1973 = vst [vmem:[%s2878_s6 + $0x778] sm:$0xff] %v1461_v48  ;;  %v460_v48 = vld [vmem:[%s2849_s4 + $0x850] sm:$0xff]  ;;  %v973_v53 = vmul.f32 %v2854_v3, %v459_v45  ;;  %v1485_v58 = vadd.f32 %v2865_v13, %v971_v47 }
 0x10c   : > { %1974 = vst [vmem:[%s2878_s6 + $0x780] sm:$0xff] %v1462_v51  ;;  %v461_v51 = vld [vmem:[%s2849_s4 + $0x858] sm:$0xff]  ;;  %v974_v56 = vmul.f32 %v2854_v3, %v460_v48  ;;  %v1486_v61 = vadd.f32 %v2865_v13, %v972_v50 }
 0x10d   : > { %1975 = vst [vmem:[%s2878_s6 + $0x788] sm:$0xff] %v1463_v54  ;;  %v462_v54 = vld [vmem:[%s2849_s4 + $0x860] sm:$0xff]  ;;  %v975_v59 = vmul.f32 %v2854_v3, %v461_v51  ;;  %v1487_v0 = vadd.f32 %v2865_v13, %v973_v53 }
 0x10e   : > { %1976 = vst [vmem:[%s2878_s6 + $0x790] sm:$0xff] %v1464_v57  ;;  %v463_v57 = vld [vmem:[%s2849_s4 + $0x868] sm:$0xff]  ;;  %v976_v62 = vmul.f32 %v2854_v3, %v462_v54  ;;  %v1488_v4 = vadd.f32 %v2865_v13, %v974_v56 }
 0x10f   : > { %1977 = vst [vmem:[%s2878_s6 + $0x798] sm:$0xff] %v1465_v60  ;;  %v464_v60 = vld [vmem:[%s2849_s4 + $0x870] sm:$0xff]  ;;  %v977_v1 = vmul.f32 %v2854_v3, %v463_v57  ;;  %v1489_v7 = vadd.f32 %v2865_v13, %v975_v59 }
 0x110   : > { %1978 = vst [vmem:[%s2878_s6 + $0x7a0] sm:$0xff] %v1466_v63  ;;  %v465_v63 = vld [vmem:[%s2849_s4 + $0x878] sm:$0xff]  ;;  %v978_v5 = vmul.f32 %v2854_v3, %v464_v60  ;;  %v1490_v10 = vadd.f32 %v2865_v13, %v976_v62 }
 0x111   : > { %1979 = vst [vmem:[%s2878_s6 + $0x7a8] sm:$0xff] %v1467_v2  ;;  %v466_v2 = vld [vmem:[%s2849_s4 + $0x880] sm:$0xff]  ;;  %v979_v8 = vmul.f32 %v2854_v3, %v465_v63  ;;  %v1491_v14 = vadd.f32 %v2865_v13, %v977_v1 }
 0x112   : > { %1980 = vst [vmem:[%s2878_s6 + $0x7b0] sm:$0xff] %v1468_v6  ;;  %v467_v6 = vld [vmem:[%s2849_s4 + $0x888] sm:$0xff]  ;;  %v980_v11 = vmul.f32 %v2854_v3, %v466_v2  ;;  %v1492_v17 = vadd.f32 %v2865_v13, %v978_v5 }
 0x113   : > { %1981 = vst [vmem:[%s2878_s6 + $0x7b8] sm:$0xff] %v1469_v9  ;;  %v468_v9 = vld [vmem:[%s2849_s4 + $0x890] sm:$0xff]  ;;  %v981_v15 = vmul.f32 %v2854_v3, %v467_v6  ;;  %v1493_v20 = vadd.f32 %v2865_v13, %v979_v8 }
 0x114   : > { %1982 = vst [vmem:[%s2878_s6 + $0x7c0] sm:$0xff] %v1470_v12  ;;  %v469_v12 = vld [vmem:[%s2849_s4 + $0x898] sm:$0xff]  ;;  %v982_v18 = vmul.f32 %v2854_v3, %v468_v9  ;;  %v1494_v23 = vadd.f32 %v2865_v13, %v980_v11 }
 0x115   : > { %1983 = vst [vmem:[%s2878_s6 + $0x7c8] sm:$0xff] %v1471_v16  ;;  %v470_v16 = vld [vmem:[%s2849_s4 + $0x8a0] sm:$0xff]  ;;  %v983_v21 = vmul.f32 %v2854_v3, %v469_v12  ;;  %v1495_v26 = vadd.f32 %v2865_v13, %v981_v15 }
 0x116   : > { %1984 = vst [vmem:[%s2878_s6 + $0x7d0] sm:$0xff] %v1472_v19  ;;  %v471_v19 = vld [vmem:[%s2849_s4 + $0x8a8] sm:$0xff]  ;;  %v984_v24 = vmul.f32 %v2854_v3, %v470_v16  ;;  %v1496_v29 = vadd.f32 %v2865_v13, %v982_v18 }
 0x117   : > { %1985 = vst [vmem:[%s2878_s6 + $0x7d8] sm:$0xff] %v1473_v22  ;;  %v472_v22 = vld [vmem:[%s2849_s4 + $0x8b0] sm:$0xff]  ;;  %v985_v27 = vmul.f32 %v2854_v3, %v471_v19  ;;  %v1497_v32 = vadd.f32 %v2865_v13, %v983_v21 }
 0x118   : > { %1986 = vst [vmem:[%s2878_s6 + $0x7e0] sm:$0xff] %v1474_v25  ;;  %v473_v25 = vld [vmem:[%s2849_s4 + $0x8b8] sm:$0xff]  ;;  %v986_v30 = vmul.f32 %v2854_v3, %v472_v22  ;;  %v1498_v35 = vadd.f32 %v2865_v13, %v984_v24 }
 0x119   : > { %1987 = vst [vmem:[%s2878_s6 + $0x7e8] sm:$0xff] %v1475_v28  ;;  %v474_v28 = vld [vmem:[%s2849_s4 + $0x8c0] sm:$0xff]  ;;  %v987_v33 = vmul.f32 %v2854_v3, %v473_v25  ;;  %v1499_v38 = vadd.f32 %v2865_v13, %v985_v27 }
 0x11a   : > { %1988 = vst [vmem:[%s2878_s6 + $0x7f0] sm:$0xff] %v1476_v31  ;;  %v475_v31 = vld [vmem:[%s2849_s4 + $0x8c8] sm:$0xff]  ;;  %v988_v36 = vmul.f32 %v2854_v3, %v474_v28  ;;  %v1500_v41 = vadd.f32 %v2865_v13, %v986_v30 }
 0x11b   : > { %1989 = vst [vmem:[%s2878_s6 + $0x7f8] sm:$0xff] %v1477_v34  ;;  %v476_v34 = vld [vmem:[%s2849_s4 + $0x8d0] sm:$0xff]  ;;  %v989_v39 = vmul.f32 %v2854_v3, %v475_v31  ;;  %v1501_v44 = vadd.f32 %v2865_v13, %v987_v33 }
 0x11c   : > { %1990 = vst [vmem:[%s2878_s6 + $0x800] sm:$0xff] %v1478_v37  ;;  %v477_v37 = vld [vmem:[%s2849_s4 + $0x8d8] sm:$0xff]  ;;  %v990_v42 = vmul.f32 %v2854_v3, %v476_v34  ;;  %v1502_v47 = vadd.f32 %v2865_v13, %v988_v36 }
 0x11d   : > { %1991 = vst [vmem:[%s2878_s6 + $0x808] sm:$0xff] %v1479_v40  ;;  %v478_v40 = vld [vmem:[%s2849_s4 + $0x8e0] sm:$0xff]  ;;  %v991_v45 = vmul.f32 %v2854_v3, %v477_v37  ;;  %v1503_v50 = vadd.f32 %v2865_v13, %v989_v39 }
 0x11e   : > { %1992 = vst [vmem:[%s2878_s6 + $0x810] sm:$0xff] %v1480_v43  ;;  %v479_v43 = vld [vmem:[%s2849_s4 + $0x8e8] sm:$0xff]  ;;  %v992_v48 = vmul.f32 %v2854_v3, %v478_v40  ;;  %v1504_v53 = vadd.f32 %v2865_v13, %v990_v42 }
 0x11f   : > { %1993 = vst [vmem:[%s2878_s6 + $0x818] sm:$0xff] %v1481_v46  ;;  %v480_v46 = vld [vmem:[%s2849_s4 + $0x8f0] sm:$0xff]  ;;  %v993_v51 = vmul.f32 %v2854_v3, %v479_v43  ;;  %v1505_v56 = vadd.f32 %v2865_v13, %v991_v45 }
 0x120   : > { %1994 = vst [vmem:[%s2878_s6 + $0x820] sm:$0xff] %v1482_v49  ;;  %v481_v49 = vld [vmem:[%s2849_s4 + $0x8f8] sm:$0xff]  ;;  %v994_v54 = vmul.f32 %v2854_v3, %v480_v46  ;;  %v1506_v59 = vadd.f32 %v2865_v13, %v992_v48 }
 0x121   : > { %1995 = vst [vmem:[%s2878_s6 + $0x828] sm:$0xff] %v1483_v52  ;;  %v482_v52 = vld [vmem:[%s2849_s4 + $0x900] sm:$0xff]  ;;  %v995_v57 = vmul.f32 %v2854_v3, %v481_v49  ;;  %v1507_v62 = vadd.f32 %v2865_v13, %v993_v51 }
 0x122   : > { %1996 = vst [vmem:[%s2878_s6 + $0x830] sm:$0xff] %v1484_v55  ;;  %v483_v55 = vld [vmem:[%s2849_s4 + $0x908] sm:$0xff]  ;;  %v996_v60 = vmul.f32 %v2854_v3, %v482_v52  ;;  %v1508_v1 = vadd.f32 %v2865_v13, %v994_v54 }
 0x123   : > { %1997 = vst [vmem:[%s2878_s6 + $0x838] sm:$0xff] %v1485_v58  ;;  %v484_v58 = vld [vmem:[%s2849_s4 + $0x910] sm:$0xff]  ;;  %v997_v63 = vmul.f32 %v2854_v3, %v483_v55  ;;  %v1509_v5 = vadd.f32 %v2865_v13, %v995_v57 }
 0x124   : > { %1998 = vst [vmem:[%s2878_s6 + $0x840] sm:$0xff] %v1486_v61  ;;  %v485_v61 = vld [vmem:[%s2849_s4 + $0x918] sm:$0xff]  ;;  %v998_v2 = vmul.f32 %v2854_v3, %v484_v58  ;;  %v1510_v8 = vadd.f32 %v2865_v13, %v996_v60 }
 0x125   : > { %1999 = vst [vmem:[%s2878_s6 + $0x848] sm:$0xff] %v1487_v0  ;;  %v486_v0 = vld [vmem:[%s2849_s4 + $0x920] sm:$0xff]  ;;  %v999_v6 = vmul.f32 %v2854_v3, %v485_v61  ;;  %v1511_v11 = vadd.f32 %v2865_v13, %v997_v63 }
 0x126   : > { %2000 = vst [vmem:[%s2878_s6 + $0x850] sm:$0xff] %v1488_v4  ;;  %v487_v4 = vld [vmem:[%s2849_s4 + $0x928] sm:$0xff]  ;;  %v1000_v9 = vmul.f32 %v2854_v3, %v486_v0  ;;  %v1512_v15 = vadd.f32 %v2865_v13, %v998_v2 }
 0x127   : > { %2001 = vst [vmem:[%s2878_s6 + $0x858] sm:$0xff] %v1489_v7  ;;  %v488_v7 = vld [vmem:[%s2849_s4 + $0x930] sm:$0xff]  ;;  %v1001_v12 = vmul.f32 %v2854_v3, %v487_v4  ;;  %v1513_v18 = vadd.f32 %v2865_v13, %v999_v6 }
 0x128   : > { %2002 = vst [vmem:[%s2878_s6 + $0x860] sm:$0xff] %v1490_v10  ;;  %v489_v10 = vld [vmem:[%s2849_s4 + $0x938] sm:$0xff]  ;;  %v1002_v16 = vmul.f32 %v2854_v3, %v488_v7  ;;  %v1514_v21 = vadd.f32 %v2865_v13, %v1000_v9 }
 0x129   : > { %2003 = vst [vmem:[%s2878_s6 + $0x868] sm:$0xff] %v1491_v14  ;;  %v490_v14 = vld [vmem:[%s2849_s4 + $0x940] sm:$0xff]  ;;  %v1003_v19 = vmul.f32 %v2854_v3, %v489_v10  ;;  %v1515_v24 = vadd.f32 %v2865_v13, %v1001_v12 }
 0x12a   : > { %2004 = vst [vmem:[%s2878_s6 + $0x870] sm:$0xff] %v1492_v17  ;;  %v491_v17 = vld [vmem:[%s2849_s4 + $0x948] sm:$0xff]  ;;  %v1004_v22 = vmul.f32 %v2854_v3, %v490_v14  ;;  %v1516_v27 = vadd.f32 %v2865_v13, %v1002_v16 }
 0x12b   : > { %2005 = vst [vmem:[%s2878_s6 + $0x878] sm:$0xff] %v1493_v20  ;;  %v492_v20 = vld [vmem:[%s2849_s4 + $0x950] sm:$0xff]  ;;  %v1005_v25 = vmul.f32 %v2854_v3, %v491_v17  ;;  %v1517_v30 = vadd.f32 %v2865_v13, %v1003_v19 }
 0x12c   : > { %2006 = vst [vmem:[%s2878_s6 + $0x880] sm:$0xff] %v1494_v23  ;;  %v493_v23 = vld [vmem:[%s2849_s4 + $0x958] sm:$0xff]  ;;  %v1006_v28 = vmul.f32 %v2854_v3, %v492_v20  ;;  %v1518_v33 = vadd.f32 %v2865_v13, %v1004_v22 }
 0x12d   : > { %2007 = vst [vmem:[%s2878_s6 + $0x888] sm:$0xff] %v1495_v26  ;;  %v494_v26 = vld [vmem:[%s2849_s4 + $0x960] sm:$0xff]  ;;  %v1007_v31 = vmul.f32 %v2854_v3, %v493_v23  ;;  %v1519_v36 = vadd.f32 %v2865_v13, %v1005_v25 }
 0x12e   : > { %2008 = vst [vmem:[%s2878_s6 + $0x890] sm:$0xff] %v1496_v29  ;;  %v495_v29 = vld [vmem:[%s2849_s4 + $0x968] sm:$0xff]  ;;  %v1008_v34 = vmul.f32 %v2854_v3, %v494_v26  ;;  %v1520_v39 = vadd.f32 %v2865_v13, %v1006_v28 }
 0x12f   : > { %2009 = vst [vmem:[%s2878_s6 + $0x898] sm:$0xff] %v1497_v32  ;;  %v496_v32 = vld [vmem:[%s2849_s4 + $0x970] sm:$0xff]  ;;  %v1009_v37 = vmul.f32 %v2854_v3, %v495_v29  ;;  %v1521_v42 = vadd.f32 %v2865_v13, %v1007_v31 }
 0x130   : > { %2010 = vst [vmem:[%s2878_s6 + $0x8a0] sm:$0xff] %v1498_v35  ;;  %v497_v35 = vld [vmem:[%s2849_s4 + $0x978] sm:$0xff]  ;;  %v1010_v40 = vmul.f32 %v2854_v3, %v496_v32  ;;  %v1522_v45 = vadd.f32 %v2865_v13, %v1008_v34 }
 0x131   : > { %2011 = vst [vmem:[%s2878_s6 + $0x8a8] sm:$0xff] %v1499_v38  ;;  %v498_v38 = vld [vmem:[%s2849_s4 + $0x980] sm:$0xff]  ;;  %v1011_v43 = vmul.f32 %v2854_v3, %v497_v35  ;;  %v1523_v48 = vadd.f32 %v2865_v13, %v1009_v37 }
 0x132   : > { %2012 = vst [vmem:[%s2878_s6 + $0x8b0] sm:$0xff] %v1500_v41  ;;  %v499_v41 = vld [vmem:[%s2849_s4 + $0x988] sm:$0xff]  ;;  %v1012_v46 = vmul.f32 %v2854_v3, %v498_v38  ;;  %v1524_v51 = vadd.f32 %v2865_v13, %v1010_v40 }
 0x133   : > { %2013 = vst [vmem:[%s2878_s6 + $0x8b8] sm:$0xff] %v1501_v44  ;;  %v500_v44 = vld [vmem:[%s2849_s4 + $0x990] sm:$0xff]  ;;  %v1013_v49 = vmul.f32 %v2854_v3, %v499_v41  ;;  %v1525_v54 = vadd.f32 %v2865_v13, %v1011_v43 }
 0x134   : > { %2014 = vst [vmem:[%s2878_s6 + $0x8c0] sm:$0xff] %v1502_v47  ;;  %v501_v47 = vld [vmem:[%s2849_s4 + $0x998] sm:$0xff]  ;;  %v1014_v52 = vmul.f32 %v2854_v3, %v500_v44  ;;  %v1526_v57 = vadd.f32 %v2865_v13, %v1012_v46 }
 0x135   : > { %2015 = vst [vmem:[%s2878_s6 + $0x8c8] sm:$0xff] %v1503_v50  ;;  %v502_v50 = vld [vmem:[%s2849_s4 + $0x9a0] sm:$0xff]  ;;  %v1015_v55 = vmul.f32 %v2854_v3, %v501_v47  ;;  %v1527_v60 = vadd.f32 %v2865_v13, %v1013_v49 }
 0x136   : > { %2016 = vst [vmem:[%s2878_s6 + $0x8d0] sm:$0xff] %v1504_v53  ;;  %v503_v53 = vld [vmem:[%s2849_s4 + $0x9a8] sm:$0xff]  ;;  %v1016_v58 = vmul.f32 %v2854_v3, %v502_v50  ;;  %v1528_v63 = vadd.f32 %v2865_v13, %v1014_v52 }
 0x137   : > { %2017 = vst [vmem:[%s2878_s6 + $0x8d8] sm:$0xff] %v1505_v56  ;;  %v504_v56 = vld [vmem:[%s2849_s4 + $0x9b0] sm:$0xff]  ;;  %v1017_v61 = vmul.f32 %v2854_v3, %v503_v53  ;;  %v1529_v2 = vadd.f32 %v2865_v13, %v1015_v55 }
 0x138   : > { %2018 = vst [vmem:[%s2878_s6 + $0x8e0] sm:$0xff] %v1506_v59  ;;  %v505_v59 = vld [vmem:[%s2849_s4 + $0x9b8] sm:$0xff]  ;;  %v1018_v0 = vmul.f32 %v2854_v3, %v504_v56  ;;  %v1530_v6 = vadd.f32 %v2865_v13, %v1016_v58 }
 0x139   : > { %2019 = vst [vmem:[%s2878_s6 + $0x8e8] sm:$0xff] %v1507_v62  ;;  %v506_v62 = vld [vmem:[%s2849_s4 + $0x9c0] sm:$0xff]  ;;  %v1019_v4 = vmul.f32 %v2854_v3, %v505_v59  ;;  %v1531_v9 = vadd.f32 %v2865_v13, %v1017_v61 }
 0x13a   : > { %2020 = vst [vmem:[%s2878_s6 + $0x8f0] sm:$0xff] %v1508_v1  ;;  %v507_v1 = vld [vmem:[%s2849_s4 + $0x9c8] sm:$0xff]  ;;  %v1020_v7 = vmul.f32 %v2854_v3, %v506_v62  ;;  %v1532_v12 = vadd.f32 %v2865_v13, %v1018_v0 }
 0x13b   : > { %2021 = vst [vmem:[%s2878_s6 + $0x8f8] sm:$0xff] %v1509_v5  ;;  %v508_v5 = vld [vmem:[%s2849_s4 + $0x9d0] sm:$0xff]  ;;  %v1021_v10 = vmul.f32 %v2854_v3, %v507_v1  ;;  %v1533_v16 = vadd.f32 %v2865_v13, %v1019_v4 }
 0x13c   : > { %2022 = vst [vmem:[%s2878_s6 + $0x900] sm:$0xff] %v1510_v8  ;;  %v509_v8 = vld [vmem:[%s2849_s4 + $0x9d8] sm:$0xff]  ;;  %v1022_v14 = vmul.f32 %v2854_v3, %v508_v5  ;;  %v1534_v19 = vadd.f32 %v2865_v13, %v1020_v7 }
 0x13d   : > { %2023 = vst [vmem:[%s2878_s6 + $0x908] sm:$0xff] %v1511_v11  ;;  %v510_v11 = vld [vmem:[%s2849_s4 + $0x9e0] sm:$0xff]  ;;  %v1023_v17 = vmul.f32 %v2854_v3, %v509_v8  ;;  %v1535_v22 = vadd.f32 %v2865_v13, %v1021_v10 }
 0x13e   : > { %2024 = vst [vmem:[%s2878_s6 + $0x910] sm:$0xff] %v1512_v15  ;;  %v511_v15 = vld [vmem:[%s2849_s4 + $0x9e8] sm:$0xff]  ;;  %v1024_v20 = vmul.f32 %v2854_v3, %v510_v11  ;;  %v1536_v25 = vadd.f32 %v2865_v13, %v1022_v14 }
 0x13f   : > { %2025 = vst [vmem:[%s2878_s6 + $0x918] sm:$0xff] %v1513_v18  ;;  %v512_v18 = vld [vmem:[%s2849_s4 + $0x9f0] sm:$0xff]  ;;  %v1025_v23 = vmul.f32 %v2854_v3, %v511_v15  ;;  %v1537_v28 = vadd.f32 %v2865_v13, %v1023_v17 }
 0x140   : > { %2026 = vst [vmem:[%s2878_s6 + $0x920] sm:$0xff] %v1514_v21  ;;  %v513_v21 = vld [vmem:[%s2849_s4 + $0x9f8] sm:$0xff]  ;;  %v1026_v26 = vmul.f32 %v2854_v3, %v512_v18  ;;  %v1538_v31 = vadd.f32 %v2865_v13, %v1024_v20 }
 0x141   : > { %2027 = vst [vmem:[%s2878_s6 + $0x928] sm:$0xff] %v1515_v24  ;;  %v514_v24 = vld [vmem:[%s2849_s4 + $0xa00] sm:$0xff]  ;;  %v1027_v29 = vmul.f32 %v2854_v3, %v513_v21  ;;  %v1539_v34 = vadd.f32 %v2865_v13, %v1025_v23 }
 0x142   : > { %2028 = vst [vmem:[%s2878_s6 + $0x930] sm:$0xff] %v1516_v27  ;;  %v515_v27 = vld [vmem:[%s2849_s4 + $0xa08] sm:$0xff]  ;;  %v1028_v32 = vmul.f32 %v2854_v3, %v514_v24  ;;  %v1540_v37 = vadd.f32 %v2865_v13, %v1026_v26 }
 0x143   : > { %2029 = vst [vmem:[%s2878_s6 + $0x938] sm:$0xff] %v1517_v30  ;;  %v516_v30 = vld [vmem:[%s2849_s4 + $0xa10] sm:$0xff]  ;;  %v1029_v35 = vmul.f32 %v2854_v3, %v515_v27  ;;  %v1541_v40 = vadd.f32 %v2865_v13, %v1027_v29 }
 0x144   : > { %2030 = vst [vmem:[%s2878_s6 + $0x940] sm:$0xff] %v1518_v33  ;;  %v517_v33 = vld [vmem:[%s2849_s4 + $0xa18] sm:$0xff]  ;;  %v1030_v38 = vmul.f32 %v2854_v3, %v516_v30  ;;  %v1542_v43 = vadd.f32 %v2865_v13, %v1028_v32 }
 0x145   : > { %2031 = vst [vmem:[%s2878_s6 + $0x948] sm:$0xff] %v1519_v36  ;;  %v518_v36 = vld [vmem:[%s2849_s4 + $0xa20] sm:$0xff]  ;;  %v1031_v41 = vmul.f32 %v2854_v3, %v517_v33  ;;  %v1543_v46 = vadd.f32 %v2865_v13, %v1029_v35 }
 0x146   : > { %2032 = vst [vmem:[%s2878_s6 + $0x950] sm:$0xff] %v1520_v39  ;;  %v519_v39 = vld [vmem:[%s2849_s4 + $0xa28] sm:$0xff]  ;;  %v1032_v44 = vmul.f32 %v2854_v3, %v518_v36  ;;  %v1544_v49 = vadd.f32 %v2865_v13, %v1030_v38 }
 0x147   : > { %2033 = vst [vmem:[%s2878_s6 + $0x958] sm:$0xff] %v1521_v42  ;;  %v520_v42 = vld [vmem:[%s2849_s4 + $0xa30] sm:$0xff]  ;;  %v1033_v47 = vmul.f32 %v2854_v3, %v519_v39  ;;  %v1545_v52 = vadd.f32 %v2865_v13, %v1031_v41 }
 0x148   : > { %2034 = vst [vmem:[%s2878_s6 + $0x960] sm:$0xff] %v1522_v45  ;;  %v521_v45 = vld [vmem:[%s2849_s4 + $0xa38] sm:$0xff]  ;;  %v1034_v50 = vmul.f32 %v2854_v3, %v520_v42  ;;  %v1546_v55 = vadd.f32 %v2865_v13, %v1032_v44 }
 0x149   : > { %2035 = vst [vmem:[%s2878_s6 + $0x968] sm:$0xff] %v1523_v48  ;;  %v522_v48 = vld [vmem:[%s2849_s4 + $0xa40] sm:$0xff]  ;;  %v1035_v53 = vmul.f32 %v2854_v3, %v521_v45  ;;  %v1547_v58 = vadd.f32 %v2865_v13, %v1033_v47 }
 0x14a   : > { %2036 = vst [vmem:[%s2878_s6 + $0x970] sm:$0xff] %v1524_v51  ;;  %v523_v51 = vld [vmem:[%s2849_s4 + $0xa48] sm:$0xff]  ;;  %v1036_v56 = vmul.f32 %v2854_v3, %v522_v48  ;;  %v1548_v61 = vadd.f32 %v2865_v13, %v1034_v50 }
 0x14b   : > { %2037 = vst [vmem:[%s2878_s6 + $0x978] sm:$0xff] %v1525_v54  ;;  %v524_v54 = vld [vmem:[%s2849_s4 + $0xa50] sm:$0xff]  ;;  %v1037_v59 = vmul.f32 %v2854_v3, %v523_v51  ;;  %v1549_v0 = vadd.f32 %v2865_v13, %v1035_v53 }
 0x14c   : > { %2038 = vst [vmem:[%s2878_s6 + $0x980] sm:$0xff] %v1526_v57  ;;  %v525_v57 = vld [vmem:[%s2849_s4 + $0xa58] sm:$0xff]  ;;  %v1038_v62 = vmul.f32 %v2854_v3, %v524_v54  ;;  %v1550_v4 = vadd.f32 %v2865_v13, %v1036_v56 }
 0x14d   : > { %2039 = vst [vmem:[%s2878_s6 + $0x988] sm:$0xff] %v1527_v60  ;;  %v526_v60 = vld [vmem:[%s2849_s4 + $0xa60] sm:$0xff]  ;;  %v1039_v1 = vmul.f32 %v2854_v3, %v525_v57  ;;  %v1551_v7 = vadd.f32 %v2865_v13, %v1037_v59 }
 0x14e   : > { %2040 = vst [vmem:[%s2878_s6 + $0x990] sm:$0xff] %v1528_v63  ;;  %v527_v63 = vld [vmem:[%s2849_s4 + $0xa68] sm:$0xff]  ;;  %v1040_v5 = vmul.f32 %v2854_v3, %v526_v60  ;;  %v1552_v10 = vadd.f32 %v2865_v13, %v1038_v62 }
 0x14f   : > { %2041 = vst [vmem:[%s2878_s6 + $0x998] sm:$0xff] %v1529_v2  ;;  %v528_v2 = vld [vmem:[%s2849_s4 + $0xa70] sm:$0xff]  ;;  %v1041_v8 = vmul.f32 %v2854_v3, %v527_v63  ;;  %v1553_v14 = vadd.f32 %v2865_v13, %v1039_v1 }
 0x150   : > { %2042 = vst [vmem:[%s2878_s6 + $0x9a0] sm:$0xff] %v1530_v6  ;;  %v529_v6 = vld [vmem:[%s2849_s4 + $0xa78] sm:$0xff]  ;;  %v1042_v11 = vmul.f32 %v2854_v3, %v528_v2  ;;  %v1554_v17 = vadd.f32 %v2865_v13, %v1040_v5 }
 0x151   : > { %2043 = vst [vmem:[%s2878_s6 + $0x9a8] sm:$0xff] %v1531_v9  ;;  %v530_v9 = vld [vmem:[%s2849_s4 + $0xa80] sm:$0xff]  ;;  %v1043_v15 = vmul.f32 %v2854_v3, %v529_v6  ;;  %v1555_v20 = vadd.f32 %v2865_v13, %v1041_v8 }
 0x152   : > { %2044 = vst [vmem:[%s2878_s6 + $0x9b0] sm:$0xff] %v1532_v12  ;;  %v531_v12 = vld [vmem:[%s2849_s4 + $0xa88] sm:$0xff]  ;;  %v1044_v18 = vmul.f32 %v2854_v3, %v530_v9  ;;  %v1556_v23 = vadd.f32 %v2865_v13, %v1042_v11 }
 0x153   : > { %2045 = vst [vmem:[%s2878_s6 + $0x9b8] sm:$0xff] %v1533_v16  ;;  %v532_v16 = vld [vmem:[%s2849_s4 + $0xa90] sm:$0xff]  ;;  %v1045_v21 = vmul.f32 %v2854_v3, %v531_v12  ;;  %v1557_v26 = vadd.f32 %v2865_v13, %v1043_v15 }
 0x154   : > { %2046 = vst [vmem:[%s2878_s6 + $0x9c0] sm:$0xff] %v1534_v19  ;;  %v533_v19 = vld [vmem:[%s2849_s4 + $0xa98] sm:$0xff]  ;;  %v1046_v24 = vmul.f32 %v2854_v3, %v532_v16  ;;  %v1558_v29 = vadd.f32 %v2865_v13, %v1044_v18 }
 0x155   : > { %2047 = vst [vmem:[%s2878_s6 + $0x9c8] sm:$0xff] %v1535_v22  ;;  %v534_v22 = vld [vmem:[%s2849_s4 + $0xaa0] sm:$0xff]  ;;  %v1047_v27 = vmul.f32 %v2854_v3, %v533_v19  ;;  %v1559_v32 = vadd.f32 %v2865_v13, %v1045_v21 }
 0x156   : > { %2048 = vst [vmem:[%s2878_s6 + $0x9d0] sm:$0xff] %v1536_v25  ;;  %v535_v25 = vld [vmem:[%s2849_s4 + $0xaa8] sm:$0xff]  ;;  %v1048_v30 = vmul.f32 %v2854_v3, %v534_v22  ;;  %v1560_v35 = vadd.f32 %v2865_v13, %v1046_v24 }
 0x157   : > { %2049 = vst [vmem:[%s2878_s6 + $0x9d8] sm:$0xff] %v1537_v28  ;;  %v536_v28 = vld [vmem:[%s2849_s4 + $0xab0] sm:$0xff]  ;;  %v1049_v33 = vmul.f32 %v2854_v3, %v535_v25  ;;  %v1561_v38 = vadd.f32 %v2865_v13, %v1047_v27 }
 0x158   : > { %2050 = vst [vmem:[%s2878_s6 + $0x9e0] sm:$0xff] %v1538_v31  ;;  %v537_v31 = vld [vmem:[%s2849_s4 + $0xab8] sm:$0xff]  ;;  %v1050_v36 = vmul.f32 %v2854_v3, %v536_v28  ;;  %v1562_v41 = vadd.f32 %v2865_v13, %v1048_v30 }
 0x159   : > { %2051 = vst [vmem:[%s2878_s6 + $0x9e8] sm:$0xff] %v1539_v34  ;;  %v538_v34 = vld [vmem:[%s2849_s4 + $0xac0] sm:$0xff]  ;;  %v1051_v39 = vmul.f32 %v2854_v3, %v537_v31  ;;  %v1563_v44 = vadd.f32 %v2865_v13, %v1049_v33 }
 0x15a   : > { %2052 = vst [vmem:[%s2878_s6 + $0x9f0] sm:$0xff] %v1540_v37  ;;  %v539_v37 = vld [vmem:[%s2849_s4 + $0xac8] sm:$0xff]  ;;  %v1052_v42 = vmul.f32 %v2854_v3, %v538_v34  ;;  %v1564_v47 = vadd.f32 %v2865_v13, %v1050_v36 }
 0x15b   : > { %2053 = vst [vmem:[%s2878_s6 + $0x9f8] sm:$0xff] %v1541_v40  ;;  %v540_v40 = vld [vmem:[%s2849_s4 + $0xad0] sm:$0xff]  ;;  %v1053_v45 = vmul.f32 %v2854_v3, %v539_v37  ;;  %v1565_v50 = vadd.f32 %v2865_v13, %v1051_v39 }
 0x15c   : > { %2054 = vst [vmem:[%s2878_s6 + $0xa00] sm:$0xff] %v1542_v43  ;;  %v541_v43 = vld [vmem:[%s2849_s4 + $0xad8] sm:$0xff]  ;;  %v1054_v48 = vmul.f32 %v2854_v3, %v540_v40  ;;  %v1566_v53 = vadd.f32 %v2865_v13, %v1052_v42 }
 0x15d   : > { %2055 = vst [vmem:[%s2878_s6 + $0xa08] sm:$0xff] %v1543_v46  ;;  %v542_v46 = vld [vmem:[%s2849_s4 + $0xae0] sm:$0xff]  ;;  %v1055_v51 = vmul.f32 %v2854_v3, %v541_v43  ;;  %v1567_v56 = vadd.f32 %v2865_v13, %v1053_v45 }
 0x15e   : > { %2056 = vst [vmem:[%s2878_s6 + $0xa10] sm:$0xff] %v1544_v49  ;;  %v543_v49 = vld [vmem:[%s2849_s4 + $0xae8] sm:$0xff]  ;;  %v1056_v54 = vmul.f32 %v2854_v3, %v542_v46  ;;  %v1568_v59 = vadd.f32 %v2865_v13, %v1054_v48 }
 0x15f   : > { %2057 = vst [vmem:[%s2878_s6 + $0xa18] sm:$0xff] %v1545_v52  ;;  %v544_v52 = vld [vmem:[%s2849_s4 + $0xaf0] sm:$0xff]  ;;  %v1057_v57 = vmul.f32 %v2854_v3, %v543_v49  ;;  %v1569_v62 = vadd.f32 %v2865_v13, %v1055_v51 }
 0x160   : > { %2058 = vst [vmem:[%s2878_s6 + $0xa20] sm:$0xff] %v1546_v55  ;;  %v545_v55 = vld [vmem:[%s2849_s4 + $0xaf8] sm:$0xff]  ;;  %v1058_v60 = vmul.f32 %v2854_v3, %v544_v52  ;;  %v1570_v1 = vadd.f32 %v2865_v13, %v1056_v54 }
 0x161   : > { %2059 = vst [vmem:[%s2878_s6 + $0xa28] sm:$0xff] %v1547_v58  ;;  %v546_v58 = vld [vmem:[%s2849_s4 + $0xb00] sm:$0xff]  ;;  %v1059_v63 = vmul.f32 %v2854_v3, %v545_v55  ;;  %v1571_v5 = vadd.f32 %v2865_v13, %v1057_v57 }
 0x162   : > { %2060 = vst [vmem:[%s2878_s6 + $0xa30] sm:$0xff] %v1548_v61  ;;  %v547_v61 = vld [vmem:[%s2849_s4 + $0xb08] sm:$0xff]  ;;  %v1060_v2 = vmul.f32 %v2854_v3, %v546_v58  ;;  %v1572_v8 = vadd.f32 %v2865_v13, %v1058_v60 }
 0x163   : > { %2061 = vst [vmem:[%s2878_s6 + $0xa38] sm:$0xff] %v1549_v0  ;;  %v548_v0 = vld [vmem:[%s2849_s4 + $0xb10] sm:$0xff]  ;;  %v1061_v6 = vmul.f32 %v2854_v3, %v547_v61  ;;  %v1573_v11 = vadd.f32 %v2865_v13, %v1059_v63 }
 0x164   : > { %2062 = vst [vmem:[%s2878_s6 + $0xa40] sm:$0xff] %v1550_v4  ;;  %v549_v4 = vld [vmem:[%s2849_s4 + $0xb18] sm:$0xff]  ;;  %v1062_v9 = vmul.f32 %v2854_v3, %v548_v0  ;;  %v1574_v15 = vadd.f32 %v2865_v13, %v1060_v2 }
 0x165   : > { %2063 = vst [vmem:[%s2878_s6 + $0xa48] sm:$0xff] %v1551_v7  ;;  %v550_v7 = vld [vmem:[%s2849_s4 + $0xb20] sm:$0xff]  ;;  %v1063_v12 = vmul.f32 %v2854_v3, %v549_v4  ;;  %v1575_v18 = vadd.f32 %v2865_v13, %v1061_v6 }
 0x166   : > { %2064 = vst [vmem:[%s2878_s6 + $0xa50] sm:$0xff] %v1552_v10  ;;  %v551_v10 = vld [vmem:[%s2849_s4 + $0xb28] sm:$0xff]  ;;  %v1064_v16 = vmul.f32 %v2854_v3, %v550_v7  ;;  %v1576_v21 = vadd.f32 %v2865_v13, %v1062_v9 }
 0x167   : > { %2065 = vst [vmem:[%s2878_s6 + $0xa58] sm:$0xff] %v1553_v14  ;;  %v552_v14 = vld [vmem:[%s2849_s4 + $0xb30] sm:$0xff]  ;;  %v1065_v19 = vmul.f32 %v2854_v3, %v551_v10  ;;  %v1577_v24 = vadd.f32 %v2865_v13, %v1063_v12 }
 0x168   : > { %2066 = vst [vmem:[%s2878_s6 + $0xa60] sm:$0xff] %v1554_v17  ;;  %v553_v17 = vld [vmem:[%s2849_s4 + $0xb38] sm:$0xff]  ;;  %v1066_v22 = vmul.f32 %v2854_v3, %v552_v14  ;;  %v1578_v27 = vadd.f32 %v2865_v13, %v1064_v16 }
 0x169   : > { %2067 = vst [vmem:[%s2878_s6 + $0xa68] sm:$0xff] %v1555_v20  ;;  %v554_v20 = vld [vmem:[%s2849_s4 + $0xb40] sm:$0xff]  ;;  %v1067_v25 = vmul.f32 %v2854_v3, %v553_v17  ;;  %v1579_v30 = vadd.f32 %v2865_v13, %v1065_v19 }
 0x16a   : > { %2068 = vst [vmem:[%s2878_s6 + $0xa70] sm:$0xff] %v1556_v23  ;;  %v555_v23 = vld [vmem:[%s2849_s4 + $0xb48] sm:$0xff]  ;;  %v1068_v28 = vmul.f32 %v2854_v3, %v554_v20  ;;  %v1580_v33 = vadd.f32 %v2865_v13, %v1066_v22 }
 0x16b   : > { %2069 = vst [vmem:[%s2878_s6 + $0xa78] sm:$0xff] %v1557_v26  ;;  %v556_v26 = vld [vmem:[%s2849_s4 + $0xb50] sm:$0xff]  ;;  %v1069_v31 = vmul.f32 %v2854_v3, %v555_v23  ;;  %v1581_v36 = vadd.f32 %v2865_v13, %v1067_v25 }
 0x16c   : > { %2070 = vst [vmem:[%s2878_s6 + $0xa80] sm:$0xff] %v1558_v29  ;;  %v557_v29 = vld [vmem:[%s2849_s4 + $0xb58] sm:$0xff]  ;;  %v1070_v34 = vmul.f32 %v2854_v3, %v556_v26  ;;  %v1582_v39 = vadd.f32 %v2865_v13, %v1068_v28 }
 0x16d   : > { %2071 = vst [vmem:[%s2878_s6 + $0xa88] sm:$0xff] %v1559_v32  ;;  %v558_v32 = vld [vmem:[%s2849_s4 + $0xb60] sm:$0xff]  ;;  %v1071_v37 = vmul.f32 %v2854_v3, %v557_v29  ;;  %v1583_v42 = vadd.f32 %v2865_v13, %v1069_v31 }
 0x16e   : > { %2072 = vst [vmem:[%s2878_s6 + $0xa90] sm:$0xff] %v1560_v35  ;;  %v559_v35 = vld [vmem:[%s2849_s4 + $0xb68] sm:$0xff]  ;;  %v1072_v40 = vmul.f32 %v2854_v3, %v558_v32  ;;  %v1584_v45 = vadd.f32 %v2865_v13, %v1070_v34 }
 0x16f   : > { %2073 = vst [vmem:[%s2878_s6 + $0xa98] sm:$0xff] %v1561_v38  ;;  %v560_v38 = vld [vmem:[%s2849_s4 + $0xb70] sm:$0xff]  ;;  %v1073_v43 = vmul.f32 %v2854_v3, %v559_v35  ;;  %v1585_v48 = vadd.f32 %v2865_v13, %v1071_v37 }
 0x170   : > { %2074 = vst [vmem:[%s2878_s6 + $0xaa0] sm:$0xff] %v1562_v41  ;;  %v561_v41 = vld [vmem:[%s2849_s4 + $0xb78] sm:$0xff]  ;;  %v1074_v46 = vmul.f32 %v2854_v3, %v560_v38  ;;  %v1586_v51 = vadd.f32 %v2865_v13, %v1072_v40 }
 0x171   : > { %2075 = vst [vmem:[%s2878_s6 + $0xaa8] sm:$0xff] %v1563_v44  ;;  %v562_v44 = vld [vmem:[%s2849_s4 + $0xb80] sm:$0xff]  ;;  %v1075_v49 = vmul.f32 %v2854_v3, %v561_v41  ;;  %v1587_v54 = vadd.f32 %v2865_v13, %v1073_v43 }
 0x172   : > { %2076 = vst [vmem:[%s2878_s6 + $0xab0] sm:$0xff] %v1564_v47  ;;  %v563_v47 = vld [vmem:[%s2849_s4 + $0xb88] sm:$0xff]  ;;  %v1076_v52 = vmul.f32 %v2854_v3, %v562_v44  ;;  %v1588_v57 = vadd.f32 %v2865_v13, %v1074_v46 }
 0x173   : > { %2077 = vst [vmem:[%s2878_s6 + $0xab8] sm:$0xff] %v1565_v50  ;;  %v564_v50 = vld [vmem:[%s2849_s4 + $0xb90] sm:$0xff]  ;;  %v1077_v55 = vmul.f32 %v2854_v3, %v563_v47  ;;  %v1589_v60 = vadd.f32 %v2865_v13, %v1075_v49 }
 0x174   : > { %2078 = vst [vmem:[%s2878_s6 + $0xac0] sm:$0xff] %v1566_v53  ;;  %v565_v53 = vld [vmem:[%s2849_s4 + $0xb98] sm:$0xff]  ;;  %v1078_v58 = vmul.f32 %v2854_v3, %v564_v50  ;;  %v1590_v63 = vadd.f32 %v2865_v13, %v1076_v52 }
 0x175   : > { %2079 = vst [vmem:[%s2878_s6 + $0xac8] sm:$0xff] %v1567_v56  ;;  %v566_v56 = vld [vmem:[%s2849_s4 + $0xba0] sm:$0xff]  ;;  %v1079_v61 = vmul.f32 %v2854_v3, %v565_v53  ;;  %v1591_v2 = vadd.f32 %v2865_v13, %v1077_v55 }
 0x176   : > { %2080 = vst [vmem:[%s2878_s6 + $0xad0] sm:$0xff] %v1568_v59  ;;  %v567_v59 = vld [vmem:[%s2849_s4 + $0xba8] sm:$0xff]  ;;  %v1080_v0 = vmul.f32 %v2854_v3, %v566_v56  ;;  %v1592_v6 = vadd.f32 %v2865_v13, %v1078_v58 }
 0x177   : > { %2081 = vst [vmem:[%s2878_s6 + $0xad8] sm:$0xff] %v1569_v62  ;;  %v568_v62 = vld [vmem:[%s2849_s4 + $0xbb0] sm:$0xff]  ;;  %v1081_v4 = vmul.f32 %v2854_v3, %v567_v59  ;;  %v1593_v9 = vadd.f32 %v2865_v13, %v1079_v61 }
 0x178   : > { %2082 = vst [vmem:[%s2878_s6 + $0xae0] sm:$0xff] %v1570_v1  ;;  %v569_v1 = vld [vmem:[%s2849_s4 + $0xbb8] sm:$0xff]  ;;  %v1082_v7 = vmul.f32 %v2854_v3, %v568_v62  ;;  %v1594_v12 = vadd.f32 %v2865_v13, %v1080_v0 }
 0x179   : > { %2083 = vst [vmem:[%s2878_s6 + $0xae8] sm:$0xff] %v1571_v5  ;;  %v570_v5 = vld [vmem:[%s2849_s4 + $0xbc0] sm:$0xff]  ;;  %v1083_v10 = vmul.f32 %v2854_v3, %v569_v1  ;;  %v1595_v16 = vadd.f32 %v2865_v13, %v1081_v4 }
 0x17a   : > { %2084 = vst [vmem:[%s2878_s6 + $0xaf0] sm:$0xff] %v1572_v8  ;;  %v571_v8 = vld [vmem:[%s2849_s4 + $0xbc8] sm:$0xff]  ;;  %v1084_v14 = vmul.f32 %v2854_v3, %v570_v5  ;;  %v1596_v19 = vadd.f32 %v2865_v13, %v1082_v7 }
 0x17b   : > { %2085 = vst [vmem:[%s2878_s6 + $0xaf8] sm:$0xff] %v1573_v11  ;;  %v572_v11 = vld [vmem:[%s2849_s4 + $0xbd0] sm:$0xff]  ;;  %v1085_v17 = vmul.f32 %v2854_v3, %v571_v8  ;;  %v1597_v22 = vadd.f32 %v2865_v13, %v1083_v10 }
 0x17c   : > { %2086 = vst [vmem:[%s2878_s6 + $0xb00] sm:$0xff] %v1574_v15  ;;  %v573_v15 = vld [vmem:[%s2849_s4 + $0xbd8] sm:$0xff]  ;;  %v1086_v20 = vmul.f32 %v2854_v3, %v572_v11  ;;  %v1598_v25 = vadd.f32 %v2865_v13, %v1084_v14 }
 0x17d   : > { %2087 = vst [vmem:[%s2878_s6 + $0xb08] sm:$0xff] %v1575_v18  ;;  %v574_v18 = vld [vmem:[%s2849_s4 + $0xbe0] sm:$0xff]  ;;  %v1087_v23 = vmul.f32 %v2854_v3, %v573_v15  ;;  %v1599_v28 = vadd.f32 %v2865_v13, %v1085_v17 }
 0x17e   : > { %2088 = vst [vmem:[%s2878_s6 + $0xb10] sm:$0xff] %v1576_v21  ;;  %v575_v21 = vld [vmem:[%s2849_s4 + $0xbe8] sm:$0xff]  ;;  %v1088_v26 = vmul.f32 %v2854_v3, %v574_v18  ;;  %v1600_v31 = vadd.f32 %v2865_v13, %v1086_v20 }
 0x17f   : > { %2089 = vst [vmem:[%s2878_s6 + $0xb18] sm:$0xff] %v1577_v24  ;;  %v576_v24 = vld [vmem:[%s2849_s4 + $0xbf0] sm:$0xff]  ;;  %v1089_v29 = vmul.f32 %v2854_v3, %v575_v21  ;;  %v1601_v34 = vadd.f32 %v2865_v13, %v1087_v23 }
 0x180   : > { %2090 = vst [vmem:[%s2878_s6 + $0xb20] sm:$0xff] %v1578_v27  ;;  %v577_v27 = vld [vmem:[%s2849_s4 + $0xbf8] sm:$0xff]  ;;  %v1090_v32 = vmul.f32 %v2854_v3, %v576_v24  ;;  %v1602_v37 = vadd.f32 %v2865_v13, %v1088_v26 }
 0x181   : > { %2091 = vst [vmem:[%s2878_s6 + $0xb28] sm:$0xff] %v1579_v30  ;;  %v578_v30 = vld [vmem:[%s2849_s4 + $0xc00] sm:$0xff]  ;;  %v1091_v35 = vmul.f32 %v2854_v3, %v577_v27  ;;  %v1603_v40 = vadd.f32 %v2865_v13, %v1089_v29 }
 0x182   : > { %2092 = vst [vmem:[%s2878_s6 + $0xb30] sm:$0xff] %v1580_v33  ;;  %v579_v33 = vld [vmem:[%s2849_s4 + $0xc08] sm:$0xff]  ;;  %v1092_v38 = vmul.f32 %v2854_v3, %v578_v30  ;;  %v1604_v43 = vadd.f32 %v2865_v13, %v1090_v32 }
 0x183   : > { %2093 = vst [vmem:[%s2878_s6 + $0xb38] sm:$0xff] %v1581_v36  ;;  %v580_v36 = vld [vmem:[%s2849_s4 + $0xc10] sm:$0xff]  ;;  %v1093_v41 = vmul.f32 %v2854_v3, %v579_v33  ;;  %v1605_v46 = vadd.f32 %v2865_v13, %v1091_v35 }
 0x184   : > { %2094 = vst [vmem:[%s2878_s6 + $0xb40] sm:$0xff] %v1582_v39  ;;  %v581_v39 = vld [vmem:[%s2849_s4 + $0xc18] sm:$0xff]  ;;  %v1094_v44 = vmul.f32 %v2854_v3, %v580_v36  ;;  %v1606_v49 = vadd.f32 %v2865_v13, %v1092_v38 }
 0x185   : > { %2095 = vst [vmem:[%s2878_s6 + $0xb48] sm:$0xff] %v1583_v42  ;;  %v582_v42 = vld [vmem:[%s2849_s4 + $0xc20] sm:$0xff]  ;;  %v1095_v47 = vmul.f32 %v2854_v3, %v581_v39  ;;  %v1607_v52 = vadd.f32 %v2865_v13, %v1093_v41 }
 0x186   : > { %2096 = vst [vmem:[%s2878_s6 + $0xb50] sm:$0xff] %v1584_v45  ;;  %v583_v45 = vld [vmem:[%s2849_s4 + $0xc28] sm:$0xff]  ;;  %v1096_v50 = vmul.f32 %v2854_v3, %v582_v42  ;;  %v1608_v55 = vadd.f32 %v2865_v13, %v1094_v44 }
 0x187   : > { %2097 = vst [vmem:[%s2878_s6 + $0xb58] sm:$0xff] %v1585_v48  ;;  %v584_v48 = vld [vmem:[%s2849_s4 + $0xc30] sm:$0xff]  ;;  %v1097_v53 = vmul.f32 %v2854_v3, %v583_v45  ;;  %v1609_v58 = vadd.f32 %v2865_v13, %v1095_v47 }
 0x188   : > { %2098 = vst [vmem:[%s2878_s6 + $0xb60] sm:$0xff] %v1586_v51  ;;  %v585_v51 = vld [vmem:[%s2849_s4 + $0xc38] sm:$0xff]  ;;  %v1098_v56 = vmul.f32 %v2854_v3, %v584_v48  ;;  %v1610_v61 = vadd.f32 %v2865_v13, %v1096_v50 }
 0x189   : > { %2099 = vst [vmem:[%s2878_s6 + $0xb68] sm:$0xff] %v1587_v54  ;;  %v586_v54 = vld [vmem:[%s2849_s4 + $0xc40] sm:$0xff]  ;;  %v1099_v59 = vmul.f32 %v2854_v3, %v585_v51  ;;  %v1611_v0 = vadd.f32 %v2865_v13, %v1097_v53 }
 0x18a   : > { %2100 = vst [vmem:[%s2878_s6 + $0xb70] sm:$0xff] %v1588_v57  ;;  %v587_v57 = vld [vmem:[%s2849_s4 + $0xc48] sm:$0xff]  ;;  %v1100_v62 = vmul.f32 %v2854_v3, %v586_v54  ;;  %v1612_v4 = vadd.f32 %v2865_v13, %v1098_v56 }
 0x18b   : > { %2101 = vst [vmem:[%s2878_s6 + $0xb78] sm:$0xff] %v1589_v60  ;;  %v588_v60 = vld [vmem:[%s2849_s4 + $0xc50] sm:$0xff]  ;;  %v1101_v1 = vmul.f32 %v2854_v3, %v587_v57  ;;  %v1613_v7 = vadd.f32 %v2865_v13, %v1099_v59 }
 0x18c   : > { %2102 = vst [vmem:[%s2878_s6 + $0xb80] sm:$0xff] %v1590_v63  ;;  %v589_v63 = vld [vmem:[%s2849_s4 + $0xc58] sm:$0xff]  ;;  %v1102_v5 = vmul.f32 %v2854_v3, %v588_v60  ;;  %v1614_v10 = vadd.f32 %v2865_v13, %v1100_v62 }
 0x18d   : > { %2103 = vst [vmem:[%s2878_s6 + $0xb88] sm:$0xff] %v1591_v2  ;;  %v590_v2 = vld [vmem:[%s2849_s4 + $0xc60] sm:$0xff]  ;;  %v1103_v8 = vmul.f32 %v2854_v3, %v589_v63  ;;  %v1615_v14 = vadd.f32 %v2865_v13, %v1101_v1 }
 0x18e   : > { %2104 = vst [vmem:[%s2878_s6 + $0xb90] sm:$0xff] %v1592_v6  ;;  %v591_v6 = vld [vmem:[%s2849_s4 + $0xc68] sm:$0xff]  ;;  %v1104_v11 = vmul.f32 %v2854_v3, %v590_v2  ;;  %v1616_v17 = vadd.f32 %v2865_v13, %v1102_v5 }
 0x18f   : > { %2105 = vst [vmem:[%s2878_s6 + $0xb98] sm:$0xff] %v1593_v9  ;;  %v592_v9 = vld [vmem:[%s2849_s4 + $0xc70] sm:$0xff]  ;;  %v1105_v15 = vmul.f32 %v2854_v3, %v591_v6  ;;  %v1617_v20 = vadd.f32 %v2865_v13, %v1103_v8 }
 0x190   : > { %2106 = vst [vmem:[%s2878_s6 + $0xba0] sm:$0xff] %v1594_v12  ;;  %v593_v12 = vld [vmem:[%s2849_s4 + $0xc78] sm:$0xff]  ;;  %v1106_v18 = vmul.f32 %v2854_v3, %v592_v9  ;;  %v1618_v23 = vadd.f32 %v2865_v13, %v1104_v11 }
 0x191   : > { %2107 = vst [vmem:[%s2878_s6 + $0xba8] sm:$0xff] %v1595_v16  ;;  %v594_v16 = vld [vmem:[%s2849_s4 + $0xc80] sm:$0xff]  ;;  %v1107_v21 = vmul.f32 %v2854_v3, %v593_v12  ;;  %v1619_v26 = vadd.f32 %v2865_v13, %v1105_v15 }
 0x192   : > { %2108 = vst [vmem:[%s2878_s6 + $0xbb0] sm:$0xff] %v1596_v19  ;;  %v595_v19 = vld [vmem:[%s2849_s4 + $0xc88] sm:$0xff]  ;;  %v1108_v24 = vmul.f32 %v2854_v3, %v594_v16  ;;  %v1620_v29 = vadd.f32 %v2865_v13, %v1106_v18 }
 0x193   : > { %2109 = vst [vmem:[%s2878_s6 + $0xbb8] sm:$0xff] %v1597_v22  ;;  %v596_v22 = vld [vmem:[%s2849_s4 + $0xc90] sm:$0xff]  ;;  %v1109_v27 = vmul.f32 %v2854_v3, %v595_v19  ;;  %v1621_v32 = vadd.f32 %v2865_v13, %v1107_v21 }
 0x194   : > { %2110 = vst [vmem:[%s2878_s6 + $0xbc0] sm:$0xff] %v1598_v25  ;;  %v597_v25 = vld [vmem:[%s2849_s4 + $0xc98] sm:$0xff]  ;;  %v1110_v30 = vmul.f32 %v2854_v3, %v596_v22  ;;  %v1622_v35 = vadd.f32 %v2865_v13, %v1108_v24 }
 0x195   : > { %2111 = vst [vmem:[%s2878_s6 + $0xbc8] sm:$0xff] %v1599_v28  ;;  %v598_v28 = vld [vmem:[%s2849_s4 + $0xca0] sm:$0xff]  ;;  %v1111_v33 = vmul.f32 %v2854_v3, %v597_v25  ;;  %v1623_v38 = vadd.f32 %v2865_v13, %v1109_v27 }
 0x196   : > { %2112 = vst [vmem:[%s2878_s6 + $0xbd0] sm:$0xff] %v1600_v31  ;;  %v599_v31 = vld [vmem:[%s2849_s4 + $0xca8] sm:$0xff]  ;;  %v1112_v36 = vmul.f32 %v2854_v3, %v598_v28  ;;  %v1624_v41 = vadd.f32 %v2865_v13, %v1110_v30 }
 0x197   : > { %2113 = vst [vmem:[%s2878_s6 + $0xbd8] sm:$0xff] %v1601_v34  ;;  %v600_v34 = vld [vmem:[%s2849_s4 + $0xcb0] sm:$0xff]  ;;  %v1113_v39 = vmul.f32 %v2854_v3, %v599_v31  ;;  %v1625_v44 = vadd.f32 %v2865_v13, %v1111_v33 }
 0x198   : > { %2114 = vst [vmem:[%s2878_s6 + $0xbe0] sm:$0xff] %v1602_v37  ;;  %v601_v37 = vld [vmem:[%s2849_s4 + $0xcb8] sm:$0xff]  ;;  %v1114_v42 = vmul.f32 %v2854_v3, %v600_v34  ;;  %v1626_v47 = vadd.f32 %v2865_v13, %v1112_v36 }
 0x199   : > { %2115 = vst [vmem:[%s2878_s6 + $0xbe8] sm:$0xff] %v1603_v40  ;;  %v602_v40 = vld [vmem:[%s2849_s4 + $0xcc0] sm:$0xff]  ;;  %v1115_v45 = vmul.f32 %v2854_v3, %v601_v37  ;;  %v1627_v50 = vadd.f32 %v2865_v13, %v1113_v39 }
 0x19a   : > { %2116 = vst [vmem:[%s2878_s6 + $0xbf0] sm:$0xff] %v1604_v43  ;;  %v603_v43 = vld [vmem:[%s2849_s4 + $0xcc8] sm:$0xff]  ;;  %v1116_v48 = vmul.f32 %v2854_v3, %v602_v40  ;;  %v1628_v53 = vadd.f32 %v2865_v13, %v1114_v42 }
 0x19b   : > { %2117 = vst [vmem:[%s2878_s6 + $0xbf8] sm:$0xff] %v1605_v46  ;;  %v604_v46 = vld [vmem:[%s2849_s4 + $0xcd0] sm:$0xff]  ;;  %v1117_v51 = vmul.f32 %v2854_v3, %v603_v43  ;;  %v1629_v56 = vadd.f32 %v2865_v13, %v1115_v45 }
 0x19c   : > { %2118 = vst [vmem:[%s2878_s6 + $0xc00] sm:$0xff] %v1606_v49  ;;  %v605_v49 = vld [vmem:[%s2849_s4 + $0xcd8] sm:$0xff]  ;;  %v1118_v54 = vmul.f32 %v2854_v3, %v604_v46  ;;  %v1630_v59 = vadd.f32 %v2865_v13, %v1116_v48 }
 0x19d   : > { %2119 = vst [vmem:[%s2878_s6 + $0xc08] sm:$0xff] %v1607_v52  ;;  %v606_v52 = vld [vmem:[%s2849_s4 + $0xce0] sm:$0xff]  ;;  %v1119_v57 = vmul.f32 %v2854_v3, %v605_v49  ;;  %v1631_v62 = vadd.f32 %v2865_v13, %v1117_v51 }
 0x19e   : > { %2120 = vst [vmem:[%s2878_s6 + $0xc10] sm:$0xff] %v1608_v55  ;;  %v607_v55 = vld [vmem:[%s2849_s4 + $0xce8] sm:$0xff]  ;;  %v1120_v60 = vmul.f32 %v2854_v3, %v606_v52  ;;  %v1632_v1 = vadd.f32 %v2865_v13, %v1118_v54 }
 0x19f   : > { %2121 = vst [vmem:[%s2878_s6 + $0xc18] sm:$0xff] %v1609_v58  ;;  %v608_v58 = vld [vmem:[%s2849_s4 + $0xcf0] sm:$0xff]  ;;  %v1121_v63 = vmul.f32 %v2854_v3, %v607_v55  ;;  %v1633_v5 = vadd.f32 %v2865_v13, %v1119_v57 }
 0x1a0   : > { %2122 = vst [vmem:[%s2878_s6 + $0xc20] sm:$0xff] %v1610_v61  ;;  %v609_v61 = vld [vmem:[%s2849_s4 + $0xcf8] sm:$0xff]  ;;  %v1122_v2 = vmul.f32 %v2854_v3, %v608_v58  ;;  %v1634_v8 = vadd.f32 %v2865_v13, %v1120_v60 }
 0x1a1   : > { %2123 = vst [vmem:[%s2878_s6 + $0xc28] sm:$0xff] %v1611_v0  ;;  %v610_v0 = vld [vmem:[%s2849_s4 + $0xd00] sm:$0xff]  ;;  %v1123_v6 = vmul.f32 %v2854_v3, %v609_v61  ;;  %v1635_v11 = vadd.f32 %v2865_v13, %v1121_v63 }
 0x1a2   : > { %2124 = vst [vmem:[%s2878_s6 + $0xc30] sm:$0xff] %v1612_v4  ;;  %v611_v4 = vld [vmem:[%s2849_s4 + $0xd08] sm:$0xff]  ;;  %v1124_v9 = vmul.f32 %v2854_v3, %v610_v0  ;;  %v1636_v15 = vadd.f32 %v2865_v13, %v1122_v2 }
 0x1a3   : > { %2125 = vst [vmem:[%s2878_s6 + $0xc38] sm:$0xff] %v1613_v7  ;;  %v612_v7 = vld [vmem:[%s2849_s4 + $0xd10] sm:$0xff]  ;;  %v1125_v12 = vmul.f32 %v2854_v3, %v611_v4  ;;  %v1637_v18 = vadd.f32 %v2865_v13, %v1123_v6 }
 0x1a4   : > { %2126 = vst [vmem:[%s2878_s6 + $0xc40] sm:$0xff] %v1614_v10  ;;  %v613_v10 = vld [vmem:[%s2849_s4 + $0xd18] sm:$0xff]  ;;  %v1126_v16 = vmul.f32 %v2854_v3, %v612_v7  ;;  %v1638_v21 = vadd.f32 %v2865_v13, %v1124_v9 }
 0x1a5   : > { %2127 = vst [vmem:[%s2878_s6 + $0xc48] sm:$0xff] %v1615_v14  ;;  %v614_v14 = vld [vmem:[%s2849_s4 + $0xd20] sm:$0xff]  ;;  %v1127_v19 = vmul.f32 %v2854_v3, %v613_v10  ;;  %v1639_v24 = vadd.f32 %v2865_v13, %v1125_v12 }
 0x1a6   : > { %2128 = vst [vmem:[%s2878_s6 + $0xc50] sm:$0xff] %v1616_v17  ;;  %v615_v17 = vld [vmem:[%s2849_s4 + $0xd28] sm:$0xff]  ;;  %v1128_v22 = vmul.f32 %v2854_v3, %v614_v14  ;;  %v1640_v27 = vadd.f32 %v2865_v13, %v1126_v16 }
 0x1a7   : > { %2129 = vst [vmem:[%s2878_s6 + $0xc58] sm:$0xff] %v1617_v20  ;;  %v616_v20 = vld [vmem:[%s2849_s4 + $0xd30] sm:$0xff]  ;;  %v1129_v25 = vmul.f32 %v2854_v3, %v615_v17  ;;  %v1641_v30 = vadd.f32 %v2865_v13, %v1127_v19 }
 0x1a8   : > { %2130 = vst [vmem:[%s2878_s6 + $0xc60] sm:$0xff] %v1618_v23  ;;  %v617_v23 = vld [vmem:[%s2849_s4 + $0xd38] sm:$0xff]  ;;  %v1130_v28 = vmul.f32 %v2854_v3, %v616_v20  ;;  %v1642_v33 = vadd.f32 %v2865_v13, %v1128_v22 }
 0x1a9   : > { %2131 = vst [vmem:[%s2878_s6 + $0xc68] sm:$0xff] %v1619_v26  ;;  %v618_v26 = vld [vmem:[%s2849_s4 + $0xd40] sm:$0xff]  ;;  %v1131_v31 = vmul.f32 %v2854_v3, %v617_v23  ;;  %v1643_v36 = vadd.f32 %v2865_v13, %v1129_v25 }
 0x1aa   : > { %2132 = vst [vmem:[%s2878_s6 + $0xc70] sm:$0xff] %v1620_v29  ;;  %v619_v29 = vld [vmem:[%s2849_s4 + $0xd48] sm:$0xff]  ;;  %v1132_v34 = vmul.f32 %v2854_v3, %v618_v26  ;;  %v1644_v39 = vadd.f32 %v2865_v13, %v1130_v28 }
 0x1ab   : > { %2133 = vst [vmem:[%s2878_s6 + $0xc78] sm:$0xff] %v1621_v32  ;;  %v620_v32 = vld [vmem:[%s2849_s4 + $0xd50] sm:$0xff]  ;;  %v1133_v37 = vmul.f32 %v2854_v3, %v619_v29  ;;  %v1645_v42 = vadd.f32 %v2865_v13, %v1131_v31 }
 0x1ac   : > { %2134 = vst [vmem:[%s2878_s6 + $0xc80] sm:$0xff] %v1622_v35  ;;  %v621_v35 = vld [vmem:[%s2849_s4 + $0xd58] sm:$0xff]  ;;  %v1134_v40 = vmul.f32 %v2854_v3, %v620_v32  ;;  %v1646_v45 = vadd.f32 %v2865_v13, %v1132_v34 }
 0x1ad   : > { %2135 = vst [vmem:[%s2878_s6 + $0xc88] sm:$0xff] %v1623_v38  ;;  %v622_v38 = vld [vmem:[%s2849_s4 + $0xd60] sm:$0xff]  ;;  %v1135_v43 = vmul.f32 %v2854_v3, %v621_v35  ;;  %v1647_v48 = vadd.f32 %v2865_v13, %v1133_v37 }
 0x1ae   : > { %2136 = vst [vmem:[%s2878_s6 + $0xc90] sm:$0xff] %v1624_v41  ;;  %v623_v41 = vld [vmem:[%s2849_s4 + $0xd68] sm:$0xff]  ;;  %v1136_v46 = vmul.f32 %v2854_v3, %v622_v38  ;;  %v1648_v51 = vadd.f32 %v2865_v13, %v1134_v40 }
 0x1af   : > { %2137 = vst [vmem:[%s2878_s6 + $0xc98] sm:$0xff] %v1625_v44  ;;  %v624_v44 = vld [vmem:[%s2849_s4 + $0xd70] sm:$0xff]  ;;  %v1137_v49 = vmul.f32 %v2854_v3, %v623_v41  ;;  %v1649_v54 = vadd.f32 %v2865_v13, %v1135_v43 }
 0x1b0   : > { %2138 = vst [vmem:[%s2878_s6 + $0xca0] sm:$0xff] %v1626_v47  ;;  %v625_v47 = vld [vmem:[%s2849_s4 + $0xd78] sm:$0xff]  ;;  %v1138_v52 = vmul.f32 %v2854_v3, %v624_v44  ;;  %v1650_v57 = vadd.f32 %v2865_v13, %v1136_v46 }
 0x1b1   : > { %2139 = vst [vmem:[%s2878_s6 + $0xca8] sm:$0xff] %v1627_v50  ;;  %v626_v50 = vld [vmem:[%s2849_s4 + $0xd80] sm:$0xff]  ;;  %v1139_v55 = vmul.f32 %v2854_v3, %v625_v47  ;;  %v1651_v60 = vadd.f32 %v2865_v13, %v1137_v49 }
 0x1b2   : > { %2140 = vst [vmem:[%s2878_s6 + $0xcb0] sm:$0xff] %v1628_v53  ;;  %v627_v53 = vld [vmem:[%s2849_s4 + $0xd88] sm:$0xff]  ;;  %v1140_v58 = vmul.f32 %v2854_v3, %v626_v50  ;;  %v1652_v63 = vadd.f32 %v2865_v13, %v1138_v52 }
 0x1b3   : > { %2141 = vst [vmem:[%s2878_s6 + $0xcb8] sm:$0xff] %v1629_v56  ;;  %v628_v56 = vld [vmem:[%s2849_s4 + $0xd90] sm:$0xff]  ;;  %v1141_v61 = vmul.f32 %v2854_v3, %v627_v53  ;;  %v1653_v2 = vadd.f32 %v2865_v13, %v1139_v55 }
 0x1b4   : > { %2142 = vst [vmem:[%s2878_s6 + $0xcc0] sm:$0xff] %v1630_v59  ;;  %v629_v59 = vld [vmem:[%s2849_s4 + $0xd98] sm:$0xff]  ;;  %v1142_v0 = vmul.f32 %v2854_v3, %v628_v56  ;;  %v1654_v6 = vadd.f32 %v2865_v13, %v1140_v58 }
 0x1b5   : > { %2143 = vst [vmem:[%s2878_s6 + $0xcc8] sm:$0xff] %v1631_v62  ;;  %v630_v62 = vld [vmem:[%s2849_s4 + $0xda0] sm:$0xff]  ;;  %v1143_v4 = vmul.f32 %v2854_v3, %v629_v59  ;;  %v1655_v9 = vadd.f32 %v2865_v13, %v1141_v61 }
 0x1b6   : > { %2144 = vst [vmem:[%s2878_s6 + $0xcd0] sm:$0xff] %v1632_v1  ;;  %v631_v1 = vld [vmem:[%s2849_s4 + $0xda8] sm:$0xff]  ;;  %v1144_v7 = vmul.f32 %v2854_v3, %v630_v62  ;;  %v1656_v12 = vadd.f32 %v2865_v13, %v1142_v0 }
 0x1b7   : > { %2145 = vst [vmem:[%s2878_s6 + $0xcd8] sm:$0xff] %v1633_v5  ;;  %v632_v5 = vld [vmem:[%s2849_s4 + $0xdb0] sm:$0xff]  ;;  %v1145_v10 = vmul.f32 %v2854_v3, %v631_v1  ;;  %v1657_v16 = vadd.f32 %v2865_v13, %v1143_v4 }
 0x1b8   : > { %2146 = vst [vmem:[%s2878_s6 + $0xce0] sm:$0xff] %v1634_v8  ;;  %v633_v8 = vld [vmem:[%s2849_s4 + $0xdb8] sm:$0xff]  ;;  %v1146_v14 = vmul.f32 %v2854_v3, %v632_v5  ;;  %v1658_v19 = vadd.f32 %v2865_v13, %v1144_v7 }
 0x1b9   : > { %2147 = vst [vmem:[%s2878_s6 + $0xce8] sm:$0xff] %v1635_v11  ;;  %v634_v11 = vld [vmem:[%s2849_s4 + $0xdc0] sm:$0xff]  ;;  %v1147_v17 = vmul.f32 %v2854_v3, %v633_v8  ;;  %v1659_v22 = vadd.f32 %v2865_v13, %v1145_v10 }
 0x1ba   : > { %2148 = vst [vmem:[%s2878_s6 + $0xcf0] sm:$0xff] %v1636_v15  ;;  %v635_v15 = vld [vmem:[%s2849_s4 + $0xdc8] sm:$0xff]  ;;  %v1148_v20 = vmul.f32 %v2854_v3, %v634_v11  ;;  %v1660_v25 = vadd.f32 %v2865_v13, %v1146_v14 }
 0x1bb   : > { %2149 = vst [vmem:[%s2878_s6 + $0xcf8] sm:$0xff] %v1637_v18  ;;  %v636_v18 = vld [vmem:[%s2849_s4 + $0xdd0] sm:$0xff]  ;;  %v1149_v23 = vmul.f32 %v2854_v3, %v635_v15  ;;  %v1661_v28 = vadd.f32 %v2865_v13, %v1147_v17 }
 0x1bc   : > { %2150 = vst [vmem:[%s2878_s6 + $0xd00] sm:$0xff] %v1638_v21  ;;  %v637_v21 = vld [vmem:[%s2849_s4 + $0xdd8] sm:$0xff]  ;;  %v1150_v26 = vmul.f32 %v2854_v3, %v636_v18  ;;  %v1662_v31 = vadd.f32 %v2865_v13, %v1148_v20 }
 0x1bd   : > { %2151 = vst [vmem:[%s2878_s6 + $0xd08] sm:$0xff] %v1639_v24  ;;  %v638_v24 = vld [vmem:[%s2849_s4 + $0xde0] sm:$0xff]  ;;  %v1151_v29 = vmul.f32 %v2854_v3, %v637_v21  ;;  %v1663_v34 = vadd.f32 %v2865_v13, %v1149_v23 }
 0x1be   : > { %2152 = vst [vmem:[%s2878_s6 + $0xd10] sm:$0xff] %v1640_v27  ;;  %v639_v27 = vld [vmem:[%s2849_s4 + $0xde8] sm:$0xff]  ;;  %v1152_v32 = vmul.f32 %v2854_v3, %v638_v24  ;;  %v1664_v37 = vadd.f32 %v2865_v13, %v1150_v26 }
 0x1bf   : > { %2153 = vst [vmem:[%s2878_s6 + $0xd18] sm:$0xff] %v1641_v30  ;;  %v640_v30 = vld [vmem:[%s2849_s4 + $0xdf0] sm:$0xff]  ;;  %v1153_v35 = vmul.f32 %v2854_v3, %v639_v27  ;;  %v1665_v40 = vadd.f32 %v2865_v13, %v1151_v29 }
 0x1c0   : > { %2154 = vst [vmem:[%s2878_s6 + $0xd20] sm:$0xff] %v1642_v33  ;;  %v641_v33 = vld [vmem:[%s2849_s4 + $0xdf8] sm:$0xff]  ;;  %v1154_v38 = vmul.f32 %v2854_v3, %v640_v30  ;;  %v1666_v43 = vadd.f32 %v2865_v13, %v1152_v32 }
 0x1c1   : > { %2155 = vst [vmem:[%s2878_s6 + $0xd28] sm:$0xff] %v1643_v36  ;;  %v642_v36 = vld [vmem:[%s2849_s4 + $0xe00] sm:$0xff]  ;;  %v1155_v41 = vmul.f32 %v2854_v3, %v641_v33  ;;  %v1667_v46 = vadd.f32 %v2865_v13, %v1153_v35 }
 0x1c2   : > { %2156 = vst [vmem:[%s2878_s6 + $0xd30] sm:$0xff] %v1644_v39  ;;  %v643_v39 = vld [vmem:[%s2849_s4 + $0xe08] sm:$0xff]  ;;  %v1156_v44 = vmul.f32 %v2854_v3, %v642_v36  ;;  %v1668_v49 = vadd.f32 %v2865_v13, %v1154_v38 }
 0x1c3   : > { %2157 = vst [vmem:[%s2878_s6 + $0xd38] sm:$0xff] %v1645_v42  ;;  %v644_v42 = vld [vmem:[%s2849_s4 + $0xe10] sm:$0xff]  ;;  %v1157_v47 = vmul.f32 %v2854_v3, %v643_v39  ;;  %v1669_v52 = vadd.f32 %v2865_v13, %v1155_v41 }
 0x1c4   : > { %2158 = vst [vmem:[%s2878_s6 + $0xd40] sm:$0xff] %v1646_v45  ;;  %v645_v45 = vld [vmem:[%s2849_s4 + $0xe18] sm:$0xff]  ;;  %v1158_v50 = vmul.f32 %v2854_v3, %v644_v42  ;;  %v1670_v55 = vadd.f32 %v2865_v13, %v1156_v44 }
 0x1c5   : > { %2159 = vst [vmem:[%s2878_s6 + $0xd48] sm:$0xff] %v1647_v48  ;;  %v646_v48 = vld [vmem:[%s2849_s4 + $0xe20] sm:$0xff]  ;;  %v1159_v53 = vmul.f32 %v2854_v3, %v645_v45  ;;  %v1671_v58 = vadd.f32 %v2865_v13, %v1157_v47 }
 0x1c6   : > { %2160 = vst [vmem:[%s2878_s6 + $0xd50] sm:$0xff] %v1648_v51  ;;  %v647_v51 = vld [vmem:[%s2849_s4 + $0xe28] sm:$0xff]  ;;  %v1160_v56 = vmul.f32 %v2854_v3, %v646_v48  ;;  %v1672_v61 = vadd.f32 %v2865_v13, %v1158_v50 }
 0x1c7   : > { %2161 = vst [vmem:[%s2878_s6 + $0xd58] sm:$0xff] %v1649_v54  ;;  %v648_v54 = vld [vmem:[%s2849_s4 + $0xe30] sm:$0xff]  ;;  %v1161_v59 = vmul.f32 %v2854_v3, %v647_v51  ;;  %v1673_v0 = vadd.f32 %v2865_v13, %v1159_v53 }
 0x1c8   : > { %2162 = vst [vmem:[%s2878_s6 + $0xd60] sm:$0xff] %v1650_v57  ;;  %v649_v57 = vld [vmem:[%s2849_s4 + $0xe38] sm:$0xff]  ;;  %v1162_v62 = vmul.f32 %v2854_v3, %v648_v54  ;;  %v1674_v4 = vadd.f32 %v2865_v13, %v1160_v56 }
 0x1c9   : > { %2163 = vst [vmem:[%s2878_s6 + $0xd68] sm:$0xff] %v1651_v60  ;;  %v650_v60 = vld [vmem:[%s2849_s4 + $0xe40] sm:$0xff]  ;;  %v1163_v1 = vmul.f32 %v2854_v3, %v649_v57  ;;  %v1675_v7 = vadd.f32 %v2865_v13, %v1161_v59 }
 0x1ca   : > { %2164 = vst [vmem:[%s2878_s6 + $0xd70] sm:$0xff] %v1652_v63  ;;  %v651_v63 = vld [vmem:[%s2849_s4 + $0xe48] sm:$0xff]  ;;  %v1164_v5 = vmul.f32 %v2854_v3, %v650_v60  ;;  %v1676_v10 = vadd.f32 %v2865_v13, %v1162_v62 }
 0x1cb   : > { %2165 = vst [vmem:[%s2878_s6 + $0xd78] sm:$0xff] %v1653_v2  ;;  %v652_v2 = vld [vmem:[%s2849_s4 + $0xe50] sm:$0xff]  ;;  %v1165_v8 = vmul.f32 %v2854_v3, %v651_v63  ;;  %v1677_v14 = vadd.f32 %v2865_v13, %v1163_v1 }
 0x1cc   : > { %2166 = vst [vmem:[%s2878_s6 + $0xd80] sm:$0xff] %v1654_v6  ;;  %v653_v6 = vld [vmem:[%s2849_s4 + $0xe58] sm:$0xff]  ;;  %v1166_v11 = vmul.f32 %v2854_v3, %v652_v2  ;;  %v1678_v17 = vadd.f32 %v2865_v13, %v1164_v5 }
 0x1cd   : > { %2167 = vst [vmem:[%s2878_s6 + $0xd88] sm:$0xff] %v1655_v9  ;;  %v654_v9 = vld [vmem:[%s2849_s4 + $0xe60] sm:$0xff]  ;;  %v1167_v15 = vmul.f32 %v2854_v3, %v653_v6  ;;  %v1679_v20 = vadd.f32 %v2865_v13, %v1165_v8 }
 0x1ce   : > { %2168 = vst [vmem:[%s2878_s6 + $0xd90] sm:$0xff] %v1656_v12  ;;  %v655_v12 = vld [vmem:[%s2849_s4 + $0xe68] sm:$0xff]  ;;  %v1168_v18 = vmul.f32 %v2854_v3, %v654_v9  ;;  %v1680_v23 = vadd.f32 %v2865_v13, %v1166_v11 }
 0x1cf   : > { %2169 = vst [vmem:[%s2878_s6 + $0xd98] sm:$0xff] %v1657_v16  ;;  %v656_v16 = vld [vmem:[%s2849_s4 + $0xe70] sm:$0xff]  ;;  %v1169_v21 = vmul.f32 %v2854_v3, %v655_v12  ;;  %v1681_v26 = vadd.f32 %v2865_v13, %v1167_v15 }
 0x1d0   : > { %2170 = vst [vmem:[%s2878_s6 + $0xda0] sm:$0xff] %v1658_v19  ;;  %v657_v19 = vld [vmem:[%s2849_s4 + $0xe78] sm:$0xff]  ;;  %v1170_v24 = vmul.f32 %v2854_v3, %v656_v16  ;;  %v1682_v29 = vadd.f32 %v2865_v13, %v1168_v18 }
 0x1d1   : > { %2171 = vst [vmem:[%s2878_s6 + $0xda8] sm:$0xff] %v1659_v22  ;;  %v658_v22 = vld [vmem:[%s2849_s4 + $0xe80] sm:$0xff]  ;;  %v1171_v27 = vmul.f32 %v2854_v3, %v657_v19  ;;  %v1683_v32 = vadd.f32 %v2865_v13, %v1169_v21 }
 0x1d2   : > { %2172 = vst [vmem:[%s2878_s6 + $0xdb0] sm:$0xff] %v1660_v25  ;;  %v659_v25 = vld [vmem:[%s2849_s4 + $0xe88] sm:$0xff]  ;;  %v1172_v30 = vmul.f32 %v2854_v3, %v658_v22  ;;  %v1684_v35 = vadd.f32 %v2865_v13, %v1170_v24 }
 0x1d3   : > { %2173 = vst [vmem:[%s2878_s6 + $0xdb8] sm:$0xff] %v1661_v28  ;;  %v660_v28 = vld [vmem:[%s2849_s4 + $0xe90] sm:$0xff]  ;;  %v1173_v33 = vmul.f32 %v2854_v3, %v659_v25  ;;  %v1685_v38 = vadd.f32 %v2865_v13, %v1171_v27 }
 0x1d4   : > { %2174 = vst [vmem:[%s2878_s6 + $0xdc0] sm:$0xff] %v1662_v31  ;;  %v661_v31 = vld [vmem:[%s2849_s4 + $0xe98] sm:$0xff]  ;;  %v1174_v36 = vmul.f32 %v2854_v3, %v660_v28  ;;  %v1686_v41 = vadd.f32 %v2865_v13, %v1172_v30 }
 0x1d5   : > { %2175 = vst [vmem:[%s2878_s6 + $0xdc8] sm:$0xff] %v1663_v34  ;;  %v662_v34 = vld [vmem:[%s2849_s4 + $0xea0] sm:$0xff]  ;;  %v1175_v39 = vmul.f32 %v2854_v3, %v661_v31  ;;  %v1687_v44 = vadd.f32 %v2865_v13, %v1173_v33 }
 0x1d6   : > { %2176 = vst [vmem:[%s2878_s6 + $0xdd0] sm:$0xff] %v1664_v37  ;;  %v663_v37 = vld [vmem:[%s2849_s4 + $0xea8] sm:$0xff]  ;;  %v1176_v42 = vmul.f32 %v2854_v3, %v662_v34  ;;  %v1688_v47 = vadd.f32 %v2865_v13, %v1174_v36 }
 0x1d7   : > { %2177 = vst [vmem:[%s2878_s6 + $0xdd8] sm:$0xff] %v1665_v40  ;;  %v664_v40 = vld [vmem:[%s2849_s4 + $0xeb0] sm:$0xff]  ;;  %v1177_v45 = vmul.f32 %v2854_v3, %v663_v37  ;;  %v1689_v50 = vadd.f32 %v2865_v13, %v1175_v39 }
 0x1d8   : > { %2178 = vst [vmem:[%s2878_s6 + $0xde0] sm:$0xff] %v1666_v43  ;;  %v665_v43 = vld [vmem:[%s2849_s4 + $0xeb8] sm:$0xff]  ;;  %v1178_v48 = vmul.f32 %v2854_v3, %v664_v40  ;;  %v1690_v53 = vadd.f32 %v2865_v13, %v1176_v42 }
 0x1d9   : > { %2179 = vst [vmem:[%s2878_s6 + $0xde8] sm:$0xff] %v1667_v46  ;;  %v666_v46 = vld [vmem:[%s2849_s4 + $0xec0] sm:$0xff]  ;;  %v1179_v51 = vmul.f32 %v2854_v3, %v665_v43  ;;  %v1691_v56 = vadd.f32 %v2865_v13, %v1177_v45 }
 0x1da   : > { %2180 = vst [vmem:[%s2878_s6 + $0xdf0] sm:$0xff] %v1668_v49  ;;  %v667_v49 = vld [vmem:[%s2849_s4 + $0xec8] sm:$0xff]  ;;  %v1180_v54 = vmul.f32 %v2854_v3, %v666_v46  ;;  %v1692_v59 = vadd.f32 %v2865_v13, %v1178_v48 }
 0x1db   : > { %2181 = vst [vmem:[%s2878_s6 + $0xdf8] sm:$0xff] %v1669_v52  ;;  %v668_v52 = vld [vmem:[%s2849_s4 + $0xed0] sm:$0xff]  ;;  %v1181_v57 = vmul.f32 %v2854_v3, %v667_v49  ;;  %v1693_v62 = vadd.f32 %v2865_v13, %v1179_v51 }
 0x1dc   : > { %2182 = vst [vmem:[%s2878_s6 + $0xe00] sm:$0xff] %v1670_v55  ;;  %v669_v55 = vld [vmem:[%s2849_s4 + $0xed8] sm:$0xff]  ;;  %v1182_v60 = vmul.f32 %v2854_v3, %v668_v52  ;;  %v1694_v1 = vadd.f32 %v2865_v13, %v1180_v54 }
 0x1dd   : > { %2183 = vst [vmem:[%s2878_s6 + $0xe08] sm:$0xff] %v1671_v58  ;;  %v670_v58 = vld [vmem:[%s2849_s4 + $0xee0] sm:$0xff]  ;;  %v1183_v63 = vmul.f32 %v2854_v3, %v669_v55  ;;  %v1695_v5 = vadd.f32 %v2865_v13, %v1181_v57 }
 0x1de   : > { %2184 = vst [vmem:[%s2878_s6 + $0xe10] sm:$0xff] %v1672_v61  ;;  %v671_v61 = vld [vmem:[%s2849_s4 + $0xee8] sm:$0xff]  ;;  %v1184_v2 = vmul.f32 %v2854_v3, %v670_v58  ;;  %v1696_v8 = vadd.f32 %v2865_v13, %v1182_v60 }
 0x1df   : > { %2185 = vst [vmem:[%s2878_s6 + $0xe18] sm:$0xff] %v1673_v0  ;;  %v672_v0 = vld [vmem:[%s2849_s4 + $0xef0] sm:$0xff]  ;;  %v1185_v6 = vmul.f32 %v2854_v3, %v671_v61  ;;  %v1697_v11 = vadd.f32 %v2865_v13, %v1183_v63 }
 0x1e0   : > { %2186 = vst [vmem:[%s2878_s6 + $0xe20] sm:$0xff] %v1674_v4  ;;  %v673_v4 = vld [vmem:[%s2849_s4 + $0xef8] sm:$0xff]  ;;  %v1186_v9 = vmul.f32 %v2854_v3, %v672_v0  ;;  %v1698_v15 = vadd.f32 %v2865_v13, %v1184_v2 }
 0x1e1   : > { %2187 = vst [vmem:[%s2878_s6 + $0xe28] sm:$0xff] %v1675_v7  ;;  %v674_v7 = vld [vmem:[%s2849_s4 + $0xf00] sm:$0xff]  ;;  %v1187_v12 = vmul.f32 %v2854_v3, %v673_v4  ;;  %v1699_v18 = vadd.f32 %v2865_v13, %v1185_v6 }
 0x1e2   : > { %2188 = vst [vmem:[%s2878_s6 + $0xe30] sm:$0xff] %v1676_v10  ;;  %v675_v10 = vld [vmem:[%s2849_s4 + $0xf08] sm:$0xff]  ;;  %v1188_v16 = vmul.f32 %v2854_v3, %v674_v7  ;;  %v1700_v21 = vadd.f32 %v2865_v13, %v1186_v9 }
 0x1e3   : > { %2189 = vst [vmem:[%s2878_s6 + $0xe38] sm:$0xff] %v1677_v14  ;;  %v676_v14 = vld [vmem:[%s2849_s4 + $0xf10] sm:$0xff]  ;;  %v1189_v19 = vmul.f32 %v2854_v3, %v675_v10  ;;  %v1701_v24 = vadd.f32 %v2865_v13, %v1187_v12 }
 0x1e4   : > { %2190 = vst [vmem:[%s2878_s6 + $0xe40] sm:$0xff] %v1678_v17  ;;  %v677_v17 = vld [vmem:[%s2849_s4 + $0xf18] sm:$0xff]  ;;  %v1190_v22 = vmul.f32 %v2854_v3, %v676_v14  ;;  %v1702_v27 = vadd.f32 %v2865_v13, %v1188_v16 }
 0x1e5   : > { %2191 = vst [vmem:[%s2878_s6 + $0xe48] sm:$0xff] %v1679_v20  ;;  %v678_v20 = vld [vmem:[%s2849_s4 + $0xf20] sm:$0xff]  ;;  %v1191_v25 = vmul.f32 %v2854_v3, %v677_v17  ;;  %v1703_v30 = vadd.f32 %v2865_v13, %v1189_v19 }
 0x1e6   : > { %2192 = vst [vmem:[%s2878_s6 + $0xe50] sm:$0xff] %v1680_v23  ;;  %v679_v23 = vld [vmem:[%s2849_s4 + $0xf28] sm:$0xff]  ;;  %v1192_v28 = vmul.f32 %v2854_v3, %v678_v20  ;;  %v1704_v33 = vadd.f32 %v2865_v13, %v1190_v22 }
 0x1e7   : > { %2193 = vst [vmem:[%s2878_s6 + $0xe58] sm:$0xff] %v1681_v26  ;;  %v680_v26 = vld [vmem:[%s2849_s4 + $0xf30] sm:$0xff]  ;;  %v1193_v31 = vmul.f32 %v2854_v3, %v679_v23  ;;  %v1705_v36 = vadd.f32 %v2865_v13, %v1191_v25 }
 0x1e8   : > { %2194 = vst [vmem:[%s2878_s6 + $0xe60] sm:$0xff] %v1682_v29  ;;  %v681_v29 = vld [vmem:[%s2849_s4 + $0xf38] sm:$0xff]  ;;  %v1194_v34 = vmul.f32 %v2854_v3, %v680_v26  ;;  %v1706_v39 = vadd.f32 %v2865_v13, %v1192_v28 }
 0x1e9   : > { %2195 = vst [vmem:[%s2878_s6 + $0xe68] sm:$0xff] %v1683_v32  ;;  %v682_v32 = vld [vmem:[%s2849_s4 + $0xf40] sm:$0xff]  ;;  %v1195_v37 = vmul.f32 %v2854_v3, %v681_v29  ;;  %v1707_v42 = vadd.f32 %v2865_v13, %v1193_v31 }
 0x1ea   : > { %2196 = vst [vmem:[%s2878_s6 + $0xe70] sm:$0xff] %v1684_v35  ;;  %v683_v35 = vld [vmem:[%s2849_s4 + $0xf48] sm:$0xff]  ;;  %v1196_v40 = vmul.f32 %v2854_v3, %v682_v32  ;;  %v1708_v45 = vadd.f32 %v2865_v13, %v1194_v34 }
 0x1eb   : > { %2197 = vst [vmem:[%s2878_s6 + $0xe78] sm:$0xff] %v1685_v38  ;;  %v684_v38 = vld [vmem:[%s2849_s4 + $0xf50] sm:$0xff]  ;;  %v1197_v43 = vmul.f32 %v2854_v3, %v683_v35  ;;  %v1709_v48 = vadd.f32 %v2865_v13, %v1195_v37 }
 0x1ec   : > { %2198 = vst [vmem:[%s2878_s6 + $0xe80] sm:$0xff] %v1686_v41  ;;  %v685_v41 = vld [vmem:[%s2849_s4 + $0xf58] sm:$0xff]  ;;  %v1198_v46 = vmul.f32 %v2854_v3, %v684_v38  ;;  %v1710_v51 = vadd.f32 %v2865_v13, %v1196_v40 }
 0x1ed   : > { %2199 = vst [vmem:[%s2878_s6 + $0xe88] sm:$0xff] %v1687_v44  ;;  %v686_v44 = vld [vmem:[%s2849_s4 + $0xf60] sm:$0xff]  ;;  %v1199_v49 = vmul.f32 %v2854_v3, %v685_v41  ;;  %v1711_v54 = vadd.f32 %v2865_v13, %v1197_v43 }
 0x1ee   : > { %2200 = vst [vmem:[%s2878_s6 + $0xe90] sm:$0xff] %v1688_v47  ;;  %v687_v47 = vld [vmem:[%s2849_s4 + $0xf68] sm:$0xff]  ;;  %v1200_v52 = vmul.f32 %v2854_v3, %v686_v44  ;;  %v1712_v57 = vadd.f32 %v2865_v13, %v1198_v46 }
 0x1ef   : > { %2201 = vst [vmem:[%s2878_s6 + $0xe98] sm:$0xff] %v1689_v50  ;;  %v688_v50 = vld [vmem:[%s2849_s4 + $0xf70] sm:$0xff]  ;;  %v1201_v55 = vmul.f32 %v2854_v3, %v687_v47  ;;  %v1713_v60 = vadd.f32 %v2865_v13, %v1199_v49 }
 0x1f0   : > { %2202 = vst [vmem:[%s2878_s6 + $0xea0] sm:$0xff] %v1690_v53  ;;  %v689_v53 = vld [vmem:[%s2849_s4 + $0xf78] sm:$0xff]  ;;  %v1202_v58 = vmul.f32 %v2854_v3, %v688_v50  ;;  %v1714_v63 = vadd.f32 %v2865_v13, %v1200_v52 }
 0x1f1   : > { %2203 = vst [vmem:[%s2878_s6 + $0xea8] sm:$0xff] %v1691_v56  ;;  %v690_v56 = vld [vmem:[%s2849_s4 + $0xf80] sm:$0xff]  ;;  %v1203_v61 = vmul.f32 %v2854_v3, %v689_v53  ;;  %v1715_v2 = vadd.f32 %v2865_v13, %v1201_v55 }
 0x1f2   : > { %2204 = vst [vmem:[%s2878_s6 + $0xeb0] sm:$0xff] %v1692_v59  ;;  %v691_v59 = vld [vmem:[%s2849_s4 + $0xf88] sm:$0xff]  ;;  %v1204_v0 = vmul.f32 %v2854_v3, %v690_v56  ;;  %v1716_v6 = vadd.f32 %v2865_v13, %v1202_v58 }
 0x1f3   : > { %2205 = vst [vmem:[%s2878_s6 + $0xeb8] sm:$0xff] %v1693_v62  ;;  %v692_v62 = vld [vmem:[%s2849_s4 + $0xf90] sm:$0xff]  ;;  %v1205_v4 = vmul.f32 %v2854_v3, %v691_v59  ;;  %v1717_v9 = vadd.f32 %v2865_v13, %v1203_v61 }
 0x1f4   : > { %2206 = vst [vmem:[%s2878_s6 + $0xec0] sm:$0xff] %v1694_v1  ;;  %v693_v1 = vld [vmem:[%s2849_s4 + $0xf98] sm:$0xff]  ;;  %v1206_v7 = vmul.f32 %v2854_v3, %v692_v62  ;;  %v1718_v12 = vadd.f32 %v2865_v13, %v1204_v0 }
 0x1f5   : > { %2207 = vst [vmem:[%s2878_s6 + $0xec8] sm:$0xff] %v1695_v5  ;;  %v694_v5 = vld [vmem:[%s2849_s4 + $0xfa0] sm:$0xff]  ;;  %v1207_v10 = vmul.f32 %v2854_v3, %v693_v1  ;;  %v1719_v16 = vadd.f32 %v2865_v13, %v1205_v4 }
 0x1f6   : > { %2208 = vst [vmem:[%s2878_s6 + $0xed0] sm:$0xff] %v1696_v8  ;;  %v695_v8 = vld [vmem:[%s2849_s4 + $0xfa8] sm:$0xff]  ;;  %v1208_v14 = vmul.f32 %v2854_v3, %v694_v5  ;;  %v1720_v19 = vadd.f32 %v2865_v13, %v1206_v7 }
 0x1f7   : > { %2209 = vst [vmem:[%s2878_s6 + $0xed8] sm:$0xff] %v1697_v11  ;;  %v696_v11 = vld [vmem:[%s2849_s4 + $0xfb0] sm:$0xff]  ;;  %v1209_v17 = vmul.f32 %v2854_v3, %v695_v8  ;;  %v1721_v22 = vadd.f32 %v2865_v13, %v1207_v10 }
 0x1f8   : > { %2210 = vst [vmem:[%s2878_s6 + $0xee0] sm:$0xff] %v1698_v15  ;;  %v697_v15 = vld [vmem:[%s2849_s4 + $0xfb8] sm:$0xff]  ;;  %v1210_v20 = vmul.f32 %v2854_v3, %v696_v11  ;;  %v1722_v25 = vadd.f32 %v2865_v13, %v1208_v14 }
 0x1f9   : > { %2211 = vst [vmem:[%s2878_s6 + $0xee8] sm:$0xff] %v1699_v18  ;;  %v698_v18 = vld [vmem:[%s2849_s4 + $0xfc0] sm:$0xff]  ;;  %v1211_v23 = vmul.f32 %v2854_v3, %v697_v15  ;;  %v1723_v28 = vadd.f32 %v2865_v13, %v1209_v17 }
 0x1fa   : > { %2212 = vst [vmem:[%s2878_s6 + $0xef0] sm:$0xff] %v1700_v21  ;;  %v699_v21 = vld [vmem:[%s2849_s4 + $0xfc8] sm:$0xff]  ;;  %v1212_v26 = vmul.f32 %v2854_v3, %v698_v18  ;;  %v1724_v31 = vadd.f32 %v2865_v13, %v1210_v20 }
 0x1fb   : > { %2213 = vst [vmem:[%s2878_s6 + $0xef8] sm:$0xff] %v1701_v24  ;;  %v700_v24 = vld [vmem:[%s2849_s4 + $0xfd0] sm:$0xff]  ;;  %v1213_v29 = vmul.f32 %v2854_v3, %v699_v21  ;;  %v1725_v34 = vadd.f32 %v2865_v13, %v1211_v23 }
 0x1fc   : > { %2214 = vst [vmem:[%s2878_s6 + $0xf00] sm:$0xff] %v1702_v27  ;;  %v701_v27 = vld [vmem:[%s2849_s4 + $0xfd8] sm:$0xff]  ;;  %v1214_v32 = vmul.f32 %v2854_v3, %v700_v24  ;;  %v1726_v37 = vadd.f32 %v2865_v13, %v1212_v26 }
 0x1fd   : > { %2215 = vst [vmem:[%s2878_s6 + $0xf08] sm:$0xff] %v1703_v30  ;;  %v702_v30 = vld [vmem:[%s2849_s4 + $0xfe0] sm:$0xff]  ;;  %v1215_v35 = vmul.f32 %v2854_v3, %v701_v27  ;;  %v1727_v40 = vadd.f32 %v2865_v13, %v1213_v29 }
 0x1fe   : > { %2216 = vst [vmem:[%s2878_s6 + $0xf10] sm:$0xff] %v1704_v33  ;;  %v703_v33 = vld [vmem:[%s2849_s4 + $0xfe8] sm:$0xff]  ;;  %v1216_v38 = vmul.f32 %v2854_v3, %v702_v30 }
 0x1ff   : > { %2217 = vst [vmem:[%s2878_s6 + $0xf18] sm:$0xff] %v1705_v36  ;;  %v704_v36 = vld [vmem:[%s2849_s4 + $0xff0] sm:$0xff]  ;;  %v1217_v41 = vmul.f32 %v2854_v3, %v703_v33  ;;  %v1729_v44 = vadd.f32 %v2865_v13, %v1215_v35 }
 0x200   : > { %2218 = vst [vmem:[%s2878_s6 + $0xf20] sm:$0xff] %v1706_v39  ;;  %v705_v39 = vld [vmem:[%s2849_s4 + $0xff8] sm:$0xff]  ;;  %v1218_v43 = vmul.f32 %v2854_v3, %v704_v36  ;;  %v1730_v46 = vadd.f32 %v2865_v13, %v1216_v38 }
 0x201   : > { %2219 = vst [vmem:[%s2878_s6 + $0xf28] sm:$0xff] %v1707_v42  ;;  %v1728_v42 = vadd.f32 %v2865_v13, %v1214_v32  ;;  %v1731_v47 = vadd.f32 %v2865_v13, %v1217_v41 }
 0x202   : > { %2220 = vst [vmem:[%s2878_s6 + $0xf30] sm:$0xff] %v1708_v45  ;;  %v1219_v45 = vmul.f32 %v2854_v3, %v705_v39 }
 0x203   : > { %2221 = vst [vmem:[%s2878_s6 + $0xf38] sm:$0xff] %v1709_v48  ;;  %v1732_v48 = vadd.f32 %v2865_v13, %v1218_v43 }
 0x204   : > { %2222 = vst [vmem:[%s2878_s6 + $0xf40] sm:$0xff] %v1710_v51  ;;  %v1733_v49 = vadd.f32 %v2865_v13, %v1219_v45 }
 0x205   : > { %2223 = vst [vmem:[%s2878_s6 + $0xf48] sm:$0xff] %v1711_v54 }
 0x206   : > { %2224 = vst [vmem:[%s2878_s6 + $0xf50] sm:$0xff] %v1712_v57 }
 0x207   : > { %2225 = vst [vmem:[%s2878_s6 + $0xf58] sm:$0xff] %v1713_v60 }
 0x208   : > { %2226 = vst [vmem:[%s2878_s6 + $0xf60] sm:$0xff] %v1714_v63 }
 0x209   : > { %2227 = vst [vmem:[%s2878_s6 + $0xf68] sm:$0xff] %v1715_v2 }
 0x20a   : > { %2228 = vst [vmem:[%s2878_s6 + $0xf70] sm:$0xff] %v1716_v6 }
 0x20b   : > { %2229 = vst [vmem:[%s2878_s6 + $0xf78] sm:$0xff] %v1717_v9 }
 0x20c   : > { %2230 = vst [vmem:[%s2878_s6 + $0xf80] sm:$0xff] %v1718_v12 }
 0x20d   : > { %2231 = vst [vmem:[%s2878_s6 + $0xf88] sm:$0xff] %v1719_v16 }
 0x20e   : > { %2232 = vst [vmem:[%s2878_s6 + $0xf90] sm:$0xff] %v1720_v19 }
 0x20f   : > { %2233 = vst [vmem:[%s2878_s6 + $0xf98] sm:$0xff] %v1721_v22 }
 0x210   : > { %2234 = vst [vmem:[%s2878_s6 + $0xfa0] sm:$0xff] %v1722_v25 }
 0x211   : > { %2235 = vst [vmem:[%s2878_s6 + $0xfa8] sm:$0xff] %v1723_v28 }
 0x212   : > { %2236 = vst [vmem:[%s2878_s6 + $0xfb0] sm:$0xff] %v1724_v31 }
 0x213   : > { %2237 = vst [vmem:[%s2878_s6 + $0xfb8] sm:$0xff] %v1725_v34 }
 0x214   : > { %2238 = vst [vmem:[%s2878_s6 + $0xfc0] sm:$0xff] %v1726_v37 }
 0x215   : > { %2239 = vst [vmem:[%s2878_s6 + $0xfc8] sm:$0xff] %v1727_v40 }
 0x216   : > { %2240 = vst [vmem:[%s2878_s6 + $0xfd0] sm:$0xff] %v1728_v42 }
 0x217   : > { %2241 = vst [vmem:[%s2878_s6 + $0xfd8] sm:$0xff] %v1729_v44  ;;  %2252 = sbr.rel (!%p2837_p4) target bundleno = 604 (0x25c), region = 36 }
 0x218   : > { %2242 = vst [vmem:[%s2878_s6 + $0xfe0] sm:$0xff] %v1730_v46 }
 0x219   : > { %2243 = vst [vmem:[%s2878_s6 + $0xfe8] sm:$0xff] %v1731_v47 }
 0x21a   : > { %2244 = vst [vmem:[%s2878_s6 + $0xff0] sm:$0xff] %v1732_v48 }
 0x21b   : > { %2245 = vst [vmem:[%s2878_s6 + $0xff8] sm:$0xff] %v1733_v49 }
 0x21c   : > { %s5061_s7 = smov (!%p2255_p8, %s2254_s7), 512 }
 0x21d   : > { %s2595_s12 = sshll.u32 %s5061_s7, 3 }
 0x21e   : > { %p2598_p9 = scmp.eq.s32.totalorder %s2595_s12, 0 }
 0x21f   : > { %s4918_s13 = sshrl.u32 (!%p2598_p9), %s5061_s7, 5 }
 0x220   : > { %2263 = sbr.rel (%p2598_p9) target bundleno = 604 (0x25c), region = 40  ;;  %p2599_p10 = scmp.le.s32.totalorder (!%p2598_p9), %s4918_s13, 0 }
 0x225   : > { %2542 = sbr.rel (%p2599_p10) target bundleno = 587 (0x24b), region = 116  ;;  %s5052_s14 = smov (!%p2599_p10), %s4912_s11 }
 0x226   : > { %s5053_s15 = smov (!%p2599_p10), %s2878_s6  ;;  %s4927_s16 = smov (!%p2599_p10), 0  }
 0x227   : > { %s4929_s18 = smov (!%p2599_p10), 0  }
 0x22a LB: >> { %v2388_v3 = vld [vmem:[%s2763_s15] sm:$0xff]  ;;  %v2390_v13 = vld [vmem:[%s2763_s15 + $0x8] sm:$0xff]  ;;  %v2392_v50 = vld [vmem:[%s2763_s15 + $0x10] sm:$0xff]  ;;  %s2452_s0 = sadd.s32 1, %s2767_s16  ;;  %s2382_s18 = sadd.s32 1, %s2771_s18   ;;  %s2771_s18 = sphi %s4929_s18, %s2382_s18   ;;  %s2767_s16 = sphi %s4927_s16, %s5056_s16   ;;  %s2763_s15 = sphi %s5053_s15, %s5055_s15   ;;  %s2759_s14 = sphi %s5052_s14, %s5054_s14  }
 0x22b   : >> { %2389 = vst [vmem:[%s2759_s14] sm:$0xff] %v2388_v3  ;;  %v2394_v51 = vld [vmem:[%s2763_s15 + $0x18] sm:$0xff]  ;;  %p2453_p11 = scmp.ge.s32.totalorder %s2452_s0, %s4918_s13  ;;  %v2396_v52 = vld [vmem:[%s2763_s15 + $0x20] sm:$0xff]  ;;  %v2398_v53 = vld [vmem:[%s2763_s15 + $0x28] sm:$0xff]  ;;  %p2381_p12 = scmp.ge.s32.totalorder %s2382_s18, %s4918_s13 }
 0x22c   : >> { %2391 = vst [vmem:[%s2759_s14 + $0x8] sm:$0xff] %v2390_v13  ;;  %v2400_v54 = vld [vmem:[%s2763_s15 + $0x30] sm:$0xff]  ;;  %v2402_v55 = vld [vmem:[%s2763_s15 + $0x38] sm:$0xff]  ;;  %v2404_v56 = vld [vmem:[%s2763_s15 + $0x40] sm:$0xff] }
 0x22d   : >> { %2393 = vst [vmem:[%s2759_s14 + $0x10] sm:$0xff] %v2392_v50  ;;  %s5063_s0 = smov (%p2453_p11, %s2452_s0), 0  ;;  %v2406_v57 = vld [vmem:[%s2763_s15 + $0x48] sm:$0xff]  ;;  %v2408_v58 = vld [vmem:[%s2763_s15 + $0x50] sm:$0xff]  ;;  %v2410_v59 = vld [vmem:[%s2763_s15 + $0x58] sm:$0xff] }
 0x22e   : >> { %2395 = vst [vmem:[%s2759_s14 + $0x18] sm:$0xff] %v2394_v51  ;;  %s2600_s19 = sshll.u32 %s5063_s0, 8  ;;  %v2412_v60 = vld [vmem:[%s2763_s15 + $0x60] sm:$0xff]  ;;  %v2414_v61 = vld [vmem:[%s2763_s15 + $0x68] sm:$0xff]  ;;  %v2416_v62 = vld [vmem:[%s2763_s15 + $0x70] sm:$0xff]  ;;  %s5056_s16 = smov %s5063_s0 }
 0x22f   : >> { %2397 = vst [vmem:[%s2759_s14 + $0x20] sm:$0xff] %v2396_v52  ;;  %s4961_s20 = scalar_lea.vmem %s2878_s6, %s2600_s19 [#allocation4]   ;;  %s4964_s22 = scalar_lea.vmem %s4912_s11, %s2600_s19   ;;  %v2418_v63 = vld [vmem:[%s2763_s15 + $0x78] sm:$0xff]  ;;  %v2420_v0 = vld [vmem:[%s2763_s15 + $0x80] sm:$0xff]  ;;  %v2422_v1 = vld [vmem:[%s2763_s15 + $0x88] sm:$0xff] }
 0x230   : >> { %2399 = vst [vmem:[%s2759_s14 + $0x28] sm:$0xff] %v2398_v53  ;;  %v2424_v2 = vld [vmem:[%s2763_s15 + $0x90] sm:$0xff]  ;;  %v2426_v4 = vld [vmem:[%s2763_s15 + $0x98] sm:$0xff]  ;;  %v2428_v5 = vld [vmem:[%s2763_s15 + $0xa0] sm:$0xff] }
 0x231   : >> { %2401 = vst [vmem:[%s2759_s14 + $0x30] sm:$0xff] %v2400_v54  ;;  %v2430_v6 = vld [vmem:[%s2763_s15 + $0xa8] sm:$0xff]  ;;  %v2432_v7 = vld [vmem:[%s2763_s15 + $0xb0] sm:$0xff]  ;;  %v2434_v8 = vld [vmem:[%s2763_s15 + $0xb8] sm:$0xff] }
 0x232   : >> { %2403 = vst [vmem:[%s2759_s14 + $0x38] sm:$0xff] %v2402_v55  ;;  %v2436_v9 = vld [vmem:[%s2763_s15 + $0xc0] sm:$0xff]  ;;  %v2438_v10 = vld [vmem:[%s2763_s15 + $0xc8] sm:$0xff]  ;;  %v2440_v11 = vld [vmem:[%s2763_s15 + $0xd0] sm:$0xff] }
 0x233   : >> { %2405 = vst [vmem:[%s2759_s14 + $0x40] sm:$0xff] %v2404_v56  ;;  %v2442_v12 = vld [vmem:[%s2763_s15 + $0xd8] sm:$0xff]  ;;  %v2444_v14 = vld [vmem:[%s2763_s15 + $0xe0] sm:$0xff]  ;;  %v2446_v15 = vld [vmem:[%s2763_s15 + $0xe8] sm:$0xff] }
 0x234   : >> { %2407 = vst [vmem:[%s2759_s14 + $0x48] sm:$0xff] %v2406_v57  ;;  %v2448_v16 = vld [vmem:[%s2763_s15 + $0xf0] sm:$0xff]  ;;  %v2450_v17 = vld [vmem:[%s2763_s15 + $0xf8] sm:$0xff]  ;;  %s5055_s15 = smov %s4961_s20 }
 0x235   : >> { %2409 = vst [vmem:[%s2759_s14 + $0x50] sm:$0xff] %v2408_v58 }
 0x236   : >> { %2411 = vst [vmem:[%s2759_s14 + $0x58] sm:$0xff] %v2410_v59 }
 0x237   : >> { %2413 = vst [vmem:[%s2759_s14 + $0x60] sm:$0xff] %v2412_v60 }
 0x238   : >> { %2415 = vst [vmem:[%s2759_s14 + $0x68] sm:$0xff] %v2414_v61 }
 0x239   : >> { %2417 = vst [vmem:[%s2759_s14 + $0x70] sm:$0xff] %v2416_v62 }
 0x23a   : >> { %2419 = vst [vmem:[%s2759_s14 + $0x78] sm:$0xff] %v2418_v63 }
 0x23b   : >> { %2421 = vst [vmem:[%s2759_s14 + $0x80] sm:$0xff] %v2420_v0 }
 0x23c   : >> { %2423 = vst [vmem:[%s2759_s14 + $0x88] sm:$0xff] %v2422_v1 }
 0x23d   : >> { %2425 = vst [vmem:[%s2759_s14 + $0x90] sm:$0xff] %v2424_v2 }
 0x23e   : >> { %2427 = vst [vmem:[%s2759_s14 + $0x98] sm:$0xff] %v2426_v4 }
 0x23f   : >> { %2429 = vst [vmem:[%s2759_s14 + $0xa0] sm:$0xff] %v2428_v5 }
 0x240   : >> { %2431 = vst [vmem:[%s2759_s14 + $0xa8] sm:$0xff] %v2430_v6 }
 0x241   : >> { %2433 = vst [vmem:[%s2759_s14 + $0xb0] sm:$0xff] %v2432_v7 }
 0x242   : >> { %2435 = vst [vmem:[%s2759_s14 + $0xb8] sm:$0xff] %v2434_v8 }
 0x243   : >> { %2437 = vst [vmem:[%s2759_s14 + $0xc0] sm:$0xff] %v2436_v9 }
 0x244   : >> { %2439 = vst [vmem:[%s2759_s14 + $0xc8] sm:$0xff] %v2438_v10 }
 0x245   : >> { %2441 = vst [vmem:[%s2759_s14 + $0xd0] sm:$0xff] %v2440_v11 }
 0x246   : >> { %2443 = vst [vmem:[%s2759_s14 + $0xd8] sm:$0xff] %v2442_v12  ;;  %2384 = sbr.rel (!%p2381_p12) target bundleno = 554 (0x22a), region = 122 }
 0x247   : >> { %2445 = vst [vmem:[%s2759_s14 + $0xe0] sm:$0xff] %v2444_v14 }
 0x248   : >> { %2447 = vst [vmem:[%s2759_s14 + $0xe8] sm:$0xff] %v2446_v15 }
 0x249   : >> { %2449 = vst [vmem:[%s2759_s14 + $0xf0] sm:$0xff] %v2448_v16 }
 0x24a   : >> { %2451 = vst [vmem:[%s2759_s14 + $0xf8] sm:$0xff] %v2450_v17  ;;  %s5054_s14 = smov %s4964_s22 }
 0x24b PF: > { %s5029_s23 = sand.u32 31, %s5061_s7   ;;  %s2611_s24 = sshll.u32 %s4918_s13, 8 }
 0x24c   : > { %s2463_s25 = scalar_lea.vmem %s2878_s6, %s2611_s24 [#allocation4]   ;;  %s2465_s26 = scalar_lea.vmem %s4912_s11, %s2611_s24  }
 0x24d   : > { %p2605_p13 = scmp.le.s32.totalorder %s5029_s23, 0 }
 0x24e   : > { %s2773_s27 = smov (!%p2605_p13), %s2465_s26   ;;  %s2777_s28 = smov (!%p2605_p13), %s2463_s25  }
 0x24f   : > { %2556 = sbr.rel (%p2605_p13) target bundleno = 604 (0x25c), region = 127  ;;  %s2781_s29 = smov (!%p2605_p13), 0  }
 0x250   : > { %s2785_s30 = smov (!%p2605_p13), 0  }
 0x254 LB: >> { %v2475_v18 = vld [vmem:[%s2779_s28] sm:$0xff]  ;;  %s2477_s4 = sadd.s32 1, %s2783_s29  ;;  %s2469_s30 = sadd.s32 1, %s2787_s30   ;;  %s2787_s30 = sphi %s2785_s30, %s2469_s30   ;;  %s2783_s29 = sphi %s2781_s29, %s2782_s29   ;;  %s2779_s28 = sphi %s2777_s28, %s2482_s28   ;;  %s2775_s27 = sphi %s2773_s27, %s2483_s27  }
 0x255   : >> { %2476 = vst [vmem:[%s2775_s27] sm:$0xff] %v2475_v18  ;;  %p2478_p0 = scmp.ge.s32.totalorder %s2477_s4, %s5029_s23  ;;  %p2468_p1 = scmp.ge.s32.totalorder %s2469_s30, %s5029_s23 }
 0x257   : >> { %s5065_s4 = smov (%p2478_p0, %s2477_s4), 0  ;;  %2471 = sbr.rel (!%p2468_p1) target bundleno = 596 (0x254), region = 133 }
 0x258   : >> { %s2606_s5 = sshll.u32 %s5065_s4, 3  ;;  %s2782_s29 = smov %s5065_s4  }
 0x259   : >> { %s2482_s28 = scalar_lea.vmem %s2463_s25, %s2606_s5 [#allocation4]   ;;  %s2483_s27 = scalar_lea.vmem %s2465_s26, %s2606_s5  }
 0x25c PF: > { %p12_p2 = scmp.ge.s32.totalorder %s2828_s1, 6   ;;  %s5057_s16 = smov %s2751_s17 }
 0x25d   : > { %s5058_s17 = smov %s2835_s21  ;;  %s5059_s18 = smov %s2828_s1 }
 0x25e   :  { %14 = sbr.rel (!%p12_p2) target bundleno = 5 (0x5), region = 144 }

</bundles_post_ra>
